<compile_context>
chip_gen: v6e
topology: v6e:2x2x1
jax: 0.10.0
libtpu: 0.0.40
codegen_flags: <defaults>
</compile_context>

<pallas_src>
import functools

import jax
import jax.numpy as jnp
from jax import lax
from jax.experimental import pallas as pl
from jax.experimental.pallas import tpu as pltpu


# ---------------------------------------------------------------------------
# Kernel
# ---------------------------------------------------------------------------
def _inverted_residual_kernel(
    x_ref,        # (H+2, WIN, Cin)  zero-padded input, batch dim squeezed
    *refs,        # [w1, b1,] dw, b2, w3, b3, out [, h_scratch]
    H, W, Cin, hidden, oup_p, WIN, Wop, stride, expand, use_res, TR,
):
    if expand:
        w1_ref, b1_ref, dw_ref, b2_ref, w3_ref, b3_ref, o_ref, h_scr = refs
    else:
        dw_ref, b2_ref, w3_ref, b3_ref, o_ref = refs
        h_scr = None

    ROWS_IN = (TR - 1) * stride + 3
    row_step = TR * stride
    row0 = pl.program_id(1) * row_step
    if row_step % 8 == 0:
        row0 = pl.multiple_of(row0, 8)

    # ---- phase 1 (expand only): 1x1 conv + bias + ReLU6, one row at a time --
    # Each row result goes straight to a VMEM scratch, so only one (WIN, hidden)
    # row is ever live in registers.
    if expand:
        col = lax.broadcasted_iota(jnp.int32, (WIN, 1), 0)
        col_ok = jnp.logical_and(col >= 1, col <= W)

        def expand_row(i, carry):
            rg = row0 + i                                   # padded-image row index
            xrow = x_ref[rg]                                # (WIN, Cin) f32
            hrow = jnp.dot(xrow.astype(jnp.bfloat16), w1_ref[...],
                           preferred_element_type=jnp.float32)
            hrow = jnp.clip(hrow + b1_ref[...], 0.0, 6.0)
            # The depthwise zero-padding applies to the *expanded* activation,
            # so the spatial border (which picked up ReLU6(bias)) is re-zeroed.
            row_ok = jnp.logical_and(rg >= 1, rg <= H)
            hrow = jnp.where(jnp.logical_and(col_ok, row_ok), hrow, 0.0)
            h_scr[i] = hrow
            return carry

        lax.fori_loop(0, ROWS_IN, expand_row, 0, unroll=True)

    # ---- phase 2: depthwise + ReLU6 -> project -> residual -> store, per row -
    def tap(row, dc):
        # One depthwise tap row, (Wop, hidden).  stride==2 uses a strided read;
        # there is no staging slab round-trip in either case.
        if expand:
            if stride == 1:
                return h_scr[row, pl.ds(dc, Wop), :]
            return h_scr[row, pl.ds(dc, Wop, stride=2), :]
        if stride == 1:
            return x_ref[row0 + row, pl.ds(dc, Wop), :]
        return x_ref[row0 + row, pl.ds(dc, Wop, stride=2), :]

    def out_row(t, carry):
        acc = jnp.zeros((Wop, hidden), jnp.float32)
        for dh in range(3):
            row = t * stride + dh
            for dc in range(3):
                w = dw_ref[pl.ds(dh * 3 + dc, 1), :]        # (1, hidden), per-tap load
                acc = acc + tap(row, dc) * w
        acc = jnp.clip(acc + b2_ref[...], 0.0, 6.0)

        y = jnp.dot(acc.astype(jnp.bfloat16), w3_ref[...],
                    preferred_element_type=jnp.float32) + b3_ref[...]

        if use_res:
            # Re-read the residual rows at the point of use (stride==1 here).
            xres = x_ref[row0 + t + 1, pl.ds(1, Wop), :]    # (Wop, Cin)
            if oup_p > Cin:
                xres = jnp.concatenate(
                    [xres, jnp.zeros((Wop, oup_p - Cin), jnp.float32)], axis=-1)
            y = y + xres

        o_ref[t] = y.astype(o_ref.dtype)                    # lane-dense unmasked store
        return carry

    lax.fori_loop(0, TR, out_row, 0, unroll=True)


# ---------------------------------------------------------------------------
# Parameter preparation (BN folding is plain-JAX glue, done once)
# ---------------------------------------------------------------------------
def _fold_bn(gamma, beta, mean, var, eps=1e-5):
    scale = gamma / jnp.sqrt(var + eps)
    bias = beta - mean * scale
    return scale.astype(jnp.float32), bias.astype(jnp.float32)


def _round_up(x, m):
    return (x + m - 1) // m * m


def make_params(key, inp, oup, expand_ratio):
    """Synthetic parameters matching the PyTorch module, with BN folded into the
    conv weights (convs have bias=False), matmul weights cast to bf16 and the
    project weights/bias padded to a lane-dense (multiple of 128) oup."""
    hidden = int(round(inp * expand_ratio))
    expand = expand_ratio != 1
    oup_p = _round_up(oup, 128)
    ks = jax.random.split(key, 6)

    def bn(k, c):
        kg, kb, km, kv = jax.random.split(k, 4)
        gamma = 0.5 + jax.random.uniform(kg, (c,), jnp.float32)
        beta = 0.1 * jax.random.normal(kb, (c,), jnp.float32)
        mean = 0.1 * jax.random.normal(km, (c,), jnp.float32)
        var = 0.5 + jax.random.uniform(kv, (c,), jnp.float32)
        return _fold_bn(gamma, beta, mean, var)

    p = {"hidden": hidden, "expand": expand, "oup": oup, "oup_p": oup_p}

    if expand:
        # nn.Conv2d(inp, hidden, 1): weight (hidden, inp, 1, 1)
        w1 = 0.1 * jax.random.normal(ks[0], (hidden, inp, 1, 1), jnp.float32)
        s1, b1 = bn(ks[1], hidden)
        p["w1"] = (w1.reshape(hidden, inp).T * s1[None, :]).astype(jnp.bfloat16)
        p["b1"] = b1.reshape(1, hidden)

    # depthwise nn.Conv2d(hidden, hidden, 3, groups=hidden): (hidden, 1, 3, 3)
    dw = 0.1 * jax.random.normal(ks[2], (hidden, 1, 3, 3), jnp.float32)
    s2, b2 = bn(ks[3], hidden)
    dwk = jnp.transpose(dw.reshape(hidden, 3, 3), (1, 2, 0)) * s2   # (3,3,hidden)
    p["dw"] = dwk.reshape(9, hidden).astype(jnp.float32)
    p["b2"] = b2.reshape(1, hidden)

    # project nn.Conv2d(hidden, oup, 1): weight (oup, hidden, 1, 1)
    w3 = 0.1 * jax.random.normal(ks[4], (oup, hidden, 1, 1), jnp.float32)
    s3, b3 = bn(ks[5], oup)
    w3f = w3.reshape(oup, hidden).T * s3[None, :]                   # (hidden, oup)
    p["w3"] = jnp.pad(w3f, ((0, 0), (0, oup_p - oup))).astype(jnp.bfloat16)
    p["b3"] = jnp.pad(b3, (0, oup_p - oup)).reshape(1, oup_p)
    return p


# ---------------------------------------------------------------------------
# Wrapper
# ---------------------------------------------------------------------------
def _pick_row_tile(ho, target):
    t = min(target, ho)
    while ho % t:
        t -= 1
    return t


def _vmem_bytes(shape, itemsize):
    if len(shape) == 1:
        return _round_up(shape[0], 128) * itemsize
    n = 1
    for d in shape[:-2]:
        n *= d
    return n * _round_up(shape[-2], 8) * _round_up(shape[-1], 128) * itemsize


def inverted_residual(x_nchw, params, *, stride, row_tile=16):
    """Forward pass of InvertedResidual.  Input/output layout: NCHW."""
    assert stride in (1, 2)
    N, Cin, H, W = x_nchw.shape
    hidden = params["hidden"]
    expand = params["expand"]
    oup, oup_p = params["oup"], params["oup_p"]
    use_res = (stride == 1) and (Cin == oup)

    Ho = (H - 1) // stride + 1
    Wo = (W - 1) // stride + 1
    TR = _pick_row_tile(Ho, row_tile)            # output rows per grid step
    RB = Ho // TR
    ROWS_IN = (TR - 1) * stride + 3
    Wop = _round_up(Wo, 8)                       # sublane-aligned output width
    WIN = _round_up((Wop - 1) * stride + 3, 8)   # sublane-aligned padded input width

    # NHWC + zero padding: 1 row top/bottom, 1 col left, rest right (alignment).
    # TODO(synk): keeping NCHW at the module boundary costs two extra HBM passes
    # (transpose in / out); a multi-layer integration should stay NHWC end-to-end.
    x_nhwc = jnp.transpose(x_nchw, (0, 2, 3, 1)).astype(jnp.float32)
    xp = jnp.pad(x_nhwc, ((0, 0), (1, 1), (1, WIN - W - 1), (0, 0)))

    kernel = functools.partial(
        _inverted_residual_kernel,
        H=H, W=W, Cin=Cin, hidden=hidden, oup_p=oup_p,
        WIN=WIN, Wop=Wop, stride=stride, expand=expand, use_res=use_res, TR=TR,
    )

    inputs = [xp]
    # TODO(synk): on v7x a pl.Element row-slab input spec (ROWS_IN rows + halo)
    # would cut input VMEM residency; kept as the full padded image here.
    in_specs = [pl.BlockSpec((None, H + 2, WIN, Cin), lambda b, r: (b, 0, 0, 0))]
    if expand:
        inputs += [params["w1"], params["b1"]]
        in_specs += [pl.BlockSpec((Cin, hidden), lambda b, r: (0, 0)),
                     pl.BlockSpec((1, hidden), lambda b, r: (0, 0))]
    inputs += [params["dw"], params["b2"], params["w3"], params["b3"]]
    in_specs += [pl.BlockSpec((9, hidden), lambda b, r: (0, 0)),
                 pl.BlockSpec((1, hidden), lambda b, r: (0, 0)),
                 pl.BlockSpec((hidden, oup_p), lambda b, r: (0, 0)),
                 pl.BlockSpec((1, oup_p), lambda b, r: (0, 0))]
    out_spec = pl.BlockSpec((None, TR, Wop, oup_p), lambda b, r: (b, r, 0, 0))

    scratch = []
    if expand:
        scratch = [pltpu.VMEM((ROWS_IN, WIN, hidden), jnp.float32)]

    # VMEM budget from actual block residency (double-buffered) + scratch.
    blocks = [((H + 2, WIN, Cin), 4), ((9, hidden), 4), ((1, hidden), 4),
              ((hidden, oup_p), 2), ((1, oup_p), 4), ((TR, Wop, oup_p), 4)]
    if expand:
        blocks += [((Cin, hidden), 2), ((1, hidden), 4)]
    need = 2 * sum(_vmem_bytes(s, it) for s, it in blocks)
    if expand:
        need += _vmem_bytes((ROWS_IN, WIN, hidden), 4)
    need += 2 << 20                               # headroom for compiler scratch
    try:
        cap = int(pltpu.get_tpu_info().vmem_capacity_bytes)
    except Exception:
        cap = 64 << 20                            # conservative (v7x per-TC)
    vmem_limit = int(min(max(2 * need, 32 << 20), 0.9 * cap))
    vmem_limit = int(min(max(vmem_limit, need), 128 << 20))

    out_p = pl.pallas_call(
        kernel,
        out_shape=jax.ShapeDtypeStruct((N, Ho, Wop, oup_p), jnp.float32),
        grid_spec=pltpu.PrefetchScalarGridSpec(
            num_scalar_prefetch=0,
            grid=(N, RB),
            in_specs=in_specs,
            out_specs=out_spec,
            scratch_shapes=scratch,
        ),
        compiler_params=pltpu.CompilerParams(
            dimension_semantics=("parallel", "parallel"),
            vmem_limit_bytes=vmem_limit,
        ),
    )(*inputs)

    out = out_p[:, :, :Wo, :oup]                 # drop width / lane padding
    return jnp.transpose(out, (0, 3, 1, 2))      # back to NCHW


# ---------------------------------------------------------------------------
# Pure-JAX reference (same folded/bf16 parameters)
# ---------------------------------------------------------------------------
def reference(x_nchw, params, *, stride):
    N, Cin, H, W = x_nchw.shape
    hidden = params["hidden"]
    oup = params["oup"]
    use_res = (stride == 1) and (Cin == oup)

    x = jnp.transpose(x_nchw, (0, 2, 3, 1)).astype(jnp.float32)
    if params["expand"]:
        h = jnp.einsum("nhwc,cd->nhwd", x.astype(jnp.bfloat16), params["w1"],
                       preferred_element_type=jnp.float32)
        h = jnp.clip(h + params["b1"][0], 0.0, 6.0)
    else:
        h = x

    pad = jnp.pad(h, ((0, 0), (1, 1), (1, 1), (0, 0)))
    Ho = (H - 1) // stride + 1
    Wo = (W - 1) // stride + 1
    dwk = params["dw"].reshape(3, 3, hidden)
    acc = jnp.zeros((N, Ho, Wo, hidden), jnp.float32)
    for dh in range(3):
        for dc in range(3):
            tap = pad[:, dh:dh + (Ho - 1) * stride + 1:stride,
                      dc:dc + (Wo - 1) * stride + 1:stride, :]
            acc = acc + tap * dwk[dh, dc]
    acc = jnp.clip(acc + params["b2"][0], 0.0, 6.0)

    y = jnp.einsum("nhwc,cd->nhwd", acc.astype(jnp.bfloat16),
                   params["w3"][:, :oup], preferred_element_type=jnp.float32)
    y = y + params["b3"][0, :oup]
    if use_res:
        y = y + x
    return jnp.transpose(y, (0, 3, 1, 2))


if __name__ == "__main__":
    key = jax.random.PRNGKey(0)
    k_x1, k_p1, k_x2, k_p2, k_x3, k_p3 = jax.random.split(key, 6)

    # Test 1: standard MBv2 block — expand_ratio=6, stride=1, inp == oup
    # (residual path; row_tile=8 forces 2 row blocks so the halo logic runs).
    N, Cin, H, W = 2, 4, 16, 16
    oup, stride, expand_ratio = 4, 1, 6
    params = make_params(k_p1, Cin, oup, expand_ratio)
    x = jax.random.normal(k_x1, (N, Cin, H, W), jnp.float32)
    out = jax.block_until_ready(inverted_residual(x, params, stride=stride, row_tile=8))
    ref = reference(x, params, stride=stride)
    assert out.shape == ref.shape, (out.shape, ref.shape)
    err = float(jnp.max(jnp.abs(out - ref)))
    assert err < 2e-2, err

    # Test 2: expand_ratio == 1 specialization (no expand conv), residual path.
    params2 = make_params(k_p2, 8, 8, 1)
    x2 = jax.random.normal(k_x2, (2, 8, 16, 16), jnp.float32)
    out2 = jax.block_until_ready(inverted_residual(x2, params2, stride=1))
    ref2 = reference(x2, params2, stride=1)
    err2 = float(jnp.max(jnp.abs(out2 - ref2)))
    assert err2 < 2e-2, err2

    # Test 3: stride == 2 downsampling block (no residual), expand_ratio=6.
    params3 = make_params(k_p3, 4, 8, 6)
    x3 = jax.random.normal(k_x3, (2, 4, 16, 16), jnp.float32)
    out3 = jax.block_until_ready(inverted_residual(x3, params3, stride=2))
    ref3 = reference(x3, params3, stride=2)
    assert out3.shape == ref3.shape, (out3.shape, ref3.shape)
    err3 = float(jnp.max(jnp.abs(out3 - ref3)))
    assert err3 < 2e-2, err3

    print("KERNEL_OK")
</pallas_src>

<mosaic_0001>
module attributes {stable_mosaic.version = 11 : i64} {
  func.func @_inverted_residual_kernel(%arg0: i32, %arg1: i32, %arg2: memref<1x18x24x4xf32, #tpu.memory_space<vmem>>, %arg3: memref<4x24xbf16, #tpu.memory_space<vmem>>, %arg4: memref<1x24xf32, #tpu.memory_space<vmem>>, %arg5: memref<9x24xf32, #tpu.memory_space<vmem>>, %arg6: memref<1x24xf32, #tpu.memory_space<vmem>>, %arg7: memref<24x128xbf16, #tpu.memory_space<vmem>>, %arg8: memref<1x128xf32, #tpu.memory_space<vmem>>, %arg9: memref<1x8x16x128xf32, #tpu.memory_space<vmem>>, %arg10: memref<10x24x24xf32, #tpu.memory_space<vmem>>) attributes {dimension_semantics = [#tpu.dimension_semantics<parallel>, #tpu.dimension_semantics<parallel>], iteration_bounds = array<i64: 2, 2>, scalar_prefetch = 0 : i64, scratch_operands = 1 : i64, tpu.core_type = #tpu.core_type<tc>, window_params = [{transform_indices = @transform_0, window_bounds = array<i64: 1, 18, 24, 4>}, {pipeline_mode = #tpu.pipeline_mode<synchronous>, transform_indices = @transform_1, window_bounds = array<i64: 4, 24>}, {pipeline_mode = #tpu.pipeline_mode<synchronous>, transform_indices = @transform_2, window_bounds = array<i64: 1, 24>}, {pipeline_mode = #tpu.pipeline_mode<synchronous>, transform_indices = @transform_3, window_bounds = array<i64: 9, 24>}, {pipeline_mode = #tpu.pipeline_mode<synchronous>, transform_indices = @transform_4, window_bounds = array<i64: 1, 24>}, {pipeline_mode = #tpu.pipeline_mode<synchronous>, transform_indices = @transform_5, window_bounds = array<i64: 24, 128>}, {pipeline_mode = #tpu.pipeline_mode<synchronous>, transform_indices = @transform_6, window_bounds = array<i64: 1, 128>}, {transform_indices = @transform_7, window_bounds = array<i64: 1, 8, 16, 128>}]} {
    %c8_i32 = arith.constant 8 : i32
    %0 = arith.muli %arg1, %c8_i32 : i32
    %1 = tpu.assume_multiple %0, 8 : i32
    %2 = tpu.iota {dimensions = array<i32: 0>} : vector<24x1xi32>
    %c1_i32 = arith.constant 1 : i32
    %3 = vector.broadcast %c1_i32 : i32 to vector<24x1xi32>
    %4 = arith.cmpi sge, %2, %3 : vector<24x1xi32>
    %c16_i32 = arith.constant 16 : i32
    %5 = vector.broadcast %c16_i32 : i32 to vector<24x1xi32>
    %6 = arith.cmpi sle, %2, %5 : vector<24x1xi32>
    %7 = arith.andi %4, %6 : vector<24x1xi1>
    %c0_i32 = arith.constant 0 : i32
    %8 = arith.addi %1, %c0_i32 : i32
    %c0 = arith.constant 0 : index
    %9 = arith.index_cast %8 : i32 to index
    %c0_0 = arith.constant 0 : index
    %c0_1 = arith.constant 0 : index
    %10 = vector.load %arg2[%c0, %9, %c0_0, %c0_1] : memref<1x18x24x4xf32, #tpu.memory_space<vmem>>, vector<1x1x24x4xf32>
    %11 = vector.shape_cast %10 : vector<1x1x24x4xf32> to vector<24x4xf32>
    %12 = arith.truncf %11 : vector<24x4xf32> to vector<24x4xbf16>
    %c0_2 = arith.constant 0 : index
    %c0_3 = arith.constant 0 : index
    %13 = vector.load %arg3[%c0_2, %c0_3] : memref<4x24xbf16, #tpu.memory_space<vmem>>, vector<4x24xbf16>
    %cst = arith.constant dense<0.000000e+00> : vector<24x24xf32>
    %14 = tpu.matmul %12, %13, %cst {dimension_numbers = #tpu.dot_dimension_numbers<[1], [0], [0], [1], [0, 0, 1, 1], [], []>} : vector<24x4xbf16>, vector<4x24xbf16>, vector<24x24xf32> -> vector<24x24xf32>
    %c0_4 = arith.constant 0 : index
    %c0_5 = arith.constant 0 : index
    %15 = vector.load %arg4[%c0_4, %c0_5] : memref<1x24xf32, #tpu.memory_space<vmem>>, vector<1x24xf32>
    %16 = vector.broadcast %15 : vector<1x24xf32> to vector<24x24xf32>
    %17 = arith.addf %14, %16 : vector<24x24xf32>
    %cst_6 = arith.constant 0.000000e+00 : f32
    %cst_7 = arith.constant 6.000000e+00 : f32
    %18 = vector.broadcast %cst_6 : f32 to vector<24x24xf32>
    %19 = arith.maximumf %18, %17 : vector<24x24xf32>
    %20 = vector.broadcast %cst_7 : f32 to vector<24x24xf32>
    %21 = arith.minimumf %20, %19 : vector<24x24xf32>
    %c1_i32_8 = arith.constant 1 : i32
    %22 = arith.cmpi sge, %8, %c1_i32_8 : i32
    %c16_i32_9 = arith.constant 16 : i32
    %23 = arith.cmpi sle, %8, %c16_i32_9 : i32
    %24 = arith.andi %22, %23 : i1
    %25 = vector.broadcast %24 : i1 to vector<24x1xi1>
    %26 = arith.andi %7, %25 : vector<24x1xi1>
    %cst_10 = arith.constant 0.000000e+00 : f32
    %27 = vector.shape_cast %26 : vector<24x1xi1> to vector<24x1xi1>
    %28 = vector.broadcast %27 : vector<24x1xi1> to vector<24x24xi1>
    %29 = vector.broadcast %cst_10 : f32 to vector<24x24xf32>
    %30 = arith.select %28, %21, %29 : vector<24x24xi1>, vector<24x24xf32>
    %31 = arith.index_cast %c0_i32 : i32 to index
    %c0_11 = arith.constant 0 : index
    %c0_12 = arith.constant 0 : index
    %32 = vector.load %arg10[%31, %c0_11, %c0_12] : memref<10x24x24xf32, #tpu.memory_space<vmem>>, vector<1x24x24xf32>
    %33 = vector.shape_cast %32 : vector<1x24x24xf32> to vector<24x24xf32>
    %34 = vector.shape_cast %30 : vector<24x24xf32> to vector<1x24x24xf32>
    tpu.vector_store %arg10[%31, %c0_11, %c0_12], %34 {strides = array<i32>} : memref<10x24x24xf32, #tpu.memory_space<vmem>>, vector<1x24x24xf32>,
    %c1_i32_13 = arith.constant 1 : i32
    %35 = arith.addi %1, %c1_i32_13 : i32
    %c0_14 = arith.constant 0 : index
    %36 = arith.index_cast %35 : i32 to index
    %c0_15 = arith.constant 0 : index
    %c0_16 = arith.constant 0 : index
    %37 = vector.load %arg2[%c0_14, %36, %c0_15, %c0_16] : memref<1x18x24x4xf32, #tpu.memory_space<vmem>>, vector<1x1x24x4xf32>
    %38 = vector.shape_cast %37 : vector<1x1x24x4xf32> to vector<24x4xf32>
    %39 = arith.truncf %38 : vector<24x4xf32> to vector<24x4xbf16>
    %c0_17 = arith.constant 0 : index
    %c0_18 = arith.constant 0 : index
    %40 = vector.load %arg3[%c0_17, %c0_18] : memref<4x24xbf16, #tpu.memory_space<vmem>>, vector<4x24xbf16>
    %cst_19 = arith.constant dense<0.000000e+00> : vector<24x24xf32>
    %41 = tpu.matmul %39, %40, %cst_19 {dimension_numbers = #tpu.dot_dimension_numbers<[1], [0], [0], [1], [0, 0, 1, 1], [], []>} : vector<24x4xbf16>, vector<4x24xbf16>, vector<24x24xf32> -> vector<24x24xf32>
    %c0_20 = arith.constant 0 : index
    %c0_21 = arith.constant 0 : index
    %42 = vector.load %arg4[%c0_20, %c0_21] : memref<1x24xf32, #tpu.memory_space<vmem>>, vector<1x24xf32>
    %43 = vector.broadcast %42 : vector<1x24xf32> to vector<24x24xf32>
    %44 = arith.addf %41, %43 : vector<24x24xf32>
    %cst_22 = arith.constant 0.000000e+00 : f32
    %cst_23 = arith.constant 6.000000e+00 : f32
    %45 = vector.broadcast %cst_22 : f32 to vector<24x24xf32>
    %46 = arith.maximumf %45, %44 : vector<24x24xf32>
    %47 = vector.broadcast %cst_23 : f32 to vector<24x24xf32>
    %48 = arith.minimumf %47, %46 : vector<24x24xf32>
    %c1_i32_24 = arith.constant 1 : i32
    %49 = arith.cmpi sge, %35, %c1_i32_24 : i32
    %c16_i32_25 = arith.constant 16 : i32
    %50 = arith.cmpi sle, %35, %c16_i32_25 : i32
    %51 = arith.andi %49, %50 : i1
    %52 = vector.broadcast %51 : i1 to vector<24x1xi1>
    %53 = arith.andi %7, %52 : vector<24x1xi1>
    %cst_26 = arith.constant 0.000000e+00 : f32
    %54 = vector.shape_cast %53 : vector<24x1xi1> to vector<24x1xi1>
    %55 = vector.broadcast %54 : vector<24x1xi1> to vector<24x24xi1>
    %56 = vector.broadcast %cst_26 : f32 to vector<24x24xf32>
    %57 = arith.select %55, %48, %56 : vector<24x24xi1>, vector<24x24xf32>
    %58 = arith.index_cast %c1_i32_13 : i32 to index
    %c0_27 = arith.constant 0 : index
    %c0_28 = arith.constant 0 : index
    %59 = vector.load %arg10[%58, %c0_27, %c0_28] : memref<10x24x24xf32, #tpu.memory_space<vmem>>, vector<1x24x24xf32>
    %60 = vector.shape_cast %59 : vector<1x24x24xf32> to vector<24x24xf32>
    %61 = vector.shape_cast %57 : vector<24x24xf32> to vector<1x24x24xf32>
    tpu.vector_store %arg10[%58, %c0_27, %c0_28], %61 {strides = array<i32>} : memref<10x24x24xf32, #tpu.memory_space<vmem>>, vector<1x24x24xf32>,
    %c2_i32 = arith.constant 2 : i32
    %62 = arith.addi %1, %c2_i32 : i32
    %c0_29 = arith.constant 0 : index
    %63 = arith.index_cast %62 : i32 to index
    %c0_30 = arith.constant 0 : index
    %c0_31 = arith.constant 0 : index
    %64 = vector.load %arg2[%c0_29, %63, %c0_30, %c0_31] : memref<1x18x24x4xf32, #tpu.memory_space<vmem>>, vector<1x1x24x4xf32>
    %65 = vector.shape_cast %64 : vector<1x1x24x4xf32> to vector<24x4xf32>
    %66 = arith.truncf %65 : vector<24x4xf32> to vector<24x4xbf16>
    %c0_32 = arith.constant 0 : index
    %c0_33 = arith.constant 0 : index
    %67 = vector.load %arg3[%c0_32, %c0_33] : memref<4x24xbf16, #tpu.memory_space<vmem>>, vector<4x24xbf16>
    %cst_34 = arith.constant dense<0.000000e+00> : vector<24x24xf32>
    %68 = tpu.matmul %66, %67, %cst_34 {dimension_numbers = #tpu.dot_dimension_numbers<[1], [0], [0], [1], [0, 0, 1, 1], [], []>} : vector<24x4xbf16>, vector<4x24xbf16>, vector<24x24xf32> -> vector<24x24xf32>
    %c0_35 = arith.constant 0 : index
    %c0_36 = arith.constant 0 : index
    %69 = vector.load %arg4[%c0_35, %c0_36] : memref<1x24xf32, #tpu.memory_space<vmem>>, vector<1x24xf32>
    %70 = vector.broadcast %69 : vector<1x24xf32> to vector<24x24xf32>
    %71 = arith.addf %68, %70 : vector<24x24xf32>
    %cst_37 = arith.constant 0.000000e+00 : f32
    %cst_38 = arith.constant 6.000000e+00 : f32
    %72 = vector.broadcast %cst_37 : f32 to vector<24x24xf32>
    %73 = arith.maximumf %72, %71 : vector<24x24xf32>
    %74 = vector.broadcast %cst_38 : f32 to vector<24x24xf32>
    %75 = arith.minimumf %74, %73 : vector<24x24xf32>
    %c1_i32_39 = arith.constant 1 : i32
    %76 = arith.cmpi sge, %62, %c1_i32_39 : i32
    %c16_i32_40 = arith.constant 16 : i32
    %77 = arith.cmpi sle, %62, %c16_i32_40 : i32
    %78 = arith.andi %76, %77 : i1
    %79 = vector.broadcast %78 : i1 to vector<24x1xi1>
    %80 = arith.andi %7, %79 : vector<24x1xi1>
    %cst_41 = arith.constant 0.000000e+00 : f32
    %81 = vector.shape_cast %80 : vector<24x1xi1> to vector<24x1xi1>
    %82 = vector.broadcast %81 : vector<24x1xi1> to vector<24x24xi1>
    %83 = vector.broadcast %cst_41 : f32 to vector<24x24xf32>
    %84 = arith.select %82, %75, %83 : vector<24x24xi1>, vector<24x24xf32>
    %85 = arith.index_cast %c2_i32 : i32 to index
    %c0_42 = arith.constant 0 : index
    %c0_43 = arith.constant 0 : index
    %86 = vector.load %arg10[%85, %c0_42, %c0_43] : memref<10x24x24xf32, #tpu.memory_space<vmem>>, vector<1x24x24xf32>
    %87 = vector.shape_cast %86 : vector<1x24x24xf32> to vector<24x24xf32>
    %88 = vector.shape_cast %84 : vector<24x24xf32> to vector<1x24x24xf32>
    tpu.vector_store %arg10[%85, %c0_42, %c0_43], %88 {strides = array<i32>} : memref<10x24x24xf32, #tpu.memory_space<vmem>>, vector<1x24x24xf32>,
    %c3_i32 = arith.constant 3 : i32
    %89 = arith.addi %1, %c3_i32 : i32
    %c0_44 = arith.constant 0 : index
    %90 = arith.index_cast %89 : i32 to index
    %c0_45 = arith.constant 0 : index
    %c0_46 = arith.constant 0 : index
    %91 = vector.load %arg2[%c0_44, %90, %c0_45, %c0_46] : memref<1x18x24x4xf32, #tpu.memory_space<vmem>>, vector<1x1x24x4xf32>
    %92 = vector.shape_cast %91 : vector<1x1x24x4xf32> to vector<24x4xf32>
    %93 = arith.truncf %92 : vector<24x4xf32> to vector<24x4xbf16>
    %c0_47 = arith.constant 0 : index
    %c0_48 = arith.constant 0 : index
    %94 = vector.load %arg3[%c0_47, %c0_48] : memref<4x24xbf16, #tpu.memory_space<vmem>>, vector<4x24xbf16>
    %cst_49 = arith.constant dense<0.000000e+00> : vector<24x24xf32>
    %95 = tpu.matmul %93, %94, %cst_49 {dimension_numbers = #tpu.dot_dimension_numbers<[1], [0], [0], [1], [0, 0, 1, 1], [], []>} : vector<24x4xbf16>, vector<4x24xbf16>, vector<24x24xf32> -> vector<24x24xf32>
    %c0_50 = arith.constant 0 : index
    %c0_51 = arith.constant 0 : index
    %96 = vector.load %arg4[%c0_50, %c0_51] : memref<1x24xf32, #tpu.memory_space<vmem>>, vector<1x24xf32>
    %97 = vector.broadcast %96 : vector<1x24xf32> to vector<24x24xf32>
    %98 = arith.addf %95, %97 : vector<24x24xf32>
    %cst_52 = arith.constant 0.000000e+00 : f32
    %cst_53 = arith.constant 6.000000e+00 : f32
    %99 = vector.broadcast %cst_52 : f32 to vector<24x24xf32>
    %100 = arith.maximumf %99, %98 : vector<24x24xf32>
    %101 = vector.broadcast %cst_53 : f32 to vector<24x24xf32>
    %102 = arith.minimumf %101, %100 : vector<24x24xf32>
    %c1_i32_54 = arith.constant 1 : i32
    %103 = arith.cmpi sge, %89, %c1_i32_54 : i32
    %c16_i32_55 = arith.constant 16 : i32
    %104 = arith.cmpi sle, %89, %c16_i32_55 : i32
    %105 = arith.andi %103, %104 : i1
    %106 = vector.broadcast %105 : i1 to vector<24x1xi1>
    %107 = arith.andi %7, %106 : vector<24x1xi1>
    %cst_56 = arith.constant 0.000000e+00 : f32
    %108 = vector.shape_cast %107 : vector<24x1xi1> to vector<24x1xi1>
    %109 = vector.broadcast %108 : vector<24x1xi1> to vector<24x24xi1>
    %110 = vector.broadcast %cst_56 : f32 to vector<24x24xf32>
    %111 = arith.select %109, %102, %110 : vector<24x24xi1>, vector<24x24xf32>
    %112 = arith.index_cast %c3_i32 : i32 to index
    %c0_57 = arith.constant 0 : index
    %c0_58 = arith.constant 0 : index
    %113 = vector.load %arg10[%112, %c0_57, %c0_58] : memref<10x24x24xf32, #tpu.memory_space<vmem>>, vector<1x24x24xf32>
    %114 = vector.shape_cast %113 : vector<1x24x24xf32> to vector<24x24xf32>
    %115 = vector.shape_cast %111 : vector<24x24xf32> to vector<1x24x24xf32>
    tpu.vector_store %arg10[%112, %c0_57, %c0_58], %115 {strides = array<i32>} : memref<10x24x24xf32, #tpu.memory_space<vmem>>, vector<1x24x24xf32>,
    %c4_i32 = arith.constant 4 : i32
    %116 = arith.addi %1, %c4_i32 : i32
    %c0_59 = arith.constant 0 : index
    %117 = arith.index_cast %116 : i32 to index
    %c0_60 = arith.constant 0 : index
    %c0_61 = arith.constant 0 : index
    %118 = vector.load %arg2[%c0_59, %117, %c0_60, %c0_61] : memref<1x18x24x4xf32, #tpu.memory_space<vmem>>, vector<1x1x24x4xf32>
    %119 = vector.shape_cast %118 : vector<1x1x24x4xf32> to vector<24x4xf32>
    %120 = arith.truncf %119 : vector<24x4xf32> to vector<24x4xbf16>
    %c0_62 = arith.constant 0 : index
    %c0_63 = arith.constant 0 : index
    %121 = vector.load %arg3[%c0_62, %c0_63] : memref<4x24xbf16, #tpu.memory_space<vmem>>, vector<4x24xbf16>
    %cst_64 = arith.constant dense<0.000000e+00> : vector<24x24xf32>
    %122 = tpu.matmul %120, %121, %cst_64 {dimension_numbers = #tpu.dot_dimension_numbers<[1], [0], [0], [1], [0, 0, 1, 1], [], []>} : vector<24x4xbf16>, vector<4x24xbf16>, vector<24x24xf32> -> vector<24x24xf32>
    %c0_65 = arith.constant 0 : index
    %c0_66 = arith.constant 0 : index
    %123 = vector.load %arg4[%c0_65, %c0_66] : memref<1x24xf32, #tpu.memory_space<vmem>>, vector<1x24xf32>
    %124 = vector.broadcast %123 : vector<1x24xf32> to vector<24x24xf32>
    %125 = arith.addf %122, %124 : vector<24x24xf32>
    %cst_67 = arith.constant 0.000000e+00 : f32
    %cst_68 = arith.constant 6.000000e+00 : f32
    %126 = vector.broadcast %cst_67 : f32 to vector<24x24xf32>
    %127 = arith.maximumf %126, %125 : vector<24x24xf32>
    %128 = vector.broadcast %cst_68 : f32 to vector<24x24xf32>
    %129 = arith.minimumf %128, %127 : vector<24x24xf32>
    %c1_i32_69 = arith.constant 1 : i32
    %130 = arith.cmpi sge, %116, %c1_i32_69 : i32
    %c16_i32_70 = arith.constant 16 : i32
    %131 = arith.cmpi sle, %116, %c16_i32_70 : i32
    %132 = arith.andi %130, %131 : i1
    %133 = vector.broadcast %132 : i1 to vector<24x1xi1>
    %134 = arith.andi %7, %133 : vector<24x1xi1>
    %cst_71 = arith.constant 0.000000e+00 : f32
    %135 = vector.shape_cast %134 : vector<24x1xi1> to vector<24x1xi1>
    %136 = vector.broadcast %135 : vector<24x1xi1> to vector<24x24xi1>
    %137 = vector.broadcast %cst_71 : f32 to vector<24x24xf32>
    %138 = arith.select %136, %129, %137 : vector<24x24xi1>, vector<24x24xf32>
    %139 = arith.index_cast %c4_i32 : i32 to index
    %c0_72 = arith.constant 0 : index
    %c0_73 = arith.constant 0 : index
    %140 = vector.load %arg10[%139, %c0_72, %c0_73] : memref<10x24x24xf32, #tpu.memory_space<vmem>>, vector<1x24x24xf32>
    %141 = vector.shape_cast %140 : vector<1x24x24xf32> to vector<24x24xf32>
    %142 = vector.shape_cast %138 : vector<24x24xf32> to vector<1x24x24xf32>
    tpu.vector_store %arg10[%139, %c0_72, %c0_73], %142 {strides = array<i32>} : memref<10x24x24xf32, #tpu.memory_space<vmem>>, vector<1x24x24xf32>,
    %c5_i32 = arith.constant 5 : i32
    %143 = arith.addi %1, %c5_i32 : i32
    %c0_74 = arith.constant 0 : index
    %144 = arith.index_cast %143 : i32 to index
    %c0_75 = arith.constant 0 : index
    %c0_76 = arith.constant 0 : index
    %145 = vector.load %arg2[%c0_74, %144, %c0_75, %c0_76] : memref<1x18x24x4xf32, #tpu.memory_space<vmem>>, vector<1x1x24x4xf32>
    %146 = vector.shape_cast %145 : vector<1x1x24x4xf32> to vector<24x4xf32>
    %147 = arith.truncf %146 : vector<24x4xf32> to vector<24x4xbf16>
    %c0_77 = arith.constant 0 : index
    %c0_78 = arith.constant 0 : index
    %148 = vector.load %arg3[%c0_77, %c0_78] : memref<4x24xbf16, #tpu.memory_space<vmem>>, vector<4x24xbf16>
    %cst_79 = arith.constant dense<0.000000e+00> : vector<24x24xf32>
    %149 = tpu.matmul %147, %148, %cst_79 {dimension_numbers = #tpu.dot_dimension_numbers<[1], [0], [0], [1], [0, 0, 1, 1], [], []>} : vector<24x4xbf16>, vector<4x24xbf16>, vector<24x24xf32> -> vector<24x24xf32>
    %c0_80 = arith.constant 0 : index
    %c0_81 = arith.constant 0 : index
    %150 = vector.load %arg4[%c0_80, %c0_81] : memref<1x24xf32, #tpu.memory_space<vmem>>, vector<1x24xf32>
    %151 = vector.broadcast %150 : vector<1x24xf32> to vector<24x24xf32>
    %152 = arith.addf %149, %151 : vector<24x24xf32>
    %cst_82 = arith.constant 0.000000e+00 : f32
    %cst_83 = arith.constant 6.000000e+00 : f32
    %153 = vector.broadcast %cst_82 : f32 to vector<24x24xf32>
    %154 = arith.maximumf %153, %152 : vector<24x24xf32>
    %155 = vector.broadcast %cst_83 : f32 to vector<24x24xf32>
    %156 = arith.minimumf %155, %154 : vector<24x24xf32>
    %c1_i32_84 = arith.constant 1 : i32
    %157 = arith.cmpi sge, %143, %c1_i32_84 : i32
    %c16_i32_85 = arith.constant 16 : i32
    %158 = arith.cmpi sle, %143, %c16_i32_85 : i32
    %159 = arith.andi %157, %158 : i1
    %160 = vector.broadcast %159 : i1 to vector<24x1xi1>
    %161 = arith.andi %7, %160 : vector<24x1xi1>
    %cst_86 = arith.constant 0.000000e+00 : f32
    %162 = vector.shape_cast %161 : vector<24x1xi1> to vector<24x1xi1>
    %163 = vector.broadcast %162 : vector<24x1xi1> to vector<24x24xi1>
    %164 = vector.broadcast %cst_86 : f32 to vector<24x24xf32>
    %165 = arith.select %163, %156, %164 : vector<24x24xi1>, vector<24x24xf32>
    %166 = arith.index_cast %c5_i32 : i32 to index
    %c0_87 = arith.constant 0 : index
    %c0_88 = arith.constant 0 : index
    %167 = vector.load %arg10[%166, %c0_87, %c0_88] : memref<10x24x24xf32, #tpu.memory_space<vmem>>, vector<1x24x24xf32>
    %168 = vector.shape_cast %167 : vector<1x24x24xf32> to vector<24x24xf32>
    %169 = vector.shape_cast %165 : vector<24x24xf32> to vector<1x24x24xf32>
    tpu.vector_store %arg10[%166, %c0_87, %c0_88], %169 {strides = array<i32>} : memref<10x24x24xf32, #tpu.memory_space<vmem>>, vector<1x24x24xf32>,
    %c6_i32 = arith.constant 6 : i32
    %170 = arith.addi %1, %c6_i32 : i32
    %c0_89 = arith.constant 0 : index
    %171 = arith.index_cast %170 : i32 to index
    %c0_90 = arith.constant 0 : index
    %c0_91 = arith.constant 0 : index
    %172 = vector.load %arg2[%c0_89, %171, %c0_90, %c0_91] : memref<1x18x24x4xf32, #tpu.memory_space<vmem>>, vector<1x1x24x4xf32>
    %173 = vector.shape_cast %172 : vector<1x1x24x4xf32> to vector<24x4xf32>
    %174 = arith.truncf %173 : vector<24x4xf32> to vector<24x4xbf16>
    %c0_92 = arith.constant 0 : index
    %c0_93 = arith.constant 0 : index
    %175 = vector.load %arg3[%c0_92, %c0_93] : memref<4x24xbf16, #tpu.memory_space<vmem>>, vector<4x24xbf16>
    %cst_94 = arith.constant dense<0.000000e+00> : vector<24x24xf32>
    %176 = tpu.matmul %174, %175, %cst_94 {dimension_numbers = #tpu.dot_dimension_numbers<[1], [0], [0], [1], [0, 0, 1, 1], [], []>} : vector<24x4xbf16>, vector<4x24xbf16>, vector<24x24xf32> -> vector<24x24xf32>
    %c0_95 = arith.constant 0 : index
    %c0_96 = arith.constant 0 : index
    %177 = vector.load %arg4[%c0_95, %c0_96] : memref<1x24xf32, #tpu.memory_space<vmem>>, vector<1x24xf32>
    %178 = vector.broadcast %177 : vector<1x24xf32> to vector<24x24xf32>
    %179 = arith.addf %176, %178 : vector<24x24xf32>
    %cst_97 = arith.constant 0.000000e+00 : f32
    %cst_98 = arith.constant 6.000000e+00 : f32
    %180 = vector.broadcast %cst_97 : f32 to vector<24x24xf32>
    %181 = arith.maximumf %180, %179 : vector<24x24xf32>
    %182 = vector.broadcast %cst_98 : f32 to vector<24x24xf32>
    %183 = arith.minimumf %182, %181 : vector<24x24xf32>
    %c1_i32_99 = arith.constant 1 : i32
    %184 = arith.cmpi sge, %170, %c1_i32_99 : i32
    %c16_i32_100 = arith.constant 16 : i32
    %185 = arith.cmpi sle, %170, %c16_i32_100 : i32
    %186 = arith.andi %184, %185 : i1
    %187 = vector.broadcast %186 : i1 to vector<24x1xi1>
    %188 = arith.andi %7, %187 : vector<24x1xi1>
    %cst_101 = arith.constant 0.000000e+00 : f32
    %189 = vector.shape_cast %188 : vector<24x1xi1> to vector<24x1xi1>
    %190 = vector.broadcast %189 : vector<24x1xi1> to vector<24x24xi1>
    %191 = vector.broadcast %cst_101 : f32 to vector<24x24xf32>
    %192 = arith.select %190, %183, %191 : vector<24x24xi1>, vector<24x24xf32>
    %193 = arith.index_cast %c6_i32 : i32 to index
    %c0_102 = arith.constant 0 : index
    %c0_103 = arith.constant 0 : index
    %194 = vector.load %arg10[%193, %c0_102, %c0_103] : memref<10x24x24xf32, #tpu.memory_space<vmem>>, vector<1x24x24xf32>
    %195 = vector.shape_cast %194 : vector<1x24x24xf32> to vector<24x24xf32>
    %196 = vector.shape_cast %192 : vector<24x24xf32> to vector<1x24x24xf32>
    tpu.vector_store %arg10[%193, %c0_102, %c0_103], %196 {strides = array<i32>} : memref<10x24x24xf32, #tpu.memory_space<vmem>>, vector<1x24x24xf32>,
    %c7_i32 = arith.constant 7 : i32
    %197 = arith.addi %1, %c7_i32 : i32
    %c0_104 = arith.constant 0 : index
    %198 = arith.index_cast %197 : i32 to index
    %c0_105 = arith.constant 0 : index
    %c0_106 = arith.constant 0 : index
    %199 = vector.load %arg2[%c0_104, %198, %c0_105, %c0_106] : memref<1x18x24x4xf32, #tpu.memory_space<vmem>>, vector<1x1x24x4xf32>
    %200 = vector.shape_cast %199 : vector<1x1x24x4xf32> to vector<24x4xf32>
    %201 = arith.truncf %200 : vector<24x4xf32> to vector<24x4xbf16>
    %c0_107 = arith.constant 0 : index
    %c0_108 = arith.constant 0 : index
    %202 = vector.load %arg3[%c0_107, %c0_108] : memref<4x24xbf16, #tpu.memory_space<vmem>>, vector<4x24xbf16>
    %cst_109 = arith.constant dense<0.000000e+00> : vector<24x24xf32>
    %203 = tpu.matmul %201, %202, %cst_109 {dimension_numbers = #tpu.dot_dimension_numbers<[1], [0], [0], [1], [0, 0, 1, 1], [], []>} : vector<24x4xbf16>, vector<4x24xbf16>, vector<24x24xf32> -> vector<24x24xf32>
    %c0_110 = arith.constant 0 : index
    %c0_111 = arith.constant 0 : index
    %204 = vector.load %arg4[%c0_110, %c0_111] : memref<1x24xf32, #tpu.memory_space<vmem>>, vector<1x24xf32>
    %205 = vector.broadcast %204 : vector<1x24xf32> to vector<24x24xf32>
    %206 = arith.addf %203, %205 : vector<24x24xf32>
    %cst_112 = arith.constant 0.000000e+00 : f32
    %cst_113 = arith.constant 6.000000e+00 : f32
    %207 = vector.broadcast %cst_112 : f32 to vector<24x24xf32>
    %208 = arith.maximumf %207, %206 : vector<24x24xf32>
    %209 = vector.broadcast %cst_113 : f32 to vector<24x24xf32>
    %210 = arith.minimumf %209, %208 : vector<24x24xf32>
    %c1_i32_114 = arith.constant 1 : i32
    %211 = arith.cmpi sge, %197, %c1_i32_114 : i32
    %c16_i32_115 = arith.constant 16 : i32
    %212 = arith.cmpi sle, %197, %c16_i32_115 : i32
    %213 = arith.andi %211, %212 : i1
    %214 = vector.broadcast %213 : i1 to vector<24x1xi1>
    %215 = arith.andi %7, %214 : vector<24x1xi1>
    %cst_116 = arith.constant 0.000000e+00 : f32
    %216 = vector.shape_cast %215 : vector<24x1xi1> to vector<24x1xi1>
    %217 = vector.broadcast %216 : vector<24x1xi1> to vector<24x24xi1>
    %218 = vector.broadcast %cst_116 : f32 to vector<24x24xf32>
    %219 = arith.select %217, %210, %218 : vector<24x24xi1>, vector<24x24xf32>
    %220 = arith.index_cast %c7_i32 : i32 to index
    %c0_117 = arith.constant 0 : index
    %c0_118 = arith.constant 0 : index
    %221 = vector.load %arg10[%220, %c0_117, %c0_118] : memref<10x24x24xf32, #tpu.memory_space<vmem>>, vector<1x24x24xf32>
    %222 = vector.shape_cast %221 : vector<1x24x24xf32> to vector<24x24xf32>
    %223 = vector.shape_cast %219 : vector<24x24xf32> to vector<1x24x24xf32>
    tpu.vector_store %arg10[%220, %c0_117, %c0_118], %223 {strides = array<i32>} : memref<10x24x24xf32, #tpu.memory_space<vmem>>, vector<1x24x24xf32>,
    %c8_i32_119 = arith.constant 8 : i32
    %224 = arith.addi %1, %c8_i32_119 : i32
    %c0_120 = arith.constant 0 : index
    %225 = arith.index_cast %224 : i32 to index
    %c0_121 = arith.constant 0 : index
    %c0_122 = arith.constant 0 : index
    %226 = vector.load %arg2[%c0_120, %225, %c0_121, %c0_122] : memref<1x18x24x4xf32, #tpu.memory_space<vmem>>, vector<1x1x24x4xf32>
    %227 = vector.shape_cast %226 : vector<1x1x24x4xf32> to vector<24x4xf32>
    %228 = arith.truncf %227 : vector<24x4xf32> to vector<24x4xbf16>
    %c0_123 = arith.constant 0 : index
    %c0_124 = arith.constant 0 : index
    %229 = vector.load %arg3[%c0_123, %c0_124] : memref<4x24xbf16, #tpu.memory_space<vmem>>, vector<4x24xbf16>
    %cst_125 = arith.constant dense<0.000000e+00> : vector<24x24xf32>
    %230 = tpu.matmul %228, %229, %cst_125 {dimension_numbers = #tpu.dot_dimension_numbers<[1], [0], [0], [1], [0, 0, 1, 1], [], []>} : vector<24x4xbf16>, vector<4x24xbf16>, vector<24x24xf32> -> vector<24x24xf32>
    %c0_126 = arith.constant 0 : index
    %c0_127 = arith.constant 0 : index
    %231 = vector.load %arg4[%c0_126, %c0_127] : memref<1x24xf32, #tpu.memory_space<vmem>>, vector<1x24xf32>
    %232 = vector.broadcast %231 : vector<1x24xf32> to vector<24x24xf32>
    %233 = arith.addf %230, %232 : vector<24x24xf32>
    %cst_128 = arith.constant 0.000000e+00 : f32
    %cst_129 = arith.constant 6.000000e+00 : f32
    %234 = vector.broadcast %cst_128 : f32 to vector<24x24xf32>
    %235 = arith.maximumf %234, %233 : vector<24x24xf32>
    %236 = vector.broadcast %cst_129 : f32 to vector<24x24xf32>
    %237 = arith.minimumf %236, %235 : vector<24x24xf32>
    %c1_i32_130 = arith.constant 1 : i32
    %238 = arith.cmpi sge, %224, %c1_i32_130 : i32
    %c16_i32_131 = arith.constant 16 : i32
    %239 = arith.cmpi sle, %224, %c16_i32_131 : i32
    %240 = arith.andi %238, %239 : i1
    %241 = vector.broadcast %240 : i1 to vector<24x1xi1>
    %242 = arith.andi %7, %241 : vector<24x1xi1>
    %cst_132 = arith.constant 0.000000e+00 : f32
    %243 = vector.shape_cast %242 : vector<24x1xi1> to vector<24x1xi1>
    %244 = vector.broadcast %243 : vector<24x1xi1> to vector<24x24xi1>
    %245 = vector.broadcast %cst_132 : f32 to vector<24x24xf32>
    %246 = arith.select %244, %237, %245 : vector<24x24xi1>, vector<24x24xf32>
    %247 = arith.index_cast %c8_i32_119 : i32 to index
    %c0_133 = arith.constant 0 : index
    %c0_134 = arith.constant 0 : index
    %248 = vector.load %arg10[%247, %c0_133, %c0_134] : memref<10x24x24xf32, #tpu.memory_space<vmem>>, vector<1x24x24xf32>
    %249 = vector.shape_cast %248 : vector<1x24x24xf32> to vector<24x24xf32>
    %250 = vector.shape_cast %246 : vector<24x24xf32> to vector<1x24x24xf32>
    tpu.vector_store %arg10[%247, %c0_133, %c0_134], %250 {strides = array<i32>} : memref<10x24x24xf32, #tpu.memory_space<vmem>>, vector<1x24x24xf32>,
    %c9_i32 = arith.constant 9 : i32
    %251 = arith.addi %1, %c9_i32 : i32
    %c0_135 = arith.constant 0 : index
    %252 = arith.index_cast %251 : i32 to index
    %c0_136 = arith.constant 0 : index
    %c0_137 = arith.constant 0 : index
    %253 = vector.load %arg2[%c0_135, %252, %c0_136, %c0_137] : memref<1x18x24x4xf32, #tpu.memory_space<vmem>>, vector<1x1x24x4xf32>
    %254 = vector.shape_cast %253 : vector<1x1x24x4xf32> to vector<24x4xf32>
    %255 = arith.truncf %254 : vector<24x4xf32> to vector<24x4xbf16>
    %c0_138 = arith.constant 0 : index
    %c0_139 = arith.constant 0 : index
    %256 = vector.load %arg3[%c0_138, %c0_139] : memref<4x24xbf16, #tpu.memory_space<vmem>>, vector<4x24xbf16>
    %cst_140 = arith.constant dense<0.000000e+00> : vector<24x24xf32>
    %257 = tpu.matmul %255, %256, %cst_140 {dimension_numbers = #tpu.dot_dimension_numbers<[1], [0], [0], [1], [0, 0, 1, 1], [], []>} : vector<24x4xbf16>, vector<4x24xbf16>, vector<24x24xf32> -> vector<24x24xf32>
    %c0_141 = arith.constant 0 : index
    %c0_142 = arith.constant 0 : index
    %258 = vector.load %arg4[%c0_141, %c0_142] : memref<1x24xf32, #tpu.memory_space<vmem>>, vector<1x24xf32>
    %259 = vector.broadcast %258 : vector<1x24xf32> to vector<24x24xf32>
    %260 = arith.addf %257, %259 : vector<24x24xf32>
    %cst_143 = arith.constant 0.000000e+00 : f32
    %cst_144 = arith.constant 6.000000e+00 : f32
    %261 = vector.broadcast %cst_143 : f32 to vector<24x24xf32>
    %262 = arith.maximumf %261, %260 : vector<24x24xf32>
    %263 = vector.broadcast %cst_144 : f32 to vector<24x24xf32>
    %264 = arith.minimumf %263, %262 : vector<24x24xf32>
    %c1_i32_145 = arith.constant 1 : i32
    %265 = arith.cmpi sge, %251, %c1_i32_145 : i32
    %c16_i32_146 = arith.constant 16 : i32
    %266 = arith.cmpi sle, %251, %c16_i32_146 : i32
    %267 = arith.andi %265, %266 : i1
    %268 = vector.broadcast %267 : i1 to vector<24x1xi1>
    %269 = arith.andi %7, %268 : vector<24x1xi1>
    %cst_147 = arith.constant 0.000000e+00 : f32
    %270 = vector.shape_cast %269 : vector<24x1xi1> to vector<24x1xi1>
    %271 = vector.broadcast %270 : vector<24x1xi1> to vector<24x24xi1>
    %272 = vector.broadcast %cst_147 : f32 to vector<24x24xf32>
    %273 = arith.select %271, %264, %272 : vector<24x24xi1>, vector<24x24xf32>
    %274 = arith.index_cast %c9_i32 : i32 to index
    %c0_148 = arith.constant 0 : index
    %c0_149 = arith.constant 0 : index
    %275 = vector.load %arg10[%274, %c0_148, %c0_149] : memref<10x24x24xf32, #tpu.memory_space<vmem>>, vector<1x24x24xf32>
    %276 = vector.shape_cast %275 : vector<1x24x24xf32> to vector<24x24xf32>
    %277 = vector.shape_cast %273 : vector<24x24xf32> to vector<1x24x24xf32>
    tpu.vector_store %arg10[%274, %c0_148, %c0_149], %277 {strides = array<i32>} : memref<10x24x24xf32, #tpu.memory_space<vmem>>, vector<1x24x24xf32>,
    %c10_i32 = arith.constant 10 : i32
    %c0_i32_150 = arith.constant 0 : i32
    %cst_151 = arith.constant 0.000000e+00 : f32
    %278 = vector.broadcast %cst_151 : f32 to vector<16x24xf32>
    %c1_i32_152 = arith.constant 1 : i32
    %279 = arith.muli %c0_i32_150, %c1_i32_152 : i32
    %c0_i32_153 = arith.constant 0 : i32
    %280 = arith.addi %279, %c0_i32_153 : i32
    %c0_154 = arith.constant 0 : index
    %c0_155 = arith.constant 0 : index
    %281 = vector.load %arg5[%c0_154, %c0_155] : memref<9x24xf32, #tpu.memory_space<vmem>>, vector<1x24xf32>
    %282 = arith.index_cast %280 : i32 to index
    %c0_156 = arith.constant 0 : index
    %c0_157 = arith.constant 0 : index
    %283 = vector.load %arg10[%282, %c0_156, %c0_157] : memref<10x24x24xf32, #tpu.memory_space<vmem>>, vector<1x16x24xf32>
    %284 = vector.shape_cast %283 : vector<1x16x24xf32> to vector<16x24xf32>
    %285 = vector.broadcast %281 : vector<1x24xf32> to vector<16x24xf32>
    %286 = arith.mulf %284, %285 : vector<16x24xf32>
    %287 = arith.addf %278, %286 : vector<16x24xf32>
    %c1 = arith.constant 1 : index
    %c0_158 = arith.constant 0 : index
    %288 = vector.load %arg5[%c1, %c0_158] : memref<9x24xf32, #tpu.memory_space<vmem>>, vector<1x24xf32>
    %289 = arith.index_cast %280 : i32 to index
    %c1_159 = arith.constant 1 : index
    %c0_160 = arith.constant 0 : index
    %290 = vector.load %arg10[%289, %c1_159, %c0_160] : memref<10x24x24xf32, #tpu.memory_space<vmem>>, vector<1x16x24xf32>
    %291 = vector.shape_cast %290 : vector<1x16x24xf32> to vector<16x24xf32>
    %292 = vector.broadcast %288 : vector<1x24xf32> to vector<16x24xf32>
    %293 = arith.mulf %291, %292 : vector<16x24xf32>
    %294 = arith.addf %287, %293 : vector<16x24xf32>
    %c2 = arith.constant 2 : index
    %c0_161 = arith.constant 0 : index
    %295 = vector.load %arg5[%c2, %c0_161] : memref<9x24xf32, #tpu.memory_space<vmem>>, vector<1x24xf32>
    %296 = arith.index_cast %280 : i32 to index
    %c2_162 = arith.constant 2 : index
    %c0_163 = arith.constant 0 : index
    %297 = vector.load %arg10[%296, %c2_162, %c0_163] : memref<10x24x24xf32, #tpu.memory_space<vmem>>, vector<1x16x24xf32>
    %298 = vector.shape_cast %297 : vector<1x16x24xf32> to vector<16x24xf32>
    %299 = vector.broadcast %295 : vector<1x24xf32> to vector<16x24xf32>
    %300 = arith.mulf %298, %299 : vector<16x24xf32>
    %301 = arith.addf %294, %300 : vector<16x24xf32>
    %c1_i32_164 = arith.constant 1 : i32
    %302 = arith.muli %c0_i32_150, %c1_i32_164 : i32
    %c1_i32_165 = arith.constant 1 : i32
    %303 = arith.addi %302, %c1_i32_165 : i32
    %c3 = arith.constant 3 : index
    %c0_166 = arith.constant 0 : index
    %304 = vector.load %arg5[%c3, %c0_166] : memref<9x24xf32, #tpu.memory_space<vmem>>, vector<1x24xf32>
    %305 = arith.index_cast %303 : i32 to index
    %c0_167 = arith.constant 0 : index
    %c0_168 = arith.constant 0 : index
    %306 = vector.load %arg10[%305, %c0_167, %c0_168] : memref<10x24x24xf32, #tpu.memory_space<vmem>>, vector<1x16x24xf32>
    %307 = vector.shape_cast %306 : vector<1x16x24xf32> to vector<16x24xf32>
    %308 = vector.broadcast %304 : vector<1x24xf32> to vector<16x24xf32>
    %309 = arith.mulf %307, %308 : vector<16x24xf32>
    %310 = arith.addf %301, %309 : vector<16x24xf32>
    %c4 = arith.constant 4 : index
    %c0_169 = arith.constant 0 : index
    %311 = vector.load %arg5[%c4, %c0_169] : memref<9x24xf32, #tpu.memory_space<vmem>>, vector<1x24xf32>
    %312 = arith.index_cast %303 : i32 to index
    %c1_170 = arith.constant 1 : index
    %c0_171 = arith.constant 0 : index
    %313 = vector.load %arg10[%312, %c1_170, %c0_171] : memref<10x24x24xf32, #tpu.memory_space<vmem>>, vector<1x16x24xf32>
    %314 = vector.shape_cast %313 : vector<1x16x24xf32> to vector<16x24xf32>
    %315 = vector.broadcast %311 : vector<1x24xf32> to vector<16x24xf32>
    %316 = arith.mulf %314, %315 : vector<16x24xf32>
    %317 = arith.addf %310, %316 : vector<16x24xf32>
    %c5 = arith.constant 5 : index
    %c0_172 = arith.constant 0 : index
    %318 = vector.load %arg5[%c5, %c0_172] : memref<9x24xf32, #tpu.memory_space<vmem>>, vector<1x24xf32>
    %319 = arith.index_cast %303 : i32 to index
    %c2_173 = arith.constant 2 : index
    %c0_174 = arith.constant 0 : index
    %320 = vector.load %arg10[%319, %c2_173, %c0_174] : memref<10x24x24xf32, #tpu.memory_space<vmem>>, vector<1x16x24xf32>
    %321 = vector.shape_cast %320 : vector<1x16x24xf32> to vector<16x24xf32>
    %322 = vector.broadcast %318 : vector<1x24xf32> to vector<16x24xf32>
    %323 = arith.mulf %321, %322 : vector<16x24xf32>
    %324 = arith.addf %317, %323 : vector<16x24xf32>
    %c1_i32_175 = arith.constant 1 : i32
    %325 = arith.muli %c0_i32_150, %c1_i32_175 : i32
    %c2_i32_176 = arith.constant 2 : i32
    %326 = arith.addi %325, %c2_i32_176 : i32
    %c6 = arith.constant 6 : index
    %c0_177 = arith.constant 0 : index
    %327 = vector.load %arg5[%c6, %c0_177] : memref<9x24xf32, #tpu.memory_space<vmem>>, vector<1x24xf32>
    %328 = arith.index_cast %326 : i32 to index
    %c0_178 = arith.constant 0 : index
    %c0_179 = arith.constant 0 : index
    %329 = vector.load %arg10[%328, %c0_178, %c0_179] : memref<10x24x24xf32, #tpu.memory_space<vmem>>, vector<1x16x24xf32>
    %330 = vector.shape_cast %329 : vector<1x16x24xf32> to vector<16x24xf32>
    %331 = vector.broadcast %327 : vector<1x24xf32> to vector<16x24xf32>
    %332 = arith.mulf %330, %331 : vector<16x24xf32>
    %333 = arith.addf %324, %332 : vector<16x24xf32>
    %c7 = arith.constant 7 : index
    %c0_180 = arith.constant 0 : index
    %334 = vector.load %arg5[%c7, %c0_180] : memref<9x24xf32, #tpu.memory_space<vmem>>, vector<1x24xf32>
    %335 = arith.index_cast %326 : i32 to index
    %c1_181 = arith.constant 1 : index
    %c0_182 = arith.constant 0 : index
    %336 = vector.load %arg10[%335, %c1_181, %c0_182] : memref<10x24x24xf32, #tpu.memory_space<vmem>>, vector<1x16x24xf32>
    %337 = vector.shape_cast %336 : vector<1x16x24xf32> to vector<16x24xf32>
    %338 = vector.broadcast %334 : vector<1x24xf32> to vector<16x24xf32>
    %339 = arith.mulf %337, %338 : vector<16x24xf32>
    %340 = arith.addf %333, %339 : vector<16x24xf32>
    %c8 = arith.constant 8 : index
    %c0_183 = arith.constant 0 : index
    %341 = vector.load %arg5[%c8, %c0_183] : memref<9x24xf32, #tpu.memory_space<vmem>>, vector<1x24xf32>
    %342 = arith.index_cast %326 : i32 to index
    %c2_184 = arith.constant 2 : index
    %c0_185 = arith.constant 0 : index
    %343 = vector.load %arg10[%342, %c2_184, %c0_185] : memref<10x24x24xf32, #tpu.memory_space<vmem>>, vector<1x16x24xf32>
    %344 = vector.shape_cast %343 : vector<1x16x24xf32> to vector<16x24xf32>
    %345 = vector.broadcast %341 : vector<1x24xf32> to vector<16x24xf32>
    %346 = arith.mulf %344, %345 : vector<16x24xf32>
    %347 = arith.addf %340, %346 : vector<16x24xf32>
    %c0_186 = arith.constant 0 : index
    %c0_187 = arith.constant 0 : index
    %348 = vector.load %arg6[%c0_186, %c0_187] : memref<1x24xf32, #tpu.memory_space<vmem>>, vector<1x24xf32>
    %349 = vector.broadcast %348 : vector<1x24xf32> to vector<16x24xf32>
    %350 = arith.addf %347, %349 : vector<16x24xf32>
    %cst_188 = arith.constant 0.000000e+00 : f32
    %cst_189 = arith.constant 6.000000e+00 : f32
    %351 = vector.broadcast %cst_188 : f32 to vector<16x24xf32>
    %352 = arith.maximumf %351, %350 : vector<16x24xf32>
    %353 = vector.broadcast %cst_189 : f32 to vector<16x24xf32>
    %354 = arith.minimumf %353, %352 : vector<16x24xf32>
    %355 = arith.truncf %354 : vector<16x24xf32> to vector<16x24xbf16>
    %c0_190 = arith.constant 0 : index
    %c0_191 = arith.constant 0 : index
    %356 = vector.load %arg7[%c0_190, %c0_191] : memref<24x128xbf16, #tpu.memory_space<vmem>>, vector<24x128xbf16>
    %cst_192 = arith.constant dense<0.000000e+00> : vector<16x128xf32>
    %357 = tpu.matmul %355, %356, %cst_192 {dimension_numbers = #tpu.dot_dimension_numbers<[1], [0], [0], [1], [0, 0, 1, 1], [], []>} : vector<16x24xbf16>, vector<24x128xbf16>, vector<16x128xf32> -> vector<16x128xf32>
    %c0_193 = arith.constant 0 : index
    %c0_194 = arith.constant 0 : index
    %358 = vector.load %arg8[%c0_193, %c0_194] : memref<1x128xf32, #tpu.memory_space<vmem>>, vector<1x128xf32>
    %359 = vector.broadcast %358 : vector<1x128xf32> to vector<16x128xf32>
    %360 = arith.addf %357, %359 : vector<16x128xf32>
    %361 = arith.addi %1, %c0_i32_150 : i32
    %c1_i32_195 = arith.constant 1 : i32
    %362 = arith.addi %361, %c1_i32_195 : i32
    %c0_196 = arith.constant 0 : index
    %363 = arith.index_cast %362 : i32 to index
    %c1_197 = arith.constant 1 : index
    %c0_198 = arith.constant 0 : index
    %364 = vector.load %arg2[%c0_196, %363, %c1_197, %c0_198] : memref<1x18x24x4xf32, #tpu.memory_space<vmem>>, vector<1x1x16x4xf32>
    %365 = vector.shape_cast %364 : vector<1x1x16x4xf32> to vector<16x4xf32>
    %cst_199 = arith.constant 0.000000e+00 : f32
    %366 = vector.broadcast %cst_199 : f32 to vector<16x124xf32>
    %367 = tpu.concatenate %365, %366 in 1 : vector<16x4xf32>, vector<16x124xf32> -> vector<16x128xf32>
    %368 = arith.addf %360, %367 : vector<16x128xf32>
    %c0_200 = arith.constant 0 : index
    %369 = arith.index_cast %c0_i32_150 : i32 to index
    %c0_201 = arith.constant 0 : index
    %c0_202 = arith.constant 0 : index
    %370 = vector.load %arg9[%c0_200, %369, %c0_201, %c0_202] : memref<1x8x16x128xf32, #tpu.memory_space<vmem>>, vector<1x1x16x128xf32>
    %371 = vector.shape_cast %370 : vector<1x1x16x128xf32> to vector<16x128xf32>
    %372 = vector.shape_cast %368 : vector<16x128xf32> to vector<1x1x16x128xf32>
    tpu.vector_store %arg9[%c0_200, %369, %c0_201, %c0_202], %372 {strides = array<i32>} : memref<1x8x16x128xf32, #tpu.memory_space<vmem>>, vector<1x1x16x128xf32>,
    %c1_i32_203 = arith.constant 1 : i32
    %cst_204 = arith.constant 0.000000e+00 : f32
    %373 = vector.broadcast %cst_204 : f32 to vector<16x24xf32>
    %c1_i32_205 = arith.constant 1 : i32
    %374 = arith.muli %c1_i32_203, %c1_i32_205 : i32
    %c0_i32_206 = arith.constant 0 : i32
    %375 = arith.addi %374, %c0_i32_206 : i32
    %c0_207 = arith.constant 0 : index
    %c0_208 = arith.constant 0 : index
    %376 = vector.load %arg5[%c0_207, %c0_208] : memref<9x24xf32, #tpu.memory_space<vmem>>, vector<1x24xf32>
    %377 = arith.index_cast %375 : i32 to index
    %c0_209 = arith.constant 0 : index
    %c0_210 = arith.constant 0 : index
    %378 = vector.load %arg10[%377, %c0_209, %c0_210] : memref<10x24x24xf32, #tpu.memory_space<vmem>>, vector<1x16x24xf32>
    %379 = vector.shape_cast %378 : vector<1x16x24xf32> to vector<16x24xf32>
    %380 = vector.broadcast %376 : vector<1x24xf32> to vector<16x24xf32>
    %381 = arith.mulf %379, %380 : vector<16x24xf32>
    %382 = arith.addf %373, %381 : vector<16x24xf32>
    %c1_211 = arith.constant 1 : index
    %c0_212 = arith.constant 0 : index
    %383 = vector.load %arg5[%c1_211, %c0_212] : memref<9x24xf32, #tpu.memory_space<vmem>>, vector<1x24xf32>
    %384 = arith.index_cast %375 : i32 to index
    %c1_213 = arith.constant 1 : index
    %c0_214 = arith.constant 0 : index
    %385 = vector.load %arg10[%384, %c1_213, %c0_214] : memref<10x24x24xf32, #tpu.memory_space<vmem>>, vector<1x16x24xf32>
    %386 = vector.shape_cast %385 : vector<1x16x24xf32> to vector<16x24xf32>
    %387 = vector.broadcast %383 : vector<1x24xf32> to vector<16x24xf32>
    %388 = arith.mulf %386, %387 : vector<16x24xf32>
    %389 = arith.addf %382, %388 : vector<16x24xf32>
    %c2_215 = arith.constant 2 : index
    %c0_216 = arith.constant 0 : index
    %390 = vector.load %arg5[%c2_215, %c0_216] : memref<9x24xf32, #tpu.memory_space<vmem>>, vector<1x24xf32>
    %391 = arith.index_cast %375 : i32 to index
    %c2_217 = arith.constant 2 : index
    %c0_218 = arith.constant 0 : index
    %392 = vector.load %arg10[%391, %c2_217, %c0_218] : memref<10x24x24xf32, #tpu.memory_space<vmem>>, vector<1x16x24xf32>
    %393 = vector.shape_cast %392 : vector<1x16x24xf32> to vector<16x24xf32>
    %394 = vector.broadcast %390 : vector<1x24xf32> to vector<16x24xf32>
    %395 = arith.mulf %393, %394 : vector<16x24xf32>
    %396 = arith.addf %389, %395 : vector<16x24xf32>
    %c1_i32_219 = arith.constant 1 : i32
    %397 = arith.muli %c1_i32_203, %c1_i32_219 : i32
    %c1_i32_220 = arith.constant 1 : i32
    %398 = arith.addi %397, %c1_i32_220 : i32
    %c3_221 = arith.constant 3 : index
    %c0_222 = arith.constant 0 : index
    %399 = vector.load %arg5[%c3_221, %c0_222] : memref<9x24xf32, #tpu.memory_space<vmem>>, vector<1x24xf32>
    %400 = arith.index_cast %398 : i32 to index
    %c0_223 = arith.constant 0 : index
    %c0_224 = arith.constant 0 : index
    %401 = vector.load %arg10[%400, %c0_223, %c0_224] : memref<10x24x24xf32, #tpu.memory_space<vmem>>, vector<1x16x24xf32>
    %402 = vector.shape_cast %401 : vector<1x16x24xf32> to vector<16x24xf32>
    %403 = vector.broadcast %399 : vector<1x24xf32> to vector<16x24xf32>
    %404 = arith.mulf %402, %403 : vector<16x24xf32>
    %405 = arith.addf %396, %404 : vector<16x24xf32>
    %c4_225 = arith.constant 4 : index
    %c0_226 = arith.constant 0 : index
    %406 = vector.load %arg5[%c4_225, %c0_226] : memref<9x24xf32, #tpu.memory_space<vmem>>, vector<1x24xf32>
    %407 = arith.index_cast %398 : i32 to index
    %c1_227 = arith.constant 1 : index
    %c0_228 = arith.constant 0 : index
    %408 = vector.load %arg10[%407, %c1_227, %c0_228] : memref<10x24x24xf32, #tpu.memory_space<vmem>>, vector<1x16x24xf32>
    %409 = vector.shape_cast %408 : vector<1x16x24xf32> to vector<16x24xf32>
    %410 = vector.broadcast %406 : vector<1x24xf32> to vector<16x24xf32>
    %411 = arith.mulf %409, %410 : vector<16x24xf32>
    %412 = arith.addf %405, %411 : vector<16x24xf32>
    %c5_229 = arith.constant 5 : index
    %c0_230 = arith.constant 0 : index
    %413 = vector.load %arg5[%c5_229, %c0_230] : memref<9x24xf32, #tpu.memory_space<vmem>>, vector<1x24xf32>
    %414 = arith.index_cast %398 : i32 to index
    %c2_231 = arith.constant 2 : index
    %c0_232 = arith.constant 0 : index
    %415 = vector.load %arg10[%414, %c2_231, %c0_232] : memref<10x24x24xf32, #tpu.memory_space<vmem>>, vector<1x16x24xf32>
    %416 = vector.shape_cast %415 : vector<1x16x24xf32> to vector<16x24xf32>
    %417 = vector.broadcast %413 : vector<1x24xf32> to vector<16x24xf32>
    %418 = arith.mulf %416, %417 : vector<16x24xf32>
    %419 = arith.addf %412, %418 : vector<16x24xf32>
    %c1_i32_233 = arith.constant 1 : i32
    %420 = arith.muli %c1_i32_203, %c1_i32_233 : i32
    %c2_i32_234 = arith.constant 2 : i32
    %421 = arith.addi %420, %c2_i32_234 : i32
    %c6_235 = arith.constant 6 : index
    %c0_236 = arith.constant 0 : index
    %422 = vector.load %arg5[%c6_235, %c0_236] : memref<9x24xf32, #tpu.memory_space<vmem>>, vector<1x24xf32>
    %423 = arith.index_cast %421 : i32 to index
    %c0_237 = arith.constant 0 : index
    %c0_238 = arith.constant 0 : index
    %424 = vector.load %arg10[%423, %c0_237, %c0_238] : memref<10x24x24xf32, #tpu.memory_space<vmem>>, vector<1x16x24xf32>
    %425 = vector.shape_cast %424 : vector<1x16x24xf32> to vector<16x24xf32>
    %426 = vector.broadcast %422 : vector<1x24xf32> to vector<16x24xf32>
    %427 = arith.mulf %425, %426 : vector<16x24xf32>
    %428 = arith.addf %419, %427 : vector<16x24xf32>
    %c7_239 = arith.constant 7 : index
    %c0_240 = arith.constant 0 : index
    %429 = vector.load %arg5[%c7_239, %c0_240] : memref<9x24xf32, #tpu.memory_space<vmem>>, vector<1x24xf32>
    %430 = arith.index_cast %421 : i32 to index
    %c1_241 = arith.constant 1 : index
    %c0_242 = arith.constant 0 : index
    %431 = vector.load %arg10[%430, %c1_241, %c0_242] : memref<10x24x24xf32, #tpu.memory_space<vmem>>, vector<1x16x24xf32>
    %432 = vector.shape_cast %431 : vector<1x16x24xf32> to vector<16x24xf32>
    %433 = vector.broadcast %429 : vector<1x24xf32> to vector<16x24xf32>
    %434 = arith.mulf %432, %433 : vector<16x24xf32>
    %435 = arith.addf %428, %434 : vector<16x24xf32>
    %c8_243 = arith.constant 8 : index
    %c0_244 = arith.constant 0 : index
    %436 = vector.load %arg5[%c8_243, %c0_244] : memref<9x24xf32, #tpu.memory_space<vmem>>, vector<1x24xf32>
    %437 = arith.index_cast %421 : i32 to index
    %c2_245 = arith.constant 2 : index
    %c0_246 = arith.constant 0 : index
    %438 = vector.load %arg10[%437, %c2_245, %c0_246] : memref<10x24x24xf32, #tpu.memory_space<vmem>>, vector<1x16x24xf32>
    %439 = vector.shape_cast %438 : vector<1x16x24xf32> to vector<16x24xf32>
    %440 = vector.broadcast %436 : vector<1x24xf32> to vector<16x24xf32>
    %441 = arith.mulf %439, %440 : vector<16x24xf32>
    %442 = arith.addf %435, %441 : vector<16x24xf32>
    %c0_247 = arith.constant 0 : index
    %c0_248 = arith.constant 0 : index
    %443 = vector.load %arg6[%c0_247, %c0_248] : memref<1x24xf32, #tpu.memory_space<vmem>>, vector<1x24xf32>
    %444 = vector.broadcast %443 : vector<1x24xf32> to vector<16x24xf32>
    %445 = arith.addf %442, %444 : vector<16x24xf32>
    %cst_249 = arith.constant 0.000000e+00 : f32
    %cst_250 = arith.constant 6.000000e+00 : f32
    %446 = vector.broadcast %cst_249 : f32 to vector<16x24xf32>
    %447 = arith.maximumf %446, %445 : vector<16x24xf32>
    %448 = vector.broadcast %cst_250 : f32 to vector<16x24xf32>
    %449 = arith.minimumf %448, %447 : vector<16x24xf32>
    %450 = arith.truncf %449 : vector<16x24xf32> to vector<16x24xbf16>
    %c0_251 = arith.constant 0 : index
    %c0_252 = arith.constant 0 : index
    %451 = vector.load %arg7[%c0_251, %c0_252] : memref<24x128xbf16, #tpu.memory_space<vmem>>, vector<24x128xbf16>
    %cst_253 = arith.constant dense<0.000000e+00> : vector<16x128xf32>
    %452 = tpu.matmul %450, %451, %cst_253 {dimension_numbers = #tpu.dot_dimension_numbers<[1], [0], [0], [1], [0, 0, 1, 1], [], []>} : vector<16x24xbf16>, vector<24x128xbf16>, vector<16x128xf32> -> vector<16x128xf32>
    %c0_254 = arith.constant 0 : index
    %c0_255 = arith.constant 0 : index
    %453 = vector.load %arg8[%c0_254, %c0_255] : memref<1x128xf32, #tpu.memory_space<vmem>>, vector<1x128xf32>
    %454 = vector.broadcast %453 : vector<1x128xf32> to vector<16x128xf32>
    %455 = arith.addf %452, %454 : vector<16x128xf32>
    %456 = arith.addi %1, %c1_i32_203 : i32
    %c1_i32_256 = arith.constant 1 : i32
    %457 = arith.addi %456, %c1_i32_256 : i32
    %c0_257 = arith.constant 0 : index
    %458 = arith.index_cast %457 : i32 to index
    %c1_258 = arith.constant 1 : index
    %c0_259 = arith.constant 0 : index
    %459 = vector.load %arg2[%c0_257, %458, %c1_258, %c0_259] : memref<1x18x24x4xf32, #tpu.memory_space<vmem>>, vector<1x1x16x4xf32>
    %460 = vector.shape_cast %459 : vector<1x1x16x4xf32> to vector<16x4xf32>
    %cst_260 = arith.constant 0.000000e+00 : f32
    %461 = vector.broadcast %cst_260 : f32 to vector<16x124xf32>
    %462 = tpu.concatenate %460, %461 in 1 : vector<16x4xf32>, vector<16x124xf32> -> vector<16x128xf32>
    %463 = arith.addf %455, %462 : vector<16x128xf32>
    %c0_261 = arith.constant 0 : index
    %464 = arith.index_cast %c1_i32_203 : i32 to index
    %c0_262 = arith.constant 0 : index
    %c0_263 = arith.constant 0 : index
    %465 = vector.load %arg9[%c0_261, %464, %c0_262, %c0_263] : memref<1x8x16x128xf32, #tpu.memory_space<vmem>>, vector<1x1x16x128xf32>
    %466 = vector.shape_cast %465 : vector<1x1x16x128xf32> to vector<16x128xf32>
    %467 = vector.shape_cast %463 : vector<16x128xf32> to vector<1x1x16x128xf32>
    tpu.vector_store %arg9[%c0_261, %464, %c0_262, %c0_263], %467 {strides = array<i32>} : memref<1x8x16x128xf32, #tpu.memory_space<vmem>>, vector<1x1x16x128xf32>,
    %c2_i32_264 = arith.constant 2 : i32
    %cst_265 = arith.constant 0.000000e+00 : f32
    %468 = vector.broadcast %cst_265 : f32 to vector<16x24xf32>
    %c1_i32_266 = arith.constant 1 : i32
    %469 = arith.muli %c2_i32_264, %c1_i32_266 : i32
    %c0_i32_267 = arith.constant 0 : i32
    %470 = arith.addi %469, %c0_i32_267 : i32
    %c0_268 = arith.constant 0 : index
    %c0_269 = arith.constant 0 : index
    %471 = vector.load %arg5[%c0_268, %c0_269] : memref<9x24xf32, #tpu.memory_space<vmem>>, vector<1x24xf32>
    %472 = arith.index_cast %470 : i32 to index
    %c0_270 = arith.constant 0 : index
    %c0_271 = arith.constant 0 : index
    %473 = vector.load %arg10[%472, %c0_270, %c0_271] : memref<10x24x24xf32, #tpu.memory_space<vmem>>, vector<1x16x24xf32>
    %474 = vector.shape_cast %473 : vector<1x16x24xf32> to vector<16x24xf32>
    %475 = vector.broadcast %471 : vector<1x24xf32> to vector<16x24xf32>
    %476 = arith.mulf %474, %475 : vector<16x24xf32>
    %477 = arith.addf %468, %476 : vector<16x24xf32>
    %c1_272 = arith.constant 1 : index
    %c0_273 = arith.constant 0 : index
    %478 = vector.load %arg5[%c1_272, %c0_273] : memref<9x24xf32, #tpu.memory_space<vmem>>, vector<1x24xf32>
    %479 = arith.index_cast %470 : i32 to index
    %c1_274 = arith.constant 1 : index
    %c0_275 = arith.constant 0 : index
    %480 = vector.load %arg10[%479, %c1_274, %c0_275] : memref<10x24x24xf32, #tpu.memory_space<vmem>>, vector<1x16x24xf32>
    %481 = vector.shape_cast %480 : vector<1x16x24xf32> to vector<16x24xf32>
    %482 = vector.broadcast %478 : vector<1x24xf32> to vector<16x24xf32>
    %483 = arith.mulf %481, %482 : vector<16x24xf32>
    %484 = arith.addf %477, %483 : vector<16x24xf32>
    %c2_276 = arith.constant 2 : index
    %c0_277 = arith.constant 0 : index
    %485 = vector.load %arg5[%c2_276, %c0_277] : memref<9x24xf32, #tpu.memory_space<vmem>>, vector<1x24xf32>
    %486 = arith.index_cast %470 : i32 to index
    %c2_278 = arith.constant 2 : index
    %c0_279 = arith.constant 0 : index
    %487 = vector.load %arg10[%486, %c2_278, %c0_279] : memref<10x24x24xf32, #tpu.memory_space<vmem>>, vector<1x16x24xf32>
    %488 = vector.shape_cast %487 : vector<1x16x24xf32> to vector<16x24xf32>
    %489 = vector.broadcast %485 : vector<1x24xf32> to vector<16x24xf32>
    %490 = arith.mulf %488, %489 : vector<16x24xf32>
    %491 = arith.addf %484, %490 : vector<16x24xf32>
    %c1_i32_280 = arith.constant 1 : i32
    %492 = arith.muli %c2_i32_264, %c1_i32_280 : i32
    %c1_i32_281 = arith.constant 1 : i32
    %493 = arith.addi %492, %c1_i32_281 : i32
    %c3_282 = arith.constant 3 : index
    %c0_283 = arith.constant 0 : index
    %494 = vector.load %arg5[%c3_282, %c0_283] : memref<9x24xf32, #tpu.memory_space<vmem>>, vector<1x24xf32>
    %495 = arith.index_cast %493 : i32 to index
    %c0_284 = arith.constant 0 : index
    %c0_285 = arith.constant 0 : index
    %496 = vector.load %arg10[%495, %c0_284, %c0_285] : memref<10x24x24xf32, #tpu.memory_space<vmem>>, vector<1x16x24xf32>
    %497 = vector.shape_cast %496 : vector<1x16x24xf32> to vector<16x24xf32>
    %498 = vector.broadcast %494 : vector<1x24xf32> to vector<16x24xf32>
    %499 = arith.mulf %497, %498 : vector<16x24xf32>
    %500 = arith.addf %491, %499 : vector<16x24xf32>
    %c4_286 = arith.constant 4 : index
    %c0_287 = arith.constant 0 : index
    %501 = vector.load %arg5[%c4_286, %c0_287] : memref<9x24xf32, #tpu.memory_space<vmem>>, vector<1x24xf32>
    %502 = arith.index_cast %493 : i32 to index
    %c1_288 = arith.constant 1 : index
    %c0_289 = arith.constant 0 : index
    %503 = vector.load %arg10[%502, %c1_288, %c0_289] : memref<10x24x24xf32, #tpu.memory_space<vmem>>, vector<1x16x24xf32>
    %504 = vector.shape_cast %503 : vector<1x16x24xf32> to vector<16x24xf32>
    %505 = vector.broadcast %501 : vector<1x24xf32> to vector<16x24xf32>
    %506 = arith.mulf %504, %505 : vector<16x24xf32>
    %507 = arith.addf %500, %506 : vector<16x24xf32>
    %c5_290 = arith.constant 5 : index
    %c0_291 = arith.constant 0 : index
    %508 = vector.load %arg5[%c5_290, %c0_291] : memref<9x24xf32, #tpu.memory_space<vmem>>, vector<1x24xf32>
    %509 = arith.index_cast %493 : i32 to index
    %c2_292 = arith.constant 2 : index
    %c0_293 = arith.constant 0 : index
    %510 = vector.load %arg10[%509, %c2_292, %c0_293] : memref<10x24x24xf32, #tpu.memory_space<vmem>>, vector<1x16x24xf32>
    %511 = vector.shape_cast %510 : vector<1x16x24xf32> to vector<16x24xf32>
    %512 = vector.broadcast %508 : vector<1x24xf32> to vector<16x24xf32>
    %513 = arith.mulf %511, %512 : vector<16x24xf32>
    %514 = arith.addf %507, %513 : vector<16x24xf32>
    %c1_i32_294 = arith.constant 1 : i32
    %515 = arith.muli %c2_i32_264, %c1_i32_294 : i32
    %c2_i32_295 = arith.constant 2 : i32
    %516 = arith.addi %515, %c2_i32_295 : i32
    %c6_296 = arith.constant 6 : index
    %c0_297 = arith.constant 0 : index
    %517 = vector.load %arg5[%c6_296, %c0_297] : memref<9x24xf32, #tpu.memory_space<vmem>>, vector<1x24xf32>
    %518 = arith.index_cast %516 : i32 to index
    %c0_298 = arith.constant 0 : index
    %c0_299 = arith.constant 0 : index
    %519 = vector.load %arg10[%518, %c0_298, %c0_299] : memref<10x24x24xf32, #tpu.memory_space<vmem>>, vector<1x16x24xf32>
    %520 = vector.shape_cast %519 : vector<1x16x24xf32> to vector<16x24xf32>
    %521 = vector.broadcast %517 : vector<1x24xf32> to vector<16x24xf32>
    %522 = arith.mulf %520, %521 : vector<16x24xf32>
    %523 = arith.addf %514, %522 : vector<16x24xf32>
    %c7_300 = arith.constant 7 : index
    %c0_301 = arith.constant 0 : index
    %524 = vector.load %arg5[%c7_300, %c0_301] : memref<9x24xf32, #tpu.memory_space<vmem>>, vector<1x24xf32>
    %525 = arith.index_cast %516 : i32 to index
    %c1_302 = arith.constant 1 : index
    %c0_303 = arith.constant 0 : index
    %526 = vector.load %arg10[%525, %c1_302, %c0_303] : memref<10x24x24xf32, #tpu.memory_space<vmem>>, vector<1x16x24xf32>
    %527 = vector.shape_cast %526 : vector<1x16x24xf32> to vector<16x24xf32>
    %528 = vector.broadcast %524 : vector<1x24xf32> to vector<16x24xf32>
    %529 = arith.mulf %527, %528 : vector<16x24xf32>
    %530 = arith.addf %523, %529 : vector<16x24xf32>
    %c8_304 = arith.constant 8 : index
    %c0_305 = arith.constant 0 : index
    %531 = vector.load %arg5[%c8_304, %c0_305] : memref<9x24xf32, #tpu.memory_space<vmem>>, vector<1x24xf32>
    %532 = arith.index_cast %516 : i32 to index
    %c2_306 = arith.constant 2 : index
    %c0_307 = arith.constant 0 : index
    %533 = vector.load %arg10[%532, %c2_306, %c0_307] : memref<10x24x24xf32, #tpu.memory_space<vmem>>, vector<1x16x24xf32>
    %534 = vector.shape_cast %533 : vector<1x16x24xf32> to vector<16x24xf32>
    %535 = vector.broadcast %531 : vector<1x24xf32> to vector<16x24xf32>
    %536 = arith.mulf %534, %535 : vector<16x24xf32>
    %537 = arith.addf %530, %536 : vector<16x24xf32>
    %c0_308 = arith.constant 0 : index
    %c0_309 = arith.constant 0 : index
    %538 = vector.load %arg6[%c0_308, %c0_309] : memref<1x24xf32, #tpu.memory_space<vmem>>, vector<1x24xf32>
    %539 = vector.broadcast %538 : vector<1x24xf32> to vector<16x24xf32>
    %540 = arith.addf %537, %539 : vector<16x24xf32>
    %cst_310 = arith.constant 0.000000e+00 : f32
    %cst_311 = arith.constant 6.000000e+00 : f32
    %541 = vector.broadcast %cst_310 : f32 to vector<16x24xf32>
    %542 = arith.maximumf %541, %540 : vector<16x24xf32>
    %543 = vector.broadcast %cst_311 : f32 to vector<16x24xf32>
    %544 = arith.minimumf %543, %542 : vector<16x24xf32>
    %545 = arith.truncf %544 : vector<16x24xf32> to vector<16x24xbf16>
    %c0_312 = arith.constant 0 : index
    %c0_313 = arith.constant 0 : index
    %546 = vector.load %arg7[%c0_312, %c0_313] : memref<24x128xbf16, #tpu.memory_space<vmem>>, vector<24x128xbf16>
    %cst_314 = arith.constant dense<0.000000e+00> : vector<16x128xf32>
    %547 = tpu.matmul %545, %546, %cst_314 {dimension_numbers = #tpu.dot_dimension_numbers<[1], [0], [0], [1], [0, 0, 1, 1], [], []>} : vector<16x24xbf16>, vector<24x128xbf16>, vector<16x128xf32> -> vector<16x128xf32>
    %c0_315 = arith.constant 0 : index
    %c0_316 = arith.constant 0 : index
    %548 = vector.load %arg8[%c0_315, %c0_316] : memref<1x128xf32, #tpu.memory_space<vmem>>, vector<1x128xf32>
    %549 = vector.broadcast %548 : vector<1x128xf32> to vector<16x128xf32>
    %550 = arith.addf %547, %549 : vector<16x128xf32>
    %551 = arith.addi %1, %c2_i32_264 : i32
    %c1_i32_317 = arith.constant 1 : i32
    %552 = arith.addi %551, %c1_i32_317 : i32
    %c0_318 = arith.constant 0 : index
    %553 = arith.index_cast %552 : i32 to index
    %c1_319 = arith.constant 1 : index
    %c0_320 = arith.constant 0 : index
    %554 = vector.load %arg2[%c0_318, %553, %c1_319, %c0_320] : memref<1x18x24x4xf32, #tpu.memory_space<vmem>>, vector<1x1x16x4xf32>
    %555 = vector.shape_cast %554 : vector<1x1x16x4xf32> to vector<16x4xf32>
    %cst_321 = arith.constant 0.000000e+00 : f32
    %556 = vector.broadcast %cst_321 : f32 to vector<16x124xf32>
    %557 = tpu.concatenate %555, %556 in 1 : vector<16x4xf32>, vector<16x124xf32> -> vector<16x128xf32>
    %558 = arith.addf %550, %557 : vector<16x128xf32>
    %c0_322 = arith.constant 0 : index
    %559 = arith.index_cast %c2_i32_264 : i32 to index
    %c0_323 = arith.constant 0 : index
    %c0_324 = arith.constant 0 : index
    %560 = vector.load %arg9[%c0_322, %559, %c0_323, %c0_324] : memref<1x8x16x128xf32, #tpu.memory_space<vmem>>, vector<1x1x16x128xf32>
    %561 = vector.shape_cast %560 : vector<1x1x16x128xf32> to vector<16x128xf32>
    %562 = vector.shape_cast %558 : vector<16x128xf32> to vector<1x1x16x128xf32>
    tpu.vector_store %arg9[%c0_322, %559, %c0_323, %c0_324], %562 {strides = array<i32>} : memref<1x8x16x128xf32, #tpu.memory_space<vmem>>, vector<1x1x16x128xf32>,
    %c3_i32_325 = arith.constant 3 : i32
    %cst_326 = arith.constant 0.000000e+00 : f32
    %563 = vector.broadcast %cst_326 : f32 to vector<16x24xf32>
    %c1_i32_327 = arith.constant 1 : i32
    %564 = arith.muli %c3_i32_325, %c1_i32_327 : i32
    %c0_i32_328 = arith.constant 0 : i32
    %565 = arith.addi %564, %c0_i32_328 : i32
    %c0_329 = arith.constant 0 : index
    %c0_330 = arith.constant 0 : index
    %566 = vector.load %arg5[%c0_329, %c0_330] : memref<9x24xf32, #tpu.memory_space<vmem>>, vector<1x24xf32>
    %567 = arith.index_cast %565 : i32 to index
    %c0_331 = arith.constant 0 : index
    %c0_332 = arith.constant 0 : index
    %568 = vector.load %arg10[%567, %c0_331, %c0_332] : memref<10x24x24xf32, #tpu.memory_space<vmem>>, vector<1x16x24xf32>
    %569 = vector.shape_cast %568 : vector<1x16x24xf32> to vector<16x24xf32>
    %570 = vector.broadcast %566 : vector<1x24xf32> to vector<16x24xf32>
    %571 = arith.mulf %569, %570 : vector<16x24xf32>
    %572 = arith.addf %563, %571 : vector<16x24xf32>
    %c1_333 = arith.constant 1 : index
    %c0_334 = arith.constant 0 : index
    %573 = vector.load %arg5[%c1_333, %c0_334] : memref<9x24xf32, #tpu.memory_space<vmem>>, vector<1x24xf32>
    %574 = arith.index_cast %565 : i32 to index
    %c1_335 = arith.constant 1 : index
    %c0_336 = arith.constant 0 : index
    %575 = vector.load %arg10[%574, %c1_335, %c0_336] : memref<10x24x24xf32, #tpu.memory_space<vmem>>, vector<1x16x24xf32>
    %576 = vector.shape_cast %575 : vector<1x16x24xf32> to vector<16x24xf32>
    %577 = vector.broadcast %573 : vector<1x24xf32> to vector<16x24xf32>
    %578 = arith.mulf %576, %577 : vector<16x24xf32>
    %579 = arith.addf %572, %578 : vector<16x24xf32>
    %c2_337 = arith.constant 2 : index
    %c0_338 = arith.constant 0 : index
    %580 = vector.load %arg5[%c2_337, %c0_338] : memref<9x24xf32, #tpu.memory_space<vmem>>, vector<1x24xf32>
    %581 = arith.index_cast %565 : i32 to index
    %c2_339 = arith.constant 2 : index
    %c0_340 = arith.constant 0 : index
    %582 = vector.load %arg10[%581, %c2_339, %c0_340] : memref<10x24x24xf32, #tpu.memory_space<vmem>>, vector<1x16x24xf32>
    %583 = vector.shape_cast %582 : vector<1x16x24xf32> to vector<16x24xf32>
    %584 = vector.broadcast %580 : vector<1x24xf32> to vector<16x24xf32>
    %585 = arith.mulf %583, %584 : vector<16x24xf32>
    %586 = arith.addf %579, %585 : vector<16x24xf32>
    %c1_i32_341 = arith.constant 1 : i32
    %587 = arith.muli %c3_i32_325, %c1_i32_341 : i32
    %c1_i32_342 = arith.constant 1 : i32
    %588 = arith.addi %587, %c1_i32_342 : i32
    %c3_343 = arith.constant 3 : index
    %c0_344 = arith.constant 0 : index
    %589 = vector.load %arg5[%c3_343, %c0_344] : memref<9x24xf32, #tpu.memory_space<vmem>>, vector<1x24xf32>
    %590 = arith.index_cast %588 : i32 to index
    %c0_345 = arith.constant 0 : index
    %c0_346 = arith.constant 0 : index
    %591 = vector.load %arg10[%590, %c0_345, %c0_346] : memref<10x24x24xf32, #tpu.memory_space<vmem>>, vector<1x16x24xf32>
    %592 = vector.shape_cast %591 : vector<1x16x24xf32> to vector<16x24xf32>
    %593 = vector.broadcast %589 : vector<1x24xf32> to vector<16x24xf32>
    %594 = arith.mulf %592, %593 : vector<16x24xf32>
    %595 = arith.addf %586, %594 : vector<16x24xf32>
    %c4_347 = arith.constant 4 : index
    %c0_348 = arith.constant 0 : index
    %596 = vector.load %arg5[%c4_347, %c0_348] : memref<9x24xf32, #tpu.memory_space<vmem>>, vector<1x24xf32>
    %597 = arith.index_cast %588 : i32 to index
    %c1_349 = arith.constant 1 : index
    %c0_350 = arith.constant 0 : index
    %598 = vector.load %arg10[%597, %c1_349, %c0_350] : memref<10x24x24xf32, #tpu.memory_space<vmem>>, vector<1x16x24xf32>
    %599 = vector.shape_cast %598 : vector<1x16x24xf32> to vector<16x24xf32>
    %600 = vector.broadcast %596 : vector<1x24xf32> to vector<16x24xf32>
    %601 = arith.mulf %599, %600 : vector<16x24xf32>
    %602 = arith.addf %595, %601 : vector<16x24xf32>
    %c5_351 = arith.constant 5 : index
    %c0_352 = arith.constant 0 : index
    %603 = vector.load %arg5[%c5_351, %c0_352] : memref<9x24xf32, #tpu.memory_space<vmem>>, vector<1x24xf32>
    %604 = arith.index_cast %588 : i32 to index
    %c2_353 = arith.constant 2 : index
    %c0_354 = arith.constant 0 : index
    %605 = vector.load %arg10[%604, %c2_353, %c0_354] : memref<10x24x24xf32, #tpu.memory_space<vmem>>, vector<1x16x24xf32>
    %606 = vector.shape_cast %605 : vector<1x16x24xf32> to vector<16x24xf32>
    %607 = vector.broadcast %603 : vector<1x24xf32> to vector<16x24xf32>
    %608 = arith.mulf %606, %607 : vector<16x24xf32>
    %609 = arith.addf %602, %608 : vector<16x24xf32>
    %c1_i32_355 = arith.constant 1 : i32
    %610 = arith.muli %c3_i32_325, %c1_i32_355 : i32
    %c2_i32_356 = arith.constant 2 : i32
    %611 = arith.addi %610, %c2_i32_356 : i32
    %c6_357 = arith.constant 6 : index
    %c0_358 = arith.constant 0 : index
    %612 = vector.load %arg5[%c6_357, %c0_358] : memref<9x24xf32, #tpu.memory_space<vmem>>, vector<1x24xf32>
    %613 = arith.index_cast %611 : i32 to index
    %c0_359 = arith.constant 0 : index
    %c0_360 = arith.constant 0 : index
    %614 = vector.load %arg10[%613, %c0_359, %c0_360] : memref<10x24x24xf32, #tpu.memory_space<vmem>>, vector<1x16x24xf32>
    %615 = vector.shape_cast %614 : vector<1x16x24xf32> to vector<16x24xf32>
    %616 = vector.broadcast %612 : vector<1x24xf32> to vector<16x24xf32>
    %617 = arith.mulf %615, %616 : vector<16x24xf32>
    %618 = arith.addf %609, %617 : vector<16x24xf32>
    %c7_361 = arith.constant 7 : index
    %c0_362 = arith.constant 0 : index
    %619 = vector.load %arg5[%c7_361, %c0_362] : memref<9x24xf32, #tpu.memory_space<vmem>>, vector<1x24xf32>
    %620 = arith.index_cast %611 : i32 to index
    %c1_363 = arith.constant 1 : index
    %c0_364 = arith.constant 0 : index
    %621 = vector.load %arg10[%620, %c1_363, %c0_364] : memref<10x24x24xf32, #tpu.memory_space<vmem>>, vector<1x16x24xf32>
    %622 = vector.shape_cast %621 : vector<1x16x24xf32> to vector<16x24xf32>
    %623 = vector.broadcast %619 : vector<1x24xf32> to vector<16x24xf32>
    %624 = arith.mulf %622, %623 : vector<16x24xf32>
    %625 = arith.addf %618, %624 : vector<16x24xf32>
    %c8_365 = arith.constant 8 : index
    %c0_366 = arith.constant 0 : index
    %626 = vector.load %arg5[%c8_365, %c0_366] : memref<9x24xf32, #tpu.memory_space<vmem>>, vector<1x24xf32>
    %627 = arith.index_cast %611 : i32 to index
    %c2_367 = arith.constant 2 : index
    %c0_368 = arith.constant 0 : index
    %628 = vector.load %arg10[%627, %c2_367, %c0_368] : memref<10x24x24xf32, #tpu.memory_space<vmem>>, vector<1x16x24xf32>
    %629 = vector.shape_cast %628 : vector<1x16x24xf32> to vector<16x24xf32>
    %630 = vector.broadcast %626 : vector<1x24xf32> to vector<16x24xf32>
    %631 = arith.mulf %629, %630 : vector<16x24xf32>
    %632 = arith.addf %625, %631 : vector<16x24xf32>
    %c0_369 = arith.constant 0 : index
    %c0_370 = arith.constant 0 : index
    %633 = vector.load %arg6[%c0_369, %c0_370] : memref<1x24xf32, #tpu.memory_space<vmem>>, vector<1x24xf32>
    %634 = vector.broadcast %633 : vector<1x24xf32> to vector<16x24xf32>
    %635 = arith.addf %632, %634 : vector<16x24xf32>
    %cst_371 = arith.constant 0.000000e+00 : f32
    %cst_372 = arith.constant 6.000000e+00 : f32
    %636 = vector.broadcast %cst_371 : f32 to vector<16x24xf32>
    %637 = arith.maximumf %636, %635 : vector<16x24xf32>
    %638 = vector.broadcast %cst_372 : f32 to vector<16x24xf32>
    %639 = arith.minimumf %638, %637 : vector<16x24xf32>
    %640 = arith.truncf %639 : vector<16x24xf32> to vector<16x24xbf16>
    %c0_373 = arith.constant 0 : index
    %c0_374 = arith.constant 0 : index
    %641 = vector.load %arg7[%c0_373, %c0_374] : memref<24x128xbf16, #tpu.memory_space<vmem>>, vector<24x128xbf16>
    %cst_375 = arith.constant dense<0.000000e+00> : vector<16x128xf32>
    %642 = tpu.matmul %640, %641, %cst_375 {dimension_numbers = #tpu.dot_dimension_numbers<[1], [0], [0], [1], [0, 0, 1, 1], [], []>} : vector<16x24xbf16>, vector<24x128xbf16>, vector<16x128xf32> -> vector<16x128xf32>
    %c0_376 = arith.constant 0 : index
    %c0_377 = arith.constant 0 : index
    %643 = vector.load %arg8[%c0_376, %c0_377] : memref<1x128xf32, #tpu.memory_space<vmem>>, vector<1x128xf32>
    %644 = vector.broadcast %643 : vector<1x128xf32> to vector<16x128xf32>
    %645 = arith.addf %642, %644 : vector<16x128xf32>
    %646 = arith.addi %1, %c3_i32_325 : i32
    %c1_i32_378 = arith.constant 1 : i32
    %647 = arith.addi %646, %c1_i32_378 : i32
    %c0_379 = arith.constant 0 : index
    %648 = arith.index_cast %647 : i32 to index
    %c1_380 = arith.constant 1 : index
    %c0_381 = arith.constant 0 : index
    %649 = vector.load %arg2[%c0_379, %648, %c1_380, %c0_381] : memref<1x18x24x4xf32, #tpu.memory_space<vmem>>, vector<1x1x16x4xf32>
    %650 = vector.shape_cast %649 : vector<1x1x16x4xf32> to vector<16x4xf32>
    %cst_382 = arith.constant 0.000000e+00 : f32
    %651 = vector.broadcast %cst_382 : f32 to vector<16x124xf32>
    %652 = tpu.concatenate %650, %651 in 1 : vector<16x4xf32>, vector<16x124xf32> -> vector<16x128xf32>
    %653 = arith.addf %645, %652 : vector<16x128xf32>
    %c0_383 = arith.constant 0 : index
    %654 = arith.index_cast %c3_i32_325 : i32 to index
    %c0_384 = arith.constant 0 : index
    %c0_385 = arith.constant 0 : index
    %655 = vector.load %arg9[%c0_383, %654, %c0_384, %c0_385] : memref<1x8x16x128xf32, #tpu.memory_space<vmem>>, vector<1x1x16x128xf32>
    %656 = vector.shape_cast %655 : vector<1x1x16x128xf32> to vector<16x128xf32>
    %657 = vector.shape_cast %653 : vector<16x128xf32> to vector<1x1x16x128xf32>
    tpu.vector_store %arg9[%c0_383, %654, %c0_384, %c0_385], %657 {strides = array<i32>} : memref<1x8x16x128xf32, #tpu.memory_space<vmem>>, vector<1x1x16x128xf32>,
    %c4_i32_386 = arith.constant 4 : i32
    %cst_387 = arith.constant 0.000000e+00 : f32
    %658 = vector.broadcast %cst_387 : f32 to vector<16x24xf32>
    %c1_i32_388 = arith.constant 1 : i32
    %659 = arith.muli %c4_i32_386, %c1_i32_388 : i32
    %c0_i32_389 = arith.constant 0 : i32
    %660 = arith.addi %659, %c0_i32_389 : i32
    %c0_390 = arith.constant 0 : index
    %c0_391 = arith.constant 0 : index
    %661 = vector.load %arg5[%c0_390, %c0_391] : memref<9x24xf32, #tpu.memory_space<vmem>>, vector<1x24xf32>
    %662 = arith.index_cast %660 : i32 to index
    %c0_392 = arith.constant 0 : index
    %c0_393 = arith.constant 0 : index
    %663 = vector.load %arg10[%662, %c0_392, %c0_393] : memref<10x24x24xf32, #tpu.memory_space<vmem>>, vector<1x16x24xf32>
    %664 = vector.shape_cast %663 : vector<1x16x24xf32> to vector<16x24xf32>
    %665 = vector.broadcast %661 : vector<1x24xf32> to vector<16x24xf32>
    %666 = arith.mulf %664, %665 : vector<16x24xf32>
    %667 = arith.addf %658, %666 : vector<16x24xf32>
    %c1_394 = arith.constant 1 : index
    %c0_395 = arith.constant 0 : index
    %668 = vector.load %arg5[%c1_394, %c0_395] : memref<9x24xf32, #tpu.memory_space<vmem>>, vector<1x24xf32>
    %669 = arith.index_cast %660 : i32 to index
    %c1_396 = arith.constant 1 : index
    %c0_397 = arith.constant 0 : index
    %670 = vector.load %arg10[%669, %c1_396, %c0_397] : memref<10x24x24xf32, #tpu.memory_space<vmem>>, vector<1x16x24xf32>
    %671 = vector.shape_cast %670 : vector<1x16x24xf32> to vector<16x24xf32>
    %672 = vector.broadcast %668 : vector<1x24xf32> to vector<16x24xf32>
    %673 = arith.mulf %671, %672 : vector<16x24xf32>
    %674 = arith.addf %667, %673 : vector<16x24xf32>
    %c2_398 = arith.constant 2 : index
    %c0_399 = arith.constant 0 : index
    %675 = vector.load %arg5[%c2_398, %c0_399] : memref<9x24xf32, #tpu.memory_space<vmem>>, vector<1x24xf32>
    %676 = arith.index_cast %660 : i32 to index
    %c2_400 = arith.constant 2 : index
    %c0_401 = arith.constant 0 : index
    %677 = vector.load %arg10[%676, %c2_400, %c0_401] : memref<10x24x24xf32, #tpu.memory_space<vmem>>, vector<1x16x24xf32>
    %678 = vector.shape_cast %677 : vector<1x16x24xf32> to vector<16x24xf32>
    %679 = vector.broadcast %675 : vector<1x24xf32> to vector<16x24xf32>
    %680 = arith.mulf %678, %679 : vector<16x24xf32>
    %681 = arith.addf %674, %680 : vector<16x24xf32>
    %c1_i32_402 = arith.constant 1 : i32
    %682 = arith.muli %c4_i32_386, %c1_i32_402 : i32
    %c1_i32_403 = arith.constant 1 : i32
    %683 = arith.addi %682, %c1_i32_403 : i32
    %c3_404 = arith.constant 3 : index
    %c0_405 = arith.constant 0 : index
    %684 = vector.load %arg5[%c3_404, %c0_405] : memref<9x24xf32, #tpu.memory_space<vmem>>, vector<1x24xf32>
    %685 = arith.index_cast %683 : i32 to index
    %c0_406 = arith.constant 0 : index
    %c0_407 = arith.constant 0 : index
    %686 = vector.load %arg10[%685, %c0_406, %c0_407] : memref<10x24x24xf32, #tpu.memory_space<vmem>>, vector<1x16x24xf32>
    %687 = vector.shape_cast %686 : vector<1x16x24xf32> to vector<16x24xf32>
    %688 = vector.broadcast %684 : vector<1x24xf32> to vector<16x24xf32>
    %689 = arith.mulf %687, %688 : vector<16x24xf32>
    %690 = arith.addf %681, %689 : vector<16x24xf32>
    %c4_408 = arith.constant 4 : index
    %c0_409 = arith.constant 0 : index
    %691 = vector.load %arg5[%c4_408, %c0_409] : memref<9x24xf32, #tpu.memory_space<vmem>>, vector<1x24xf32>
    %692 = arith.index_cast %683 : i32 to index
    %c1_410 = arith.constant 1 : index
    %c0_411 = arith.constant 0 : index
    %693 = vector.load %arg10[%692, %c1_410, %c0_411] : memref<10x24x24xf32, #tpu.memory_space<vmem>>, vector<1x16x24xf32>
    %694 = vector.shape_cast %693 : vector<1x16x24xf32> to vector<16x24xf32>
    %695 = vector.broadcast %691 : vector<1x24xf32> to vector<16x24xf32>
    %696 = arith.mulf %694, %695 : vector<16x24xf32>
    %697 = arith.addf %690, %696 : vector<16x24xf32>
    %c5_412 = arith.constant 5 : index
    %c0_413 = arith.constant 0 : index
    %698 = vector.load %arg5[%c5_412, %c0_413] : memref<9x24xf32, #tpu.memory_space<vmem>>, vector<1x24xf32>
    %699 = arith.index_cast %683 : i32 to index
    %c2_414 = arith.constant 2 : index
    %c0_415 = arith.constant 0 : index
    %700 = vector.load %arg10[%699, %c2_414, %c0_415] : memref<10x24x24xf32, #tpu.memory_space<vmem>>, vector<1x16x24xf32>
    %701 = vector.shape_cast %700 : vector<1x16x24xf32> to vector<16x24xf32>
    %702 = vector.broadcast %698 : vector<1x24xf32> to vector<16x24xf32>
    %703 = arith.mulf %701, %702 : vector<16x24xf32>
    %704 = arith.addf %697, %703 : vector<16x24xf32>
    %c1_i32_416 = arith.constant 1 : i32
    %705 = arith.muli %c4_i32_386, %c1_i32_416 : i32
    %c2_i32_417 = arith.constant 2 : i32
    %706 = arith.addi %705, %c2_i32_417 : i32
    %c6_418 = arith.constant 6 : index
    %c0_419 = arith.constant 0 : index
    %707 = vector.load %arg5[%c6_418, %c0_419] : memref<9x24xf32, #tpu.memory_space<vmem>>, vector<1x24xf32>
    %708 = arith.index_cast %706 : i32 to index
    %c0_420 = arith.constant 0 : index
    %c0_421 = arith.constant 0 : index
    %709 = vector.load %arg10[%708, %c0_420, %c0_421] : memref<10x24x24xf32, #tpu.memory_space<vmem>>, vector<1x16x24xf32>
    %710 = vector.shape_cast %709 : vector<1x16x24xf32> to vector<16x24xf32>
    %711 = vector.broadcast %707 : vector<1x24xf32> to vector<16x24xf32>
    %712 = arith.mulf %710, %711 : vector<16x24xf32>
    %713 = arith.addf %704, %712 : vector<16x24xf32>
    %c7_422 = arith.constant 7 : index
    %c0_423 = arith.constant 0 : index
    %714 = vector.load %arg5[%c7_422, %c0_423] : memref<9x24xf32, #tpu.memory_space<vmem>>, vector<1x24xf32>
    %715 = arith.index_cast %706 : i32 to index
    %c1_424 = arith.constant 1 : index
    %c0_425 = arith.constant 0 : index
    %716 = vector.load %arg10[%715, %c1_424, %c0_425] : memref<10x24x24xf32, #tpu.memory_space<vmem>>, vector<1x16x24xf32>
    %717 = vector.shape_cast %716 : vector<1x16x24xf32> to vector<16x24xf32>
    %718 = vector.broadcast %714 : vector<1x24xf32> to vector<16x24xf32>
    %719 = arith.mulf %717, %718 : vector<16x24xf32>
    %720 = arith.addf %713, %719 : vector<16x24xf32>
    %c8_426 = arith.constant 8 : index
    %c0_427 = arith.constant 0 : index
    %721 = vector.load %arg5[%c8_426, %c0_427] : memref<9x24xf32, #tpu.memory_space<vmem>>, vector<1x24xf32>
    %722 = arith.index_cast %706 : i32 to index
    %c2_428 = arith.constant 2 : index
    %c0_429 = arith.constant 0 : index
    %723 = vector.load %arg10[%722, %c2_428, %c0_429] : memref<10x24x24xf32, #tpu.memory_space<vmem>>, vector<1x16x24xf32>
    %724 = vector.shape_cast %723 : vector<1x16x24xf32> to vector<16x24xf32>
    %725 = vector.broadcast %721 : vector<1x24xf32> to vector<16x24xf32>
    %726 = arith.mulf %724, %725 : vector<16x24xf32>
    %727 = arith.addf %720, %726 : vector<16x24xf32>
    %c0_430 = arith.constant 0 : index
    %c0_431 = arith.constant 0 : index
    %728 = vector.load %arg6[%c0_430, %c0_431] : memref<1x24xf32, #tpu.memory_space<vmem>>, vector<1x24xf32>
    %729 = vector.broadcast %728 : vector<1x24xf32> to vector<16x24xf32>
    %730 = arith.addf %727, %729 : vector<16x24xf32>
    %cst_432 = arith.constant 0.000000e+00 : f32
    %cst_433 = arith.constant 6.000000e+00 : f32
    %731 = vector.broadcast %cst_432 : f32 to vector<16x24xf32>
    %732 = arith.maximumf %731, %730 : vector<16x24xf32>
    %733 = vector.broadcast %cst_433 : f32 to vector<16x24xf32>
    %734 = arith.minimumf %733, %732 : vector<16x24xf32>
    %735 = arith.truncf %734 : vector<16x24xf32> to vector<16x24xbf16>
    %c0_434 = arith.constant 0 : index
    %c0_435 = arith.constant 0 : index
    %736 = vector.load %arg7[%c0_434, %c0_435] : memref<24x128xbf16, #tpu.memory_space<vmem>>, vector<24x128xbf16>
    %cst_436 = arith.constant dense<0.000000e+00> : vector<16x128xf32>
    %737 = tpu.matmul %735, %736, %cst_436 {dimension_numbers = #tpu.dot_dimension_numbers<[1], [0], [0], [1], [0, 0, 1, 1], [], []>} : vector<16x24xbf16>, vector<24x128xbf16>, vector<16x128xf32> -> vector<16x128xf32>
    %c0_437 = arith.constant 0 : index
    %c0_438 = arith.constant 0 : index
    %738 = vector.load %arg8[%c0_437, %c0_438] : memref<1x128xf32, #tpu.memory_space<vmem>>, vector<1x128xf32>
    %739 = vector.broadcast %738 : vector<1x128xf32> to vector<16x128xf32>
    %740 = arith.addf %737, %739 : vector<16x128xf32>
    %741 = arith.addi %1, %c4_i32_386 : i32
    %c1_i32_439 = arith.constant 1 : i32
    %742 = arith.addi %741, %c1_i32_439 : i32
    %c0_440 = arith.constant 0 : index
    %743 = arith.index_cast %742 : i32 to index
    %c1_441 = arith.constant 1 : index
    %c0_442 = arith.constant 0 : index
    %744 = vector.load %arg2[%c0_440, %743, %c1_441, %c0_442] : memref<1x18x24x4xf32, #tpu.memory_space<vmem>>, vector<1x1x16x4xf32>
    %745 = vector.shape_cast %744 : vector<1x1x16x4xf32> to vector<16x4xf32>
    %cst_443 = arith.constant 0.000000e+00 : f32
    %746 = vector.broadcast %cst_443 : f32 to vector<16x124xf32>
    %747 = tpu.concatenate %745, %746 in 1 : vector<16x4xf32>, vector<16x124xf32> -> vector<16x128xf32>
    %748 = arith.addf %740, %747 : vector<16x128xf32>
    %c0_444 = arith.constant 0 : index
    %749 = arith.index_cast %c4_i32_386 : i32 to index
    %c0_445 = arith.constant 0 : index
    %c0_446 = arith.constant 0 : index
    %750 = vector.load %arg9[%c0_444, %749, %c0_445, %c0_446] : memref<1x8x16x128xf32, #tpu.memory_space<vmem>>, vector<1x1x16x128xf32>
    %751 = vector.shape_cast %750 : vector<1x1x16x128xf32> to vector<16x128xf32>
    %752 = vector.shape_cast %748 : vector<16x128xf32> to vector<1x1x16x128xf32>
    tpu.vector_store %arg9[%c0_444, %749, %c0_445, %c0_446], %752 {strides = array<i32>} : memref<1x8x16x128xf32, #tpu.memory_space<vmem>>, vector<1x1x16x128xf32>,
    %c5_i32_447 = arith.constant 5 : i32
    %cst_448 = arith.constant 0.000000e+00 : f32
    %753 = vector.broadcast %cst_448 : f32 to vector<16x24xf32>
    %c1_i32_449 = arith.constant 1 : i32
    %754 = arith.muli %c5_i32_447, %c1_i32_449 : i32
    %c0_i32_450 = arith.constant 0 : i32
    %755 = arith.addi %754, %c0_i32_450 : i32
    %c0_451 = arith.constant 0 : index
    %c0_452 = arith.constant 0 : index
    %756 = vector.load %arg5[%c0_451, %c0_452] : memref<9x24xf32, #tpu.memory_space<vmem>>, vector<1x24xf32>
    %757 = arith.index_cast %755 : i32 to index
    %c0_453 = arith.constant 0 : index
    %c0_454 = arith.constant 0 : index
    %758 = vector.load %arg10[%757, %c0_453, %c0_454] : memref<10x24x24xf32, #tpu.memory_space<vmem>>, vector<1x16x24xf32>
    %759 = vector.shape_cast %758 : vector<1x16x24xf32> to vector<16x24xf32>
    %760 = vector.broadcast %756 : vector<1x24xf32> to vector<16x24xf32>
    %761 = arith.mulf %759, %760 : vector<16x24xf32>
    %762 = arith.addf %753, %761 : vector<16x24xf32>
    %c1_455 = arith.constant 1 : index
    %c0_456 = arith.constant 0 : index
    %763 = vector.load %arg5[%c1_455, %c0_456] : memref<9x24xf32, #tpu.memory_space<vmem>>, vector<1x24xf32>
    %764 = arith.index_cast %755 : i32 to index
    %c1_457 = arith.constant 1 : index
    %c0_458 = arith.constant 0 : index
    %765 = vector.load %arg10[%764, %c1_457, %c0_458] : memref<10x24x24xf32, #tpu.memory_space<vmem>>, vector<1x16x24xf32>
    %766 = vector.shape_cast %765 : vector<1x16x24xf32> to vector<16x24xf32>
    %767 = vector.broadcast %763 : vector<1x24xf32> to vector<16x24xf32>
    %768 = arith.mulf %766, %767 : vector<16x24xf32>
    %769 = arith.addf %762, %768 : vector<16x24xf32>
    %c2_459 = arith.constant 2 : index
    %c0_460 = arith.constant 0 : index
    %770 = vector.load %arg5[%c2_459, %c0_460] : memref<9x24xf32, #tpu.memory_space<vmem>>, vector<1x24xf32>
    %771 = arith.index_cast %755 : i32 to index
    %c2_461 = arith.constant 2 : index
    %c0_462 = arith.constant 0 : index
    %772 = vector.load %arg10[%771, %c2_461, %c0_462] : memref<10x24x24xf32, #tpu.memory_space<vmem>>, vector<1x16x24xf32>
    %773 = vector.shape_cast %772 : vector<1x16x24xf32> to vector<16x24xf32>
    %774 = vector.broadcast %770 : vector<1x24xf32> to vector<16x24xf32>
    %775 = arith.mulf %773, %774 : vector<16x24xf32>
    %776 = arith.addf %769, %775 : vector<16x24xf32>
    %c1_i32_463 = arith.constant 1 : i32
    %777 = arith.muli %c5_i32_447, %c1_i32_463 : i32
    %c1_i32_464 = arith.constant 1 : i32
    %778 = arith.addi %777, %c1_i32_464 : i32
    %c3_465 = arith.constant 3 : index
    %c0_466 = arith.constant 0 : index
    %779 = vector.load %arg5[%c3_465, %c0_466] : memref<9x24xf32, #tpu.memory_space<vmem>>, vector<1x24xf32>
    %780 = arith.index_cast %778 : i32 to index
    %c0_467 = arith.constant 0 : index
    %c0_468 = arith.constant 0 : index
    %781 = vector.load %arg10[%780, %c0_467, %c0_468] : memref<10x24x24xf32, #tpu.memory_space<vmem>>, vector<1x16x24xf32>
    %782 = vector.shape_cast %781 : vector<1x16x24xf32> to vector<16x24xf32>
    %783 = vector.broadcast %779 : vector<1x24xf32> to vector<16x24xf32>
    %784 = arith.mulf %782, %783 : vector<16x24xf32>
    %785 = arith.addf %776, %784 : vector<16x24xf32>
    %c4_469 = arith.constant 4 : index
    %c0_470 = arith.constant 0 : index
    %786 = vector.load %arg5[%c4_469, %c0_470] : memref<9x24xf32, #tpu.memory_space<vmem>>, vector<1x24xf32>
    %787 = arith.index_cast %778 : i32 to index
    %c1_471 = arith.constant 1 : index
    %c0_472 = arith.constant 0 : index
    %788 = vector.load %arg10[%787, %c1_471, %c0_472] : memref<10x24x24xf32, #tpu.memory_space<vmem>>, vector<1x16x24xf32>
    %789 = vector.shape_cast %788 : vector<1x16x24xf32> to vector<16x24xf32>
    %790 = vector.broadcast %786 : vector<1x24xf32> to vector<16x24xf32>
    %791 = arith.mulf %789, %790 : vector<16x24xf32>
    %792 = arith.addf %785, %791 : vector<16x24xf32>
    %c5_473 = arith.constant 5 : index
    %c0_474 = arith.constant 0 : index
    %793 = vector.load %arg5[%c5_473, %c0_474] : memref<9x24xf32, #tpu.memory_space<vmem>>, vector<1x24xf32>
    %794 = arith.index_cast %778 : i32 to index
    %c2_475 = arith.constant 2 : index
    %c0_476 = arith.constant 0 : index
    %795 = vector.load %arg10[%794, %c2_475, %c0_476] : memref<10x24x24xf32, #tpu.memory_space<vmem>>, vector<1x16x24xf32>
    %796 = vector.shape_cast %795 : vector<1x16x24xf32> to vector<16x24xf32>
    %797 = vector.broadcast %793 : vector<1x24xf32> to vector<16x24xf32>
    %798 = arith.mulf %796, %797 : vector<16x24xf32>
    %799 = arith.addf %792, %798 : vector<16x24xf32>
    %c1_i32_477 = arith.constant 1 : i32
    %800 = arith.muli %c5_i32_447, %c1_i32_477 : i32
    %c2_i32_478 = arith.constant 2 : i32
    %801 = arith.addi %800, %c2_i32_478 : i32
    %c6_479 = arith.constant 6 : index
    %c0_480 = arith.constant 0 : index
    %802 = vector.load %arg5[%c6_479, %c0_480] : memref<9x24xf32, #tpu.memory_space<vmem>>, vector<1x24xf32>
    %803 = arith.index_cast %801 : i32 to index
    %c0_481 = arith.constant 0 : index
    %c0_482 = arith.constant 0 : index
    %804 = vector.load %arg10[%803, %c0_481, %c0_482] : memref<10x24x24xf32, #tpu.memory_space<vmem>>, vector<1x16x24xf32>
    %805 = vector.shape_cast %804 : vector<1x16x24xf32> to vector<16x24xf32>
    %806 = vector.broadcast %802 : vector<1x24xf32> to vector<16x24xf32>
    %807 = arith.mulf %805, %806 : vector<16x24xf32>
    %808 = arith.addf %799, %807 : vector<16x24xf32>
    %c7_483 = arith.constant 7 : index
    %c0_484 = arith.constant 0 : index
    %809 = vector.load %arg5[%c7_483, %c0_484] : memref<9x24xf32, #tpu.memory_space<vmem>>, vector<1x24xf32>
    %810 = arith.index_cast %801 : i32 to index
    %c1_485 = arith.constant 1 : index
    %c0_486 = arith.constant 0 : index
    %811 = vector.load %arg10[%810, %c1_485, %c0_486] : memref<10x24x24xf32, #tpu.memory_space<vmem>>, vector<1x16x24xf32>
    %812 = vector.shape_cast %811 : vector<1x16x24xf32> to vector<16x24xf32>
    %813 = vector.broadcast %809 : vector<1x24xf32> to vector<16x24xf32>
    %814 = arith.mulf %812, %813 : vector<16x24xf32>
    %815 = arith.addf %808, %814 : vector<16x24xf32>
    %c8_487 = arith.constant 8 : index
    %c0_488 = arith.constant 0 : index
    %816 = vector.load %arg5[%c8_487, %c0_488] : memref<9x24xf32, #tpu.memory_space<vmem>>, vector<1x24xf32>
    %817 = arith.index_cast %801 : i32 to index
    %c2_489 = arith.constant 2 : index
    %c0_490 = arith.constant 0 : index
    %818 = vector.load %arg10[%817, %c2_489, %c0_490] : memref<10x24x24xf32, #tpu.memory_space<vmem>>, vector<1x16x24xf32>
    %819 = vector.shape_cast %818 : vector<1x16x24xf32> to vector<16x24xf32>
    %820 = vector.broadcast %816 : vector<1x24xf32> to vector<16x24xf32>
    %821 = arith.mulf %819, %820 : vector<16x24xf32>
    %822 = arith.addf %815, %821 : vector<16x24xf32>
    %c0_491 = arith.constant 0 : index
    %c0_492 = arith.constant 0 : index
    %823 = vector.load %arg6[%c0_491, %c0_492] : memref<1x24xf32, #tpu.memory_space<vmem>>, vector<1x24xf32>
    %824 = vector.broadcast %823 : vector<1x24xf32> to vector<16x24xf32>
    %825 = arith.addf %822, %824 : vector<16x24xf32>
    %cst_493 = arith.constant 0.000000e+00 : f32
    %cst_494 = arith.constant 6.000000e+00 : f32
    %826 = vector.broadcast %cst_493 : f32 to vector<16x24xf32>
    %827 = arith.maximumf %826, %825 : vector<16x24xf32>
    %828 = vector.broadcast %cst_494 : f32 to vector<16x24xf32>
    %829 = arith.minimumf %828, %827 : vector<16x24xf32>
    %830 = arith.truncf %829 : vector<16x24xf32> to vector<16x24xbf16>
    %c0_495 = arith.constant 0 : index
    %c0_496 = arith.constant 0 : index
    %831 = vector.load %arg7[%c0_495, %c0_496] : memref<24x128xbf16, #tpu.memory_space<vmem>>, vector<24x128xbf16>
    %cst_497 = arith.constant dense<0.000000e+00> : vector<16x128xf32>
    %832 = tpu.matmul %830, %831, %cst_497 {dimension_numbers = #tpu.dot_dimension_numbers<[1], [0], [0], [1], [0, 0, 1, 1], [], []>} : vector<16x24xbf16>, vector<24x128xbf16>, vector<16x128xf32> -> vector<16x128xf32>
    %c0_498 = arith.constant 0 : index
    %c0_499 = arith.constant 0 : index
    %833 = vector.load %arg8[%c0_498, %c0_499] : memref<1x128xf32, #tpu.memory_space<vmem>>, vector<1x128xf32>
    %834 = vector.broadcast %833 : vector<1x128xf32> to vector<16x128xf32>
    %835 = arith.addf %832, %834 : vector<16x128xf32>
    %836 = arith.addi %1, %c5_i32_447 : i32
    %c1_i32_500 = arith.constant 1 : i32
    %837 = arith.addi %836, %c1_i32_500 : i32
    %c0_501 = arith.constant 0 : index
    %838 = arith.index_cast %837 : i32 to index
    %c1_502 = arith.constant 1 : index
    %c0_503 = arith.constant 0 : index
    %839 = vector.load %arg2[%c0_501, %838, %c1_502, %c0_503] : memref<1x18x24x4xf32, #tpu.memory_space<vmem>>, vector<1x1x16x4xf32>
    %840 = vector.shape_cast %839 : vector<1x1x16x4xf32> to vector<16x4xf32>
    %cst_504 = arith.constant 0.000000e+00 : f32
    %841 = vector.broadcast %cst_504 : f32 to vector<16x124xf32>
    %842 = tpu.concatenate %840, %841 in 1 : vector<16x4xf32>, vector<16x124xf32> -> vector<16x128xf32>
    %843 = arith.addf %835, %842 : vector<16x128xf32>
    %c0_505 = arith.constant 0 : index
    %844 = arith.index_cast %c5_i32_447 : i32 to index
    %c0_506 = arith.constant 0 : index
    %c0_507 = arith.constant 0 : index
    %845 = vector.load %arg9[%c0_505, %844, %c0_506, %c0_507] : memref<1x8x16x128xf32, #tpu.memory_space<vmem>>, vector<1x1x16x128xf32>
    %846 = vector.shape_cast %845 : vector<1x1x16x128xf32> to vector<16x128xf32>
    %847 = vector.shape_cast %843 : vector<16x128xf32> to vector<1x1x16x128xf32>
    tpu.vector_store %arg9[%c0_505, %844, %c0_506, %c0_507], %847 {strides = array<i32>} : memref<1x8x16x128xf32, #tpu.memory_space<vmem>>, vector<1x1x16x128xf32>,
    %c6_i32_508 = arith.constant 6 : i32
    %cst_509 = arith.constant 0.000000e+00 : f32
    %848 = vector.broadcast %cst_509 : f32 to vector<16x24xf32>
    %c1_i32_510 = arith.constant 1 : i32
    %849 = arith.muli %c6_i32_508, %c1_i32_510 : i32
    %c0_i32_511 = arith.constant 0 : i32
    %850 = arith.addi %849, %c0_i32_511 : i32
    %c0_512 = arith.constant 0 : index
    %c0_513 = arith.constant 0 : index
    %851 = vector.load %arg5[%c0_512, %c0_513] : memref<9x24xf32, #tpu.memory_space<vmem>>, vector<1x24xf32>
    %852 = arith.index_cast %850 : i32 to index
    %c0_514 = arith.constant 0 : index
    %c0_515 = arith.constant 0 : index
    %853 = vector.load %arg10[%852, %c0_514, %c0_515] : memref<10x24x24xf32, #tpu.memory_space<vmem>>, vector<1x16x24xf32>
    %854 = vector.shape_cast %853 : vector<1x16x24xf32> to vector<16x24xf32>
    %855 = vector.broadcast %851 : vector<1x24xf32> to vector<16x24xf32>
    %856 = arith.mulf %854, %855 : vector<16x24xf32>
    %857 = arith.addf %848, %856 : vector<16x24xf32>
    %c1_516 = arith.constant 1 : index
    %c0_517 = arith.constant 0 : index
    %858 = vector.load %arg5[%c1_516, %c0_517] : memref<9x24xf32, #tpu.memory_space<vmem>>, vector<1x24xf32>
    %859 = arith.index_cast %850 : i32 to index
    %c1_518 = arith.constant 1 : index
    %c0_519 = arith.constant 0 : index
    %860 = vector.load %arg10[%859, %c1_518, %c0_519] : memref<10x24x24xf32, #tpu.memory_space<vmem>>, vector<1x16x24xf32>
    %861 = vector.shape_cast %860 : vector<1x16x24xf32> to vector<16x24xf32>
    %862 = vector.broadcast %858 : vector<1x24xf32> to vector<16x24xf32>
    %863 = arith.mulf %861, %862 : vector<16x24xf32>
    %864 = arith.addf %857, %863 : vector<16x24xf32>
    %c2_520 = arith.constant 2 : index
    %c0_521 = arith.constant 0 : index
    %865 = vector.load %arg5[%c2_520, %c0_521] : memref<9x24xf32, #tpu.memory_space<vmem>>, vector<1x24xf32>
    %866 = arith.index_cast %850 : i32 to index
    %c2_522 = arith.constant 2 : index
    %c0_523 = arith.constant 0 : index
    %867 = vector.load %arg10[%866, %c2_522, %c0_523] : memref<10x24x24xf32, #tpu.memory_space<vmem>>, vector<1x16x24xf32>
    %868 = vector.shape_cast %867 : vector<1x16x24xf32> to vector<16x24xf32>
    %869 = vector.broadcast %865 : vector<1x24xf32> to vector<16x24xf32>
    %870 = arith.mulf %868, %869 : vector<16x24xf32>
    %871 = arith.addf %864, %870 : vector<16x24xf32>
    %c1_i32_524 = arith.constant 1 : i32
    %872 = arith.muli %c6_i32_508, %c1_i32_524 : i32
    %c1_i32_525 = arith.constant 1 : i32
    %873 = arith.addi %872, %c1_i32_525 : i32
    %c3_526 = arith.constant 3 : index
    %c0_527 = arith.constant 0 : index
    %874 = vector.load %arg5[%c3_526, %c0_527] : memref<9x24xf32, #tpu.memory_space<vmem>>, vector<1x24xf32>
    %875 = arith.index_cast %873 : i32 to index
    %c0_528 = arith.constant 0 : index
    %c0_529 = arith.constant 0 : index
    %876 = vector.load %arg10[%875, %c0_528, %c0_529] : memref<10x24x24xf32, #tpu.memory_space<vmem>>, vector<1x16x24xf32>
    %877 = vector.shape_cast %876 : vector<1x16x24xf32> to vector<16x24xf32>
    %878 = vector.broadcast %874 : vector<1x24xf32> to vector<16x24xf32>
    %879 = arith.mulf %877, %878 : vector<16x24xf32>
    %880 = arith.addf %871, %879 : vector<16x24xf32>
    %c4_530 = arith.constant 4 : index
    %c0_531 = arith.constant 0 : index
    %881 = vector.load %arg5[%c4_530, %c0_531] : memref<9x24xf32, #tpu.memory_space<vmem>>, vector<1x24xf32>
    %882 = arith.index_cast %873 : i32 to index
    %c1_532 = arith.constant 1 : index
    %c0_533 = arith.constant 0 : index
    %883 = vector.load %arg10[%882, %c1_532, %c0_533] : memref<10x24x24xf32, #tpu.memory_space<vmem>>, vector<1x16x24xf32>
    %884 = vector.shape_cast %883 : vector<1x16x24xf32> to vector<16x24xf32>
    %885 = vector.broadcast %881 : vector<1x24xf32> to vector<16x24xf32>
    %886 = arith.mulf %884, %885 : vector<16x24xf32>
    %887 = arith.addf %880, %886 : vector<16x24xf32>
    %c5_534 = arith.constant 5 : index
    %c0_535 = arith.constant 0 : index
    %888 = vector.load %arg5[%c5_534, %c0_535] : memref<9x24xf32, #tpu.memory_space<vmem>>, vector<1x24xf32>
    %889 = arith.index_cast %873 : i32 to index
    %c2_536 = arith.constant 2 : index
    %c0_537 = arith.constant 0 : index
    %890 = vector.load %arg10[%889, %c2_536, %c0_537] : memref<10x24x24xf32, #tpu.memory_space<vmem>>, vector<1x16x24xf32>
    %891 = vector.shape_cast %890 : vector<1x16x24xf32> to vector<16x24xf32>
    %892 = vector.broadcast %888 : vector<1x24xf32> to vector<16x24xf32>
    %893 = arith.mulf %891, %892 : vector<16x24xf32>
    %894 = arith.addf %887, %893 : vector<16x24xf32>
    %c1_i32_538 = arith.constant 1 : i32
    %895 = arith.muli %c6_i32_508, %c1_i32_538 : i32
    %c2_i32_539 = arith.constant 2 : i32
    %896 = arith.addi %895, %c2_i32_539 : i32
    %c6_540 = arith.constant 6 : index
    %c0_541 = arith.constant 0 : index
    %897 = vector.load %arg5[%c6_540, %c0_541] : memref<9x24xf32, #tpu.memory_space<vmem>>, vector<1x24xf32>
    %898 = arith.index_cast %896 : i32 to index
    %c0_542 = arith.constant 0 : index
    %c0_543 = arith.constant 0 : index
    %899 = vector.load %arg10[%898, %c0_542, %c0_543] : memref<10x24x24xf32, #tpu.memory_space<vmem>>, vector<1x16x24xf32>
    %900 = vector.shape_cast %899 : vector<1x16x24xf32> to vector<16x24xf32>
    %901 = vector.broadcast %897 : vector<1x24xf32> to vector<16x24xf32>
    %902 = arith.mulf %900, %901 : vector<16x24xf32>
    %903 = arith.addf %894, %902 : vector<16x24xf32>
    %c7_544 = arith.constant 7 : index
    %c0_545 = arith.constant 0 : index
    %904 = vector.load %arg5[%c7_544, %c0_545] : memref<9x24xf32, #tpu.memory_space<vmem>>, vector<1x24xf32>
    %905 = arith.index_cast %896 : i32 to index
    %c1_546 = arith.constant 1 : index
    %c0_547 = arith.constant 0 : index
    %906 = vector.load %arg10[%905, %c1_546, %c0_547] : memref<10x24x24xf32, #tpu.memory_space<vmem>>, vector<1x16x24xf32>
    %907 = vector.shape_cast %906 : vector<1x16x24xf32> to vector<16x24xf32>
    %908 = vector.broadcast %904 : vector<1x24xf32> to vector<16x24xf32>
    %909 = arith.mulf %907, %908 : vector<16x24xf32>
    %910 = arith.addf %903, %909 : vector<16x24xf32>
    %c8_548 = arith.constant 8 : index
    %c0_549 = arith.constant 0 : index
    %911 = vector.load %arg5[%c8_548, %c0_549] : memref<9x24xf32, #tpu.memory_space<vmem>>, vector<1x24xf32>
    %912 = arith.index_cast %896 : i32 to index
    %c2_550 = arith.constant 2 : index
    %c0_551 = arith.constant 0 : index
    %913 = vector.load %arg10[%912, %c2_550, %c0_551] : memref<10x24x24xf32, #tpu.memory_space<vmem>>, vector<1x16x24xf32>
    %914 = vector.shape_cast %913 : vector<1x16x24xf32> to vector<16x24xf32>
    %915 = vector.broadcast %911 : vector<1x24xf32> to vector<16x24xf32>
    %916 = arith.mulf %914, %915 : vector<16x24xf32>
    %917 = arith.addf %910, %916 : vector<16x24xf32>
    %c0_552 = arith.constant 0 : index
    %c0_553 = arith.constant 0 : index
    %918 = vector.load %arg6[%c0_552, %c0_553] : memref<1x24xf32, #tpu.memory_space<vmem>>, vector<1x24xf32>
    %919 = vector.broadcast %918 : vector<1x24xf32> to vector<16x24xf32>
    %920 = arith.addf %917, %919 : vector<16x24xf32>
    %cst_554 = arith.constant 0.000000e+00 : f32
    %cst_555 = arith.constant 6.000000e+00 : f32
    %921 = vector.broadcast %cst_554 : f32 to vector<16x24xf32>
    %922 = arith.maximumf %921, %920 : vector<16x24xf32>
    %923 = vector.broadcast %cst_555 : f32 to vector<16x24xf32>
    %924 = arith.minimumf %923, %922 : vector<16x24xf32>
    %925 = arith.truncf %924 : vector<16x24xf32> to vector<16x24xbf16>
    %c0_556 = arith.constant 0 : index
    %c0_557 = arith.constant 0 : index
    %926 = vector.load %arg7[%c0_556, %c0_557] : memref<24x128xbf16, #tpu.memory_space<vmem>>, vector<24x128xbf16>
    %cst_558 = arith.constant dense<0.000000e+00> : vector<16x128xf32>
    %927 = tpu.matmul %925, %926, %cst_558 {dimension_numbers = #tpu.dot_dimension_numbers<[1], [0], [0], [1], [0, 0, 1, 1], [], []>} : vector<16x24xbf16>, vector<24x128xbf16>, vector<16x128xf32> -> vector<16x128xf32>
    %c0_559 = arith.constant 0 : index
    %c0_560 = arith.constant 0 : index
    %928 = vector.load %arg8[%c0_559, %c0_560] : memref<1x128xf32, #tpu.memory_space<vmem>>, vector<1x128xf32>
    %929 = vector.broadcast %928 : vector<1x128xf32> to vector<16x128xf32>
    %930 = arith.addf %927, %929 : vector<16x128xf32>
    %931 = arith.addi %1, %c6_i32_508 : i32
    %c1_i32_561 = arith.constant 1 : i32
    %932 = arith.addi %931, %c1_i32_561 : i32
    %c0_562 = arith.constant 0 : index
    %933 = arith.index_cast %932 : i32 to index
    %c1_563 = arith.constant 1 : index
    %c0_564 = arith.constant 0 : index
    %934 = vector.load %arg2[%c0_562, %933, %c1_563, %c0_564] : memref<1x18x24x4xf32, #tpu.memory_space<vmem>>, vector<1x1x16x4xf32>
    %935 = vector.shape_cast %934 : vector<1x1x16x4xf32> to vector<16x4xf32>
    %cst_565 = arith.constant 0.000000e+00 : f32
    %936 = vector.broadcast %cst_565 : f32 to vector<16x124xf32>
    %937 = tpu.concatenate %935, %936 in 1 : vector<16x4xf32>, vector<16x124xf32> -> vector<16x128xf32>
    %938 = arith.addf %930, %937 : vector<16x128xf32>
    %c0_566 = arith.constant 0 : index
    %939 = arith.index_cast %c6_i32_508 : i32 to index
    %c0_567 = arith.constant 0 : index
    %c0_568 = arith.constant 0 : index
    %940 = vector.load %arg9[%c0_566, %939, %c0_567, %c0_568] : memref<1x8x16x128xf32, #tpu.memory_space<vmem>>, vector<1x1x16x128xf32>
    %941 = vector.shape_cast %940 : vector<1x1x16x128xf32> to vector<16x128xf32>
    %942 = vector.shape_cast %938 : vector<16x128xf32> to vector<1x1x16x128xf32>
    tpu.vector_store %arg9[%c0_566, %939, %c0_567, %c0_568], %942 {strides = array<i32>} : memref<1x8x16x128xf32, #tpu.memory_space<vmem>>, vector<1x1x16x128xf32>,
    %c7_i32_569 = arith.constant 7 : i32
    %cst_570 = arith.constant 0.000000e+00 : f32
    %943 = vector.broadcast %cst_570 : f32 to vector<16x24xf32>
    %c1_i32_571 = arith.constant 1 : i32
    %944 = arith.muli %c7_i32_569, %c1_i32_571 : i32
    %c0_i32_572 = arith.constant 0 : i32
    %945 = arith.addi %944, %c0_i32_572 : i32
    %c0_573 = arith.constant 0 : index
    %c0_574 = arith.constant 0 : index
    %946 = vector.load %arg5[%c0_573, %c0_574] : memref<9x24xf32, #tpu.memory_space<vmem>>, vector<1x24xf32>
    %947 = arith.index_cast %945 : i32 to index
    %c0_575 = arith.constant 0 : index
    %c0_576 = arith.constant 0 : index
    %948 = vector.load %arg10[%947, %c0_575, %c0_576] : memref<10x24x24xf32, #tpu.memory_space<vmem>>, vector<1x16x24xf32>
    %949 = vector.shape_cast %948 : vector<1x16x24xf32> to vector<16x24xf32>
    %950 = vector.broadcast %946 : vector<1x24xf32> to vector<16x24xf32>
    %951 = arith.mulf %949, %950 : vector<16x24xf32>
    %952 = arith.addf %943, %951 : vector<16x24xf32>
    %c1_577 = arith.constant 1 : index
    %c0_578 = arith.constant 0 : index
    %953 = vector.load %arg5[%c1_577, %c0_578] : memref<9x24xf32, #tpu.memory_space<vmem>>, vector<1x24xf32>
    %954 = arith.index_cast %945 : i32 to index
    %c1_579 = arith.constant 1 : index
    %c0_580 = arith.constant 0 : index
    %955 = vector.load %arg10[%954, %c1_579, %c0_580] : memref<10x24x24xf32, #tpu.memory_space<vmem>>, vector<1x16x24xf32>
    %956 = vector.shape_cast %955 : vector<1x16x24xf32> to vector<16x24xf32>
    %957 = vector.broadcast %953 : vector<1x24xf32> to vector<16x24xf32>
    %958 = arith.mulf %956, %957 : vector<16x24xf32>
    %959 = arith.addf %952, %958 : vector<16x24xf32>
    %c2_581 = arith.constant 2 : index
    %c0_582 = arith.constant 0 : index
    %960 = vector.load %arg5[%c2_581, %c0_582] : memref<9x24xf32, #tpu.memory_space<vmem>>, vector<1x24xf32>
    %961 = arith.index_cast %945 : i32 to index
    %c2_583 = arith.constant 2 : index
    %c0_584 = arith.constant 0 : index
    %962 = vector.load %arg10[%961, %c2_583, %c0_584] : memref<10x24x24xf32, #tpu.memory_space<vmem>>, vector<1x16x24xf32>
    %963 = vector.shape_cast %962 : vector<1x16x24xf32> to vector<16x24xf32>
    %964 = vector.broadcast %960 : vector<1x24xf32> to vector<16x24xf32>
    %965 = arith.mulf %963, %964 : vector<16x24xf32>
    %966 = arith.addf %959, %965 : vector<16x24xf32>
    %c1_i32_585 = arith.constant 1 : i32
    %967 = arith.muli %c7_i32_569, %c1_i32_585 : i32
    %c1_i32_586 = arith.constant 1 : i32
    %968 = arith.addi %967, %c1_i32_586 : i32
    %c3_587 = arith.constant 3 : index
    %c0_588 = arith.constant 0 : index
    %969 = vector.load %arg5[%c3_587, %c0_588] : memref<9x24xf32, #tpu.memory_space<vmem>>, vector<1x24xf32>
    %970 = arith.index_cast %968 : i32 to index
    %c0_589 = arith.constant 0 : index
    %c0_590 = arith.constant 0 : index
    %971 = vector.load %arg10[%970, %c0_589, %c0_590] : memref<10x24x24xf32, #tpu.memory_space<vmem>>, vector<1x16x24xf32>
    %972 = vector.shape_cast %971 : vector<1x16x24xf32> to vector<16x24xf32>
    %973 = vector.broadcast %969 : vector<1x24xf32> to vector<16x24xf32>
    %974 = arith.mulf %972, %973 : vector<16x24xf32>
    %975 = arith.addf %966, %974 : vector<16x24xf32>
    %c4_591 = arith.constant 4 : index
    %c0_592 = arith.constant 0 : index
    %976 = vector.load %arg5[%c4_591, %c0_592] : memref<9x24xf32, #tpu.memory_space<vmem>>, vector<1x24xf32>
    %977 = arith.index_cast %968 : i32 to index
    %c1_593 = arith.constant 1 : index
    %c0_594 = arith.constant 0 : index
    %978 = vector.load %arg10[%977, %c1_593, %c0_594] : memref<10x24x24xf32, #tpu.memory_space<vmem>>, vector<1x16x24xf32>
    %979 = vector.shape_cast %978 : vector<1x16x24xf32> to vector<16x24xf32>
    %980 = vector.broadcast %976 : vector<1x24xf32> to vector<16x24xf32>
    %981 = arith.mulf %979, %980 : vector<16x24xf32>
    %982 = arith.addf %975, %981 : vector<16x24xf32>
    %c5_595 = arith.constant 5 : index
    %c0_596 = arith.constant 0 : index
    %983 = vector.load %arg5[%c5_595, %c0_596] : memref<9x24xf32, #tpu.memory_space<vmem>>, vector<1x24xf32>
    %984 = arith.index_cast %968 : i32 to index
    %c2_597 = arith.constant 2 : index
    %c0_598 = arith.constant 0 : index
    %985 = vector.load %arg10[%984, %c2_597, %c0_598] : memref<10x24x24xf32, #tpu.memory_space<vmem>>, vector<1x16x24xf32>
    %986 = vector.shape_cast %985 : vector<1x16x24xf32> to vector<16x24xf32>
    %987 = vector.broadcast %983 : vector<1x24xf32> to vector<16x24xf32>
    %988 = arith.mulf %986, %987 : vector<16x24xf32>
    %989 = arith.addf %982, %988 : vector<16x24xf32>
    %c1_i32_599 = arith.constant 1 : i32
    %990 = arith.muli %c7_i32_569, %c1_i32_599 : i32
    %c2_i32_600 = arith.constant 2 : i32
    %991 = arith.addi %990, %c2_i32_600 : i32
    %c6_601 = arith.constant 6 : index
    %c0_602 = arith.constant 0 : index
    %992 = vector.load %arg5[%c6_601, %c0_602] : memref<9x24xf32, #tpu.memory_space<vmem>>, vector<1x24xf32>
    %993 = arith.index_cast %991 : i32 to index
    %c0_603 = arith.constant 0 : index
    %c0_604 = arith.constant 0 : index
    %994 = vector.load %arg10[%993, %c0_603, %c0_604] : memref<10x24x24xf32, #tpu.memory_space<vmem>>, vector<1x16x24xf32>
    %995 = vector.shape_cast %994 : vector<1x16x24xf32> to vector<16x24xf32>
    %996 = vector.broadcast %992 : vector<1x24xf32> to vector<16x24xf32>
    %997 = arith.mulf %995, %996 : vector<16x24xf32>
    %998 = arith.addf %989, %997 : vector<16x24xf32>
    %c7_605 = arith.constant 7 : index
    %c0_606 = arith.constant 0 : index
    %999 = vector.load %arg5[%c7_605, %c0_606] : memref<9x24xf32, #tpu.memory_space<vmem>>, vector<1x24xf32>
    %1000 = arith.index_cast %991 : i32 to index
    %c1_607 = arith.constant 1 : index
    %c0_608 = arith.constant 0 : index
    %1001 = vector.load %arg10[%1000, %c1_607, %c0_608] : memref<10x24x24xf32, #tpu.memory_space<vmem>>, vector<1x16x24xf32>
    %1002 = vector.shape_cast %1001 : vector<1x16x24xf32> to vector<16x24xf32>
    %1003 = vector.broadcast %999 : vector<1x24xf32> to vector<16x24xf32>
    %1004 = arith.mulf %1002, %1003 : vector<16x24xf32>
    %1005 = arith.addf %998, %1004 : vector<16x24xf32>
    %c8_609 = arith.constant 8 : index
    %c0_610 = arith.constant 0 : index
    %1006 = vector.load %arg5[%c8_609, %c0_610] : memref<9x24xf32, #tpu.memory_space<vmem>>, vector<1x24xf32>
    %1007 = arith.index_cast %991 : i32 to index
    %c2_611 = arith.constant 2 : index
    %c0_612 = arith.constant 0 : index
    %1008 = vector.load %arg10[%1007, %c2_611, %c0_612] : memref<10x24x24xf32, #tpu.memory_space<vmem>>, vector<1x16x24xf32>
    %1009 = vector.shape_cast %1008 : vector<1x16x24xf32> to vector<16x24xf32>
    %1010 = vector.broadcast %1006 : vector<1x24xf32> to vector<16x24xf32>
    %1011 = arith.mulf %1009, %1010 : vector<16x24xf32>
    %1012 = arith.addf %1005, %1011 : vector<16x24xf32>
    %c0_613 = arith.constant 0 : index
    %c0_614 = arith.constant 0 : index
    %1013 = vector.load %arg6[%c0_613, %c0_614] : memref<1x24xf32, #tpu.memory_space<vmem>>, vector<1x24xf32>
    %1014 = vector.broadcast %1013 : vector<1x24xf32> to vector<16x24xf32>
    %1015 = arith.addf %1012, %1014 : vector<16x24xf32>
    %cst_615 = arith.constant 0.000000e+00 : f32
    %cst_616 = arith.constant 6.000000e+00 : f32
    %1016 = vector.broadcast %cst_615 : f32 to vector<16x24xf32>
    %1017 = arith.maximumf %1016, %1015 : vector<16x24xf32>
    %1018 = vector.broadcast %cst_616 : f32 to vector<16x24xf32>
    %1019 = arith.minimumf %1018, %1017 : vector<16x24xf32>
    %1020 = arith.truncf %1019 : vector<16x24xf32> to vector<16x24xbf16>
    %c0_617 = arith.constant 0 : index
    %c0_618 = arith.constant 0 : index
    %1021 = vector.load %arg7[%c0_617, %c0_618] : memref<24x128xbf16, #tpu.memory_space<vmem>>, vector<24x128xbf16>
    %cst_619 = arith.constant dense<0.000000e+00> : vector<16x128xf32>
    %1022 = tpu.matmul %1020, %1021, %cst_619 {dimension_numbers = #tpu.dot_dimension_numbers<[1], [0], [0], [1], [0, 0, 1, 1], [], []>} : vector<16x24xbf16>, vector<24x128xbf16>, vector<16x128xf32> -> vector<16x128xf32>
    %c0_620 = arith.constant 0 : index
    %c0_621 = arith.constant 0 : index
    %1023 = vector.load %arg8[%c0_620, %c0_621] : memref<1x128xf32, #tpu.memory_space<vmem>>, vector<1x128xf32>
    %1024 = vector.broadcast %1023 : vector<1x128xf32> to vector<16x128xf32>
    %1025 = arith.addf %1022, %1024 : vector<16x128xf32>
    %1026 = arith.addi %1, %c7_i32_569 : i32
    %c1_i32_622 = arith.constant 1 : i32
    %1027 = arith.addi %1026, %c1_i32_622 : i32
    %c0_623 = arith.constant 0 : index
    %1028 = arith.index_cast %1027 : i32 to index
    %c1_624 = arith.constant 1 : index
    %c0_625 = arith.constant 0 : index
    %1029 = vector.load %arg2[%c0_623, %1028, %c1_624, %c0_625] : memref<1x18x24x4xf32, #tpu.memory_space<vmem>>, vector<1x1x16x4xf32>
    %1030 = vector.shape_cast %1029 : vector<1x1x16x4xf32> to vector<16x4xf32>
    %cst_626 = arith.constant 0.000000e+00 : f32
    %1031 = vector.broadcast %cst_626 : f32 to vector<16x124xf32>
    %1032 = tpu.concatenate %1030, %1031 in 1 : vector<16x4xf32>, vector<16x124xf32> -> vector<16x128xf32>
    %1033 = arith.addf %1025, %1032 : vector<16x128xf32>
    %c0_627 = arith.constant 0 : index
    %1034 = arith.index_cast %c7_i32_569 : i32 to index
    %c0_628 = arith.constant 0 : index
    %c0_629 = arith.constant 0 : index
    %1035 = vector.load %arg9[%c0_627, %1034, %c0_628, %c0_629] : memref<1x8x16x128xf32, #tpu.memory_space<vmem>>, vector<1x1x16x128xf32>
    %1036 = vector.shape_cast %1035 : vector<1x1x16x128xf32> to vector<16x128xf32>
    %1037 = vector.shape_cast %1033 : vector<16x128xf32> to vector<1x1x16x128xf32>
    tpu.vector_store %arg9[%c0_627, %1034, %c0_628, %c0_629], %1037 {strides = array<i32>} : memref<1x8x16x128xf32, #tpu.memory_space<vmem>>, vector<1x1x16x128xf32>,
    %c8_i32_630 = arith.constant 8 : i32
    return
  }
  func.func @transform_0(%arg0: i32, %arg1: i32) -> (i32, i32, i32, i32) {
    %c0_i32 = arith.constant 0 : i32
    %c0_i32_0 = arith.constant 0 : i32
    %c0_i32_1 = arith.constant 0 : i32
    %c0_i32_2 = arith.constant 0 : i32
    return %arg0, %c0_i32, %c0_i32_0, %c0_i32_1 : i32, i32, i32, i32
  }
  func.func @transform_1(%arg0: i32, %arg1: i32) -> (i32, i32) {
    %c0_i32 = arith.constant 0 : i32
    %c0_i32_0 = arith.constant 0 : i32
    %c0_i32_1 = arith.constant 0 : i32
    return %c0_i32, %c0_i32_0 : i32, i32
  }
  func.func @transform_2(%arg0: i32, %arg1: i32) -> (i32, i32) {
    %c0_i32 = arith.constant 0 : i32
    %c0_i32_0 = arith.constant 0 : i32
    %c0_i32_1 = arith.constant 0 : i32
    return %c0_i32, %c0_i32_0 : i32, i32
  }
  func.func @transform_3(%arg0: i32, %arg1: i32) -> (i32, i32) {
    %c0_i32 = arith.constant 0 : i32
    %c0_i32_0 = arith.constant 0 : i32
    %c0_i32_1 = arith.constant 0 : i32
    return %c0_i32, %c0_i32_0 : i32, i32
  }
  func.func @transform_4(%arg0: i32, %arg1: i32) -> (i32, i32) {
    %c0_i32 = arith.constant 0 : i32
    %c0_i32_0 = arith.constant 0 : i32
    %c0_i32_1 = arith.constant 0 : i32
    return %c0_i32, %c0_i32_0 : i32, i32
  }
  func.func @transform_5(%arg0: i32, %arg1: i32) -> (i32, i32) {
    %c0_i32 = arith.constant 0 : i32
    %c0_i32_0 = arith.constant 0 : i32
    %c0_i32_1 = arith.constant 0 : i32
    return %c0_i32, %c0_i32_0 : i32, i32
  }
  func.func @transform_6(%arg0: i32, %arg1: i32) -> (i32, i32) {
    %c0_i32 = arith.constant 0 : i32
    %c0_i32_0 = arith.constant 0 : i32
    %c0_i32_1 = arith.constant 0 : i32
    return %c0_i32, %c0_i32_0 : i32, i32
  }
  func.func @transform_7(%arg0: i32, %arg1: i32) -> (i32, i32, i32, i32) {
    %c0_i32 = arith.constant 0 : i32
    %c0_i32_0 = arith.constant 0 : i32
    %c0_i32_1 = arith.constant 0 : i32
    return %arg0, %arg1, %c0_i32, %c0_i32_0 : i32, i32, i32, i32
  }
}

</mosaic_0001>

<bundles_post_ra>
// kernel: tpu_custom_call.1
= control target key start
LH: loop header
LB: loop body
LE: loop exit
PB: predicated region body
PF: predicated region fallthrough
CT: control target
= control target key end

     0   :  { %s4942_s0 = inlined_call_operand.vmem [shape: f32[2,18,24,4], index: 0, kind: input, shape index: {}]   ;;  %s4943_s1 = inlined_call_operand.vmem [shape: bf16[4,24], index: 1, kind: input, shape index: {}]   ;;  %s4944_s2 = inlined_call_operand.vmem [shape: f32[1,24], index: 2, kind: input, shape index: {}]   ;;  %s4945_s3 = inlined_call_operand.vmem [shape: f32[9,24], index: 3, kind: input, shape index: {}]   ;;  %s4946_s4 = inlined_call_operand.vmem [shape: f32[1,24], index: 4, kind: input, shape index: {}]   ;;  %s4947_s5 = inlined_call_operand.vmem [shape: bf16[24,128], index: 5, kind: input, shape index: {}]   ;;  %s4948_s6 = inlined_call_operand.vmem [shape: f32[1,128], index: 6, kind: input, shape index: {}]   ;;  %s4949_s7 = inlined_call_operand.hbm [shape: f32[2,16,16,128], index: 7, kind: output, shape index: {}]  }
   0x1   :  { %4951 = sst [smem:[#allocation7_spill]] %s4942_s0 }
   0x2   :  { %4952 = sst [smem:[#allocation8_spill]] %s4943_s1 }
   0x3   :  { %4953 = sst [smem:[#allocation9_spill]] %s4944_s2 }
   0x4   :  { %12 = vsyncpa [#allocation4], 0 }
   0x5   :  { %14 = vsyncpa [#allocation4 + $0x1], 0  ;;  %s3626_s24 = smov 0   ;;  %s3628_s25 = smov 0  }
   0x6   :  { %s3630_s26 = smov 0   ;;  %s3632_s27 = smov 0  }
   0x7   :  { %s3634_s28 = smov 0   ;;  %s3636_s29 = smov 0  }
   0x8   :  { %s3638_s30 = smov 0   ;;  %s3640_s8 = smov 0  }
   0x9 LB: > { %s2963_s9 = sadd.s32 4294967295, %s3579_s8   ;;  %s2964_s10 = sadd.s32 4294967294, %s3579_s8   ;;  %s3579_s8 = sphi %s3640_s8, %s20_s8   ;;  %s3575_s30 = sphi %s3638_s30, %s5040_s30   ;;  %s3571_s29 = sphi %s3636_s29, %s5039_s29   ;;  %s3567_s28 = sphi %s3634_s28, %s5038_s28   ;;  %s3563_s27 = sphi %s3632_s27, %s5037_s27   ;;  %s3559_s26 = sphi %s3630_s26, %s5036_s26   ;;  %s3555_s25 = sphi %s3628_s25, %s5035_s25   ;;  %s3551_s24 = sphi %s3626_s24, %s5034_s24  }
   0xa   : > { %s29_s11 = sadd.s32 1, %s3571_s29  ;;  %s32_s12 = sadd.s32 1, %s3575_s30 }
   0xb   : > { %p30_p0 = scmp.ge.s32.totalorder %s29_s11, 2  ;;  %p203_p1 = scmp.ne.s32.totalorder %s3559_s26, %s3555_s25 }
   0xc   : > { %p204_p2 = scmp.eq.s32.totalorder %s2963_s9, 3  ;;  %p209_p5 = scmp.ne.s32.totalorder %s3555_s25, %s3551_s24 }
   0xd   : > { %s5042_s11 = smov (%p30_p0, %s29_s11), 0  ;;  %s5044_s12 = smov (!%p30_p0, %s32_s12), %s3575_s30 }
   0xe   : > { %s189_s13 = ssub.s32 %s3571_s29, %s5042_s11  ;;  %p3677_p3 = por %p204_p2, %p203_p1 }
   0xf   : > { %p34_p4 = scmp.ge.s32.totalorder %s5044_s12, 2  ;;  %p210_p6 = scmp.eq.s32.totalorder %s2964_s10, 3 }
  0x10   : > { %p2967_p7 = scmp.ge.s32.totalorder %s3579_s8, 1  ;;  %p254_p9 = scmp.lt.s32.totalorder %s3579_s8, 5 }
  0x11   : > { %s5046_s12 = smov (%p34_p4, %s5044_s12), 0  ;;  %p3686_p8 = por %p210_p6, %p209_p5 }
  0x12   : > { %4955 = sst [smem:[#allocation6_spill]] %s5046_s12  ;;  %s188_s16 = ssub.s32 %s3575_s30, %s5046_s12 }
  0x13   : > { %s193_s17 = sadd.s32 1, %s3559_s26  ;;  %s190_s18 = sor.u32 %s189_s13, %s188_s16 }
  0x14   : > { %p255_p10 = pnand %p2967_p7, %p254_p9  ;;  %p191_p11 = scmp.eq.s32.totalorder %s190_s18, 0 }
  0x15   : > { %s4957_s1 = sld [smem:[#allocation8_spill]] (!%p255_p10)  ;;  %p286_p12 = scmp.lt.s32.totalorder (!%p255_p10), %s3567_s28, 1 }
  0x16   : > { %s3695_s19 = scalar_select %p191_p11, %s3559_s26, %s193_s17  }
  0x17   : > { %258 = sbr.rel (%p255_p10) target bundleno = 578 (0x242), region = 48  ;;  %s4958_s0 = sld [smem:[#allocation7_spill]] (!%p255_p10) }
  0x18   : > { %s2971_s18 = smul.u32 (!%p255_p10), 192, %s3563_s27  ;;  %s3830_s9 = sshll.u32 (!%p255_p10), %s3563_s27, 3 }
  0x19   : > { %s410_s10 = sadd.s32 (!%p255_p10), 1, %s3830_s9  ;;  %p387_p13 = scmp.ge.s32.totalorder (!%p255_p10), %s3830_s9, 1 }
  0x1a   : > { %p388_p0 = scmp.le.s32.totalorder (!%p255_p10), %s3830_s9, 16  ;;  %p489_p1 = scmp.ge.s32.totalorder (!%p255_p10), %s410_s10, 1 }
  0x1b   : > { %p490_p2 = scmp.le.s32.totalorder (!%p255_p10), %s410_s10, 16  ;;  %s512_s16 = sadd.s32 (!%p255_p10), 2, %s3830_s9 }
  0x1c   : > { %v314_v0 = vld [vmem:[%s4957_s1] sm:$0x3]  ;;  %vm329_vm0 = vcmask 1041408   ;;  %s287_s13 = scalar_select %p286_p12, %s3567_s28, 1  ;;  %vm322_vm1 = vcmask 31744   ;;  %vm1463_vm2 = vcmask 1043456  }
  0x1d   : > { %v418_v1 = vld [vmem:[%s4957_s1] sm:$0x3]  ;;  %3385 = vmatprep.subr.msk.bf16.mxu0 %vm329_vm0, %v314_v0  ;;  %v331_v2 = vsel %vm329_vm0, %v314_v0, 0  ;;  %vm3582_vm3 = vmmov 0   ;;  %p3835_p4 = pnand %p388_p0, %p387_p13  ;;  %p491_p5 = pnand %p490_p2, %p489_p1  ;;  %vm406_vm9 = vcmask 195584  }
  0x1e   : > { %3386 = vmatprep.subr.msk.bf16.mxu1 %vm329_vm0, %v418_v1  ;;  %v433_v3 = vsel %vm329_vm0, %v418_v1, 0  ;;  %v520_v4 = vld [vmem:[%s4957_s1] sm:$0x3]  ;;  %3262 = vmatpush3.bf16.msra.mxu0 %v331_v2  ;;  %s3395_s20 = smul.u32 432, %s287_s13  ;;  %p3842_p6 = scmp.ge.s32.totalorder %s512_s16, 1 }
  0x1f   : > { %3268 = vmatpush3.bf16.msra.mxu1 %v433_v3  ;;  %v622_v5 = vld [vmem:[%s4957_s1] sm:$0x3]  ;;  %3387 = vmatprep.subr.msk.bf16.mxu0 %vm329_vm0, %v520_v4  ;;  %v535_v16 = vsel %vm329_vm0, %v520_v4, 0  ;;  %s2975_s17 = scalar_select %p3835_p4, 0, 1 }
  0x20   : > { %3388 = vmatprep.subr.msk.bf16.mxu1 %vm329_vm0, %v622_v5  ;;  %s290_s23 = scalar_lea.vmem %s4958_s0, %s3395_s20  ;;  %v637_v20 = vsel %vm329_vm0, %v622_v5, 0  ;;  %v724_v24 = vld [vmem:[%s4957_s1] sm:$0x3]  ;;  %s614_s20 = sadd.s32 3, %s3830_s9 }
  0x21   : > { %s3721_s12 = scalar_lea.vmem %s290_s23, %s2971_s18  ;;  %v826_v26 = vld [vmem:[%s4957_s1] sm:$0x3]  ;;  %v739_v34 = vsel %vm329_vm0, %v724_v24, 0  ;;  %p3849_p7 = scmp.le.s32.totalorder %s512_s16, 16 }
  0x22   : > { %v309_v6 = vld [vmem:[%s3721_s12] sm:$0xff]  ;;  %v310_v7 = vld [vmem:[%s3721_s12 + $0x8] sm:$0xff]  ;;  %v2978_v8 = vld [vmem:[%s3721_s12 + $0x18] sm:$0xff]  ;;  %v841_v35 = vsel %vm329_vm0, %v826_v26, 0  ;;  %s3847_s21 = scalar_select %p491_p5, 0, 1 }
  0x23   : > { %v312_v9 = vpack.c.bf16 %v310_v7, %v309_v6  ;;  %v2979_v10 = vld [vmem:[%s3721_s12 + $0x20] sm:$0xff]  ;;  %v311_v11 = vld [vmem:[%s3721_s12 + $0x10] sm:$0xff]  ;;  %v2980_v12 = vld [vmem:[%s3721_s12 + $0x28] sm:$0xff]  ;;  %v3581_v7 = vmov 0.0   ;;  %s716_s23 = sadd.s32 4, %s3830_s9  ;;  %p3854_p9 = scmp.ge.s32.totalorder %s614_s20, 1 }
  0x24   : > { %v416_v13 = vpack.c.bf16 %v2979_v10, %v2978_v8  ;;  %v313_v14 = vpack.c.bf16 %v311_v11, %v311_v11  ;;  %v417_v15 = vpack.c.bf16 %v2980_v12, %v2980_v12  ;;  %v2987_v17 = vld [vmem:[%s3721_s12 + $0x30] sm:$0xff]  ;;  %v2988_v18 = vld [vmem:[%s3721_s12 + $0x38] sm:$0xff]  ;;  %v2996_v19 = vld [vmem:[%s3721_s12 + $0x48] sm:$0xff]  ;;  %p3858_p10 = scmp.le.s32.totalorder %s614_s20, 16  ;;  %s818_s0 = sadd.s32 5, %s3830_s9 }
  0x25   : > { %3263 = vmatprep.mubr.msk.bf16.mxu0 %vm322_vm1, %v312_v9  ;;  %v518_v21 = vpack.c.bf16 %v2988_v18, %v2987_v17  ;;  %v2997_v22 = vld [vmem:[%s3721_s12 + $0x50] sm:$0xff]  ;;  %v2989_v25 = vld [vmem:[%s3721_s12 + $0x40] sm:$0xff]  ;;  %v2998_v27 = vld [vmem:[%s3721_s12 + $0x58] sm:$0xff]  ;;  %p795_p11 = scmp.ge.s32.totalorder %s716_s23, 1  ;;  %p796_p12 = scmp.le.s32.totalorder %s716_s23, 16  ;;  %v3899_v17 = vstv %s2975_s17 }
  0x26   : > { %3269 = vmatprep.mubr.msk.bf16.mxu1 %vm322_vm1, %v416_v13  ;;  %3264 = vmatmul.mubr.msk.bf16.vlgmr.msra.gmra.mxu0 %vm322_vm1, %v313_v14  ;;  %v620_v23 = vpack.c.bf16 %v2997_v22, %v2996_v19  ;;  %v3005_v28 = vld [vmem:[%s3721_s12 + $0x60] sm:$0xff]  ;;  %v3006_v29 = vld [vmem:[%s3721_s12 + $0x68] sm:$0xff]  ;;  %v519_v30 = vpack.c.bf16 %v2989_v25, %v2989_v25  ;;  %v3014_v31 = vld [vmem:[%s3721_s12 + $0x78] sm:$0xff]  ;;  %v621_v33 = vpack.c.bf16 %v2998_v27, %v2998_v27  ;;  %v294_v13 = vlaneseq  ;;  %p593_p13 = pnand %p3849_p7, %p3842_p6  ;;  %p3867_p0 = scmp.ge.s32.totalorder %s818_s0, 1 }
  0x27   : > { %3270 = vmatmul.mubr.msk.bf16.vlgmr.msra.gmra.mxu1 %vm322_vm1, %v417_v15  ;;  %3274 = vmatpush3.bf16.msra.mxu0 %v535_v16  ;;  %v3015_v32 = vld [vmem:[%s3721_s12 + $0x80] sm:$0xff]  ;;  %v722_v36 = vpack.c.bf16 %v3006_v29, %v3005_v28  ;;  %v3007_v39 = vld [vmem:[%s3721_s12 + $0x70] sm:$0xff]  ;;  %v3016_v41 = vld [vmem:[%s3721_s12 + $0x88] sm:$0xff]  ;;  %p3871_p1 = scmp.le.s32.totalorder %s818_s0, 16  ;;  %p695_p2 = pnand %p3858_p10, %p3854_p9  ;;  %v494_v18 = vstv %s3847_s21  ;;  %vm393_vm5 = vcmp.eq.s32.totalorder %v3899_v17, 1 }
  0x28   : > { %3280 = vmatpush3.bf16.msra.mxu1 %v637_v20  ;;  %3275 = vmatprep.mubr.msk.bf16.mxu0 %vm322_vm1, %v518_v21  ;;  %v928_v37 = vld [vmem:[%s4957_s1] sm:$0x3]  ;;  %v824_v38 = vpack.c.bf16 %v3015_v32, %v3014_v31  ;;  %v3023_v42 = vld [vmem:[%s3721_s12 + $0x90] sm:$0xff]  ;;  %v3024_v43 = vld [vmem:[%s3721_s12 + $0x98] sm:$0xff]  ;;  %v723_v45 = vpack.c.bf16 %v3007_v39, %v3007_v39  ;;  %v825_v47 = vpack.c.bf16 %v3016_v41, %v3016_v41  ;;  %v3879_v14 = vshrl.u32 %v294_v13, 7  ;;  %p797_p4 = pnand %p796_p12, %p795_p11  ;;  %s4966_s2 = sld [smem:[#allocation9_spill]] }
  0x29   : > { %3281 = vmatprep.mubr.msk.bf16.mxu1 %vm322_vm1, %v620_v23  ;;  %3389 = vmatprep.subr.msk.bf16.mxu0 %vm329_vm0, %v724_v24  ;;  %v1030_v40 = vld [vmem:[%s4957_s1] sm:$0x3]  ;;  %v3032_v44 = vld [vmem:[%s3721_s12 + $0xa8] sm:$0xff]  ;;  %v3033_v46 = vld [vmem:[%s3721_s12 + $0xb0] sm:$0xff]  ;;  %v943_v48 = vsel %vm329_vm0, %v928_v37, 0  ;;  %v926_v49 = vpack.c.bf16 %v3024_v43, %v3023_v42  ;;  %p899_p5 = pnand %p3871_p1, %p3867_p0  ;;  %s920_s13 = sadd.s32 6, %s3830_s9 }
  0x2a   : > { %3390 = vmatprep.subr.msk.bf16.mxu1 %vm329_vm0, %v826_v26  ;;  %v1045_v50 = vsel %vm329_vm0, %v1030_v40, 0  ;;  %v1028_v51 = vpack.c.bf16 %v3033_v46, %v3032_v44  ;;  %v1132_v52 = vld [vmem:[%s4957_s1] sm:$0x3]  ;;  %v3034_v55 = vld [vmem:[%s3721_s12 + $0xb8] sm:$0xff]  ;;  %v3042_v57 = vld [vmem:[%s3721_s12 + $0xc8] sm:$0xff]  ;;  %v3890_v15 = vadd.s32 16, %v3879_v14 }
  0x2b   : > { %v3025_v53 = vld [vmem:[%s3721_s12 + $0xa0] sm:$0xff]  ;;  %v3050_v59 = vld [vmem:[%s3721_s12 + $0xd8] sm:$0xff]  ;;  %v1029_v61 = vpack.c.bf16 %v3034_v55, %v3034_v55  ;;  %v1147_v62 = vsel %vm329_vm0, %v1132_v52, 0  ;;  %v3043_v2 = vld [vmem:[%s3721_s12 + $0xd0] sm:$0xff]  ;;  %s3881_s18 = scalar_select %p593_p13, 0, 1 }
  0x2c   : > { %v1234_v54 = vld [vmem:[%s4957_s1] sm:$0x3]  ;;  %v927_v58 = vpack.c.bf16 %v3025_v53, %v3025_v53  ;;  %v3052_v3 = vld [vmem:[%s3721_s12 + $0xe8] sm:$0xff]  ;;  %v1131_v4 = vpack.c.bf16 %v3043_v2, %v3043_v2  ;;  %s3887_s22 = scalar_select %p695_p2, 0, 1  ;;  %vm303_vm4 = vcmp.le.s32.totalorder %v3890_v15, 16 }
  0x2d   : > { %v3041_v56 = vld [vmem:[%s3721_s12 + $0xc0] sm:$0xff]  ;;  %v1249_v0 = vsel %vm329_vm0, %v1234_v54, 0  ;;  %v1233_v5 = vpack.c.bf16 %v3052_v3, %v3052_v3  ;;  %v3471_v6 = vld [vmem:[%s4947_s5 + $0x8] ss:$0 sps:$4 sm:$0xff]   ;;  %s3892_s0 = scalar_select %p797_p4, 0, 1  ;;  %vm3938_vm8 = vmand %vm303_vm4, %vm393_vm5  ;;  %v596_v32 = vstv %s3881_s18 }
  0x2e   : > { %3276 = vmatmul.mubr.msk.bf16.vlgmr.msra.gmra.mxu0 %vm322_vm1, %v519_v30  ;;  %v3051_v60 = vld [vmem:[%s3721_s12 + $0xe0] sm:$0xff]  ;;  %v1130_v63 = vpack.c.bf16 %v3042_v57, %v3041_v56  ;;  %v1465_v8 = vsel %vm1463_vm2, %v3471_v6, 0  ;;  %v3472_v9 = vld [vmem:[%s4947_s5 + $0x8] ss:$0 sps:$4 sm:$0xff]   ;;  %s3903_s16 = scalar_select %p899_p5, 0, 1 }
  0x2f   : > { %3282 = vmatmul.mubr.msk.bf16.vlgmr.msra.gmra.mxu1 %vm322_vm1, %v621_v33  ;;  %3286 = vmatpush3.bf16.msra.mxu0 %v739_v34  ;;  %v1232_v1 = vpack.c.bf16 %v3051_v60, %v3050_v59  ;;  %v3473_v10 = vld [vmem:[%s4947_s5] sm:$0xff]   ;;  %v1652_v11 = vsel %vm1463_vm2, %v3472_v9, 0  ;;  %s1022_s20 = sadd.s32 7, %s3830_s9  ;;  %p3909_p6 = scmp.ge.s32.totalorder %s920_s13, 1  ;;  %vm3915_vm6 = vcmp.eq.s32.totalorder %v494_v18, 1  ;;  %vm298_vm7 = vcmp.ge.s32.totalorder %v3879_v14, 1 }
  0x30   : > { %3292 = vmatpush3.bf16.msra.mxu1 %v841_v35  ;;  %3287 = vmatprep.mubr.msk.bf16.mxu0 %vm322_vm1, %v722_v36  ;;  %v3474_v12 = vld [vmem:[%s4947_s5] sm:$0xff]   ;;  %s1124_s17 = sadd.s32 8, %s3830_s9  ;;  %p3919_p7 = scmp.le.s32.totalorder %s920_s13, 16  ;;  %vm3956_vm10 = vmand %vm303_vm4, %vm3915_vm6  ;;  %vm3992_vm13 = vcmp.eq.s32.totalorder %v596_v32, 1  ;;  %v800_v57 = vstv %s3892_s0 }
  0x31   : > { %3293 = vmatprep.mubr.msk.bf16.mxu1 %vm322_vm1, %v824_v38  ;;  %3391 = vmatprep.subr.msk.bf16.mxu0 %vm329_vm0, %v928_v37  ;;  %v3897_v16 = vld [vmem:[%s4966_s2] ss:$0 sm:$0xff]  ;;  %s1226_s10 = sadd.s32 9, %s3830_s9  ;;  %p3926_p9 = scmp.ge.s32.totalorder %s1022_s20, 1  ;;  %v698_v37 = vstv %s3887_s22  ;;  %vm3973_vm11 = vmand %vm298_vm7, %vm393_vm5 }
  0x32   : > { %3392 = vmatprep.subr.msk.bf16.mxu1 %vm329_vm0, %v1030_v40  ;;  %p3930_p10 = scmp.le.s32.totalorder %s1022_s20, 16  ;;  %p3944_p11 = scmp.ge.s32.totalorder %s1124_s17, 1  ;;  %vm3987_vm12 = vmand %vm298_vm7, %vm3915_vm6  ;;  %vm4004_vm14 = vcmp.eq.s32.totalorder %v698_v37, 1  ;;  %v4119_v37 = vld [vmem:[%s4945_s3] ss:$0 sm:$0xff] }
  0x33   : > { %p3948_p12 = scmp.le.s32.totalorder %s1124_s17, 16  ;;  %p3961_p13 = scmp.ge.s32.totalorder %s1226_s10, 1  ;;  %vm4046_vm15 = vmand %vm303_vm4, %vm3992_vm13 }
  0x34   : > { %p3965_p0 = scmp.le.s32.totalorder %s1226_s10, 16  ;;  %p1001_p1 = pnand %p3919_p7, %p3909_p6 }
  0x35   : > { %p1103_p2 = pnand %p3930_p10, %p3926_p9  ;;  %p1205_p4 = pnand %p3948_p12, %p3944_p11 }
  0x36   : > { %3288 = vmatmul.mubr.msk.bf16.vlgmr.msra.gmra.mxu0 %vm322_vm1, %v723_v45  ;;  %p1307_p5 = pnand %p3965_p0, %p3961_p13  ;;  %s3206_s10 = sshll.u32 %s3563_s27, 4 }
  0x37   : > { %3294 = vmatmul.mubr.msk.bf16.vlgmr.msra.gmra.mxu1 %vm322_vm1, %v825_v47  ;;  %3298 = vmatpush3.bf16.msra.mxu0 %v943_v48  ;;  %s4031_s22 = scalar_select %p1001_p1, 0, 1 }
  0x38   : > { %3304 = vmatpush3.bf16.msra.mxu1 %v1045_v50  ;;  %3299 = vmatprep.mubr.msk.bf16.mxu0 %vm322_vm1, %v926_v49  ;;  %s4040_s0 = scalar_select %p1103_p2, 0, 1 }
  0x39   : > { %3305 = vmatprep.mubr.msk.bf16.mxu1 %vm322_vm1, %v1028_v51  ;;  %3393 = vmatprep.subr.msk.bf16.mxu0 %vm329_vm0, %v1132_v52  ;;  %s4060_s1 = scalar_select %p1205_p4, 0, 1 }
  0x3a   : > { %3394 = vmatprep.subr.msk.bf16.mxu1 %vm329_vm0, %v1234_v54  ;;  %vm4051_vm0 = vcmp.eq.s32.totalorder %v800_v57, 1  ;;  %s4081_s2 = scalar_select %p1307_p5, 0, 1 }
  0x3b   : > { %s3202_s9 = sshll.u32 %s3567_s28, 5 }
  0x3c   : > { %s2846_s13 = sadd.s32 %s3206_s10, %s3202_s9 }
  0x3d   : > { %s3203_s18 = sshll.u32 %s2846_s13, 7 }
  0x3e   : > { %3300 = vmatmul.mubr.msk.bf16.vlgmr.msra.gmra.mxu0 %vm322_vm1, %v927_v58 }
  0x3f   : > { %3306 = vmatmul.mubr.msk.bf16.vlgmr.msra.gmra.mxu1 %vm322_vm1, %v1029_v61  ;;  %3310 = vmatpush3.bf16.msra.mxu0 %v1147_v62  ;;  %v902_v62 = vstv %s3903_s16 }
  0x40   : > { %3316 = vmatpush3.bf16.msra.mxu1 %v1249_v0  ;;  %3311 = vmatprep.mubr.msk.bf16.mxu0 %vm322_vm1, %v1130_v63 }
  0x41   : > { %3317 = vmatprep.mubr.msk.bf16.mxu1 %vm322_vm1, %v1232_v1  ;;  %3321 = vmatprep.subr.bf16.mxu0 %v3581_v7 }
  0x42   : > { %3329 = vmatprep.subr.bf16.mxu1 %v3581_v7 }
  0x46   : > { %3312 = vmatmul.mubr.msk.bf16.vlgmr.msra.gmra.mxu0 %vm322_vm1, %v1131_v4 }
  0x47   : > { %3318 = vmatmul.mubr.msk.bf16.vlgmr.msra.gmra.mxu1 %vm322_vm1, %v1233_v5  ;;  %3322 = vmatpush3.bf16.msra.mxu0 %v1465_v8 }
  0x48   : > { %3323 = vmatprep.subr.bf16.mxu0 %v3581_v7  ;;  %3330 = vmatpush3.bf16.msra.mxu1 %v1652_v11 }
  0x49   : > { %3331 = vmatprep.subr.bf16.mxu1 %v3581_v7  ;;  %3325 = vmatprep.mubr.msk.bf16.mxu0 %vm3582_vm3, %v3581_v7 }
  0x4a   : > { %3333 = vmatprep.mubr.msk.bf16.mxu1 %vm3582_vm3, %v3581_v7 }
  0x4b   : > { %3324 = vmatpush3.bf16.msra.mxu0 %v3473_v10 }
  0x4c   : > { %3337 = vmatprep.subr.bf16.mxu0 %v3581_v7  ;;  %3332 = vmatpush3.bf16.msra.mxu1 %v3474_v12 }
  0x4d   : > { %3345 = vmatprep.subr.bf16.mxu1 %v3581_v7 }
  0xe6   : > { %v3265_v19 = vpop.f32.mrf.mxu0 }
  0xe7   : > { %v376_v20 = vadd.f32 %v3265_v19, %v3897_v16  ;;  %v3271_v21 = vpop.f32.mrf.mxu1 }
  0xe8   : > { %v478_v22 = vadd.f32 %v3271_v21, %v3897_v16  ;;  %v367_v24 = vpop.f32.mrf.mxu0 }
  0xe9   : > { %v383_v25 = vmax.f32 %v376_v20, 0.0  ;;  %v368_v26 = vadd.f32 %v3897_v16, %v367_v24  ;;  %v469_v27 = vpop.f32.mrf.mxu1 }
  0xea   : > { %v485_v29 = vmax.f32 %v478_v22, 0.0  ;;  %v470_v30 = vadd.f32 %v3897_v16, %v469_v27  ;;  %v3266_v31 = vpop.f32.mrf.mxu0 }
  0xeb   : > { %v386_v33 = vmin.f32 %v383_v25, 6.0  ;;  %v381_v35 = vmax.f32 %v368_v26, 0.0  ;;  %v3272_v36 = vpop.f32.mrf.mxu1  ;;  %v1004_v25 = vstv %s4031_s22  ;;  %v3475_v26 = vld [vmem:[%s4947_s5 + $0x8] ss:$0 sps:$4 sm:$0xff]   ;;  %v1106_v31 = vstv %s4040_s0  ;;  %s4884_s22 = scalar_lea.hbm %s4949_s7, %s3203_s18 }
  0xec   : > { %v488_v38 = vmin.f32 %v485_v29, 6.0  ;;  %v483_v40 = vmax.f32 %v470_v30, 0.0  ;;  %v370_v41 = vpop.f32.mrf.mxu0  ;;  %v1208_v36 = vstv %s4060_s1  ;;  %s3583_s1 = smov [#allocation3]  }
  0xed   : > { %v405_v42 = vsel %vm3938_vm8, %v386_v33, 0.0  ;;  %v384_v43 = vmin.f32 %v381_v35, 6.0  ;;  %v371_v45 = vadd.f32 %v3897_v16, %v370_v41  ;;  %v472_v46 = vpop.f32.mrf.mxu1  ;;  %vm4068_vm8 = vmand %vm303_vm4, %vm4004_vm14  ;;  %s3491_s16 = sshll.u32 %s3583_s1, 4  ;;  %s3492_s16 = int_to_ptr.vmem [resolvable:$false] %s3491_s16 }
  0xee   : > { %409 = vst.msk [vmem:[#allocation2 + $0x10] sm:$0xff] %vm406_vm9, %v405_v42  ;;  %v507_v48 = vsel %vm3956_vm10, %v488_v38, 0.0  ;;  %v486_v49 = vmin.f32 %v483_v40, 6.0  ;;  %v473_v50 = vadd.f32 %v3897_v16, %v472_v46  ;;  %v3277_v51 = vpop.f32.mrf.mxu0  ;;  %vm4072_vm10 = vcmp.eq.s32.totalorder %v902_v62, 1  ;;  %s3493_s23 = scalar_lea.vmem %s3492_s16, 4096 }
  0xef   : > { %511 = vst.msk [vmem:[#allocation2 + $0x28] sm:$0xff] %vm406_vm9, %v507_v48  ;;  %v403_v53 = vsel %vm3973_vm11, %v384_v43, 0.0  ;;  %v382_v54 = vmax.f32 %v371_v45, 0.0  ;;  %v580_v55 = vadd.f32 %v3277_v51, %v3897_v16  ;;  %v3283_v56 = vpop.f32.mrf.mxu1  ;;  %vm4125_vm11 = vcmp.eq.s32.totalorder %v1004_v25, 1  ;;  %v4133_v45 = vld [vmem:[%s4945_s3 + $0x3] ss:$0 sm:$0xff] }
  0xf0   : > { %407 = vst.msk [vmem:[#allocation2] sm:$0xff] %vm406_vm9, %v403_v53  ;;  %v505_v58 = vsel %vm3987_vm12, %v486_v49, 0.0  ;;  %v484_v59 = vmax.f32 %v473_v50, 0.0  ;;  %v682_v60 = vadd.f32 %v3283_v56, %v3897_v16  ;;  %v571_v61 = vpop.f32.mrf.mxu0  ;;  %v1310_v43 = vstv %s4081_s2  ;;  %s283_s2 = sand.u32 1, %s3555_s25  }
  0xf1   : > { %509 = vst.msk [vmem:[#allocation2 + $0x18] sm:$0xff] %vm406_vm9, %v505_v58  ;;  %v385_v63 = vmin.f32 %v382_v54, 6.0  ;;  %v587_v0 = vmax.f32 %v580_v55, 0.0  ;;  %v572_v1 = vadd.f32 %v3897_v16, %v571_v61  ;;  %v673_v2 = vpop.f32.mrf.mxu1  ;;  %vm4139_vm12 = vcmp.eq.s32.totalorder %v1106_v31, 1  ;;  %s2968_s17 = sshll.u32 %s283_s2, 7 }
  0xf2   : > { %v487_v3 = vmin.f32 %v484_v59, 6.0  ;;  %v689_v5 = vmax.f32 %v682_v60, 0.0  ;;  %v674_v6 = vadd.f32 %v3897_v16, %v673_v2  ;;  %v3278_v8 = vpop.f32.mrf.mxu0  ;;  %v4144_v54 = vsel %vm1463_vm2, %v3475_v26, 0  ;;  %v4169_v2 = vld [vmem:[%s4945_s3 + $0x1] ss:$0 sm:$0xff]  ;;  %s4818_s21 = scalar_lea.vmem [#allocation3], %s2968_s17 }
  0xf3   : > { %v404_v10 = vsel %vm393_vm5, %v385_v63, 0.0  ;;  %v590_v11 = vmin.f32 %v587_v0, 6.0  ;;  %v585_v13 = vmax.f32 %v572_v1, 0.0  ;;  %v3284_v18 = vpop.f32.mrf.mxu1  ;;  %vm4090_vm5 = vmand %vm298_vm7, %vm3992_vm13  ;;  %s2849_s20 = sshll.u32 %s4818_s21, 4  ;;  %s4886_s20 = int_to_ptr.vmem [resolvable:$true] %s2849_s20 }
  0xf4   : > { %408 = vst.msk [vmem:[#allocation2 + $0x8] sm:$0xff] %vm406_vm9, %v404_v10  ;;  %v506_v17 = vsel %vm3915_vm6, %v487_v3, 0.0  ;;  %v692_v20 = vmin.f32 %v689_v5, 6.0  ;;  %v687_v22 = vmax.f32 %v674_v6, 0.0  ;;  %v574_v24 = vpop.f32.mrf.mxu0  ;;  %vm4105_vm6 = vmand %vm298_vm7, %vm4004_vm14  ;;  %s3487_s0 = scalar_lea.vmem %s4886_s20, 2048  ;;  %p3494_p10 = scmp.lt.s32.totalorder %s4886_s20, %s3492_s16 }
  0xf5   : > { %510 = vst.msk [vmem:[#allocation2 + $0x20] sm:$0xff] %vm406_vm9, %v506_v17  ;;  %v609_v23 = vsel %vm4046_vm15, %v590_v11, 0.0  ;;  %v588_v27 = vmin.f32 %v585_v13, 6.0  ;;  %v575_v29 = vadd.f32 %v3897_v16, %v574_v24  ;;  %v676_v30 = vpop.f32.mrf.mxu1  ;;  %vm4151_vm15 = vmand %vm303_vm4, %vm4051_vm0  ;;  %p3488_p6 = scmp.ne.s32.totalorder %s4886_s20, %s3487_s0  ;;  %p3495_p11 = scmp.lt.s32.totalorder %s3493_s23, %s3487_s0 }
  0xf6   : > { %613 = vst.msk [vmem:[#allocation2 + $0x40] sm:$0xff] %vm406_vm9, %v609_v23  ;;  %v711_v32 = vsel %vm4068_vm8, %v692_v20, 0.0  ;;  %v690_v33 = vmin.f32 %v687_v22, 6.0  ;;  %v677_v34 = vadd.f32 %v3897_v16, %v676_v30  ;;  %v3289_v35 = vpop.f32.mrf.mxu0  ;;  %vm4161_vm8 = vmand %vm303_vm4, %vm4072_vm10 }
  0xf7   : > { %715 = vst.msk [vmem:[#allocation2 + $0x58] sm:$0xff] %vm406_vm9, %v711_v32  ;;  %v607_v38 = vsel %vm4090_vm5, %v588_v27, 0.0  ;;  %v586_v39 = vmax.f32 %v575_v29, 0.0  ;;  %v784_v40 = vadd.f32 %v3289_v35, %v3897_v16  ;;  %v3295_v41 = vpop.f32.mrf.mxu1  ;;  %v1329_v44 = vld [vmem:[#allocation2] sm:$0xff]  ;;  %vm4208_vm5 = vcmp.eq.s32.totalorder %v1208_v36, 1  ;;  %p3489_p7 = pnand %p3488_p6, %p3677_p3  ;;  %p3496_p12 = por %p3495_p11, %p3494_p10 }
  0xf8   : > { %611 = vst.msk [vmem:[#allocation2 + $0x30] sm:$0xff] %vm406_vm9, %v607_v38  ;;  %v709_v46 = vsel %vm4105_vm6, %v690_v33, 0.0  ;;  %v688_v48 = vmax.f32 %v677_v34, 0.0  ;;  %v886_v49 = vadd.f32 %v3295_v41, %v3897_v16  ;;  %v775_v50 = vpop.f32.mrf.mxu0  ;;  %v1362_v53 = vld [vmem:[#allocation2 + $0x18] sm:$0xff]  ;;  %v1335_v60 = vmul.f32 %v4119_v37, %v1329_v44  ;;  %v4216_v34 = vld [vmem:[%s4945_s3 + $0x2] ss:$0 sm:$0xff] }
  0xf9   : > { %713 = vst.msk [vmem:[#allocation2 + $0x48] sm:$0xff] %vm406_vm9, %v709_v46  ;;  %v589_v55 = vmin.f32 %v586_v39, 6.0  ;;  %v791_v56 = vmax.f32 %v784_v40, 0.0  ;;  %v776_v58 = vadd.f32 %v3897_v16, %v775_v50  ;;  %v877_v59 = vpop.f32.mrf.mxu1  ;;  %v4172_v3 = vmul.f32 %v4133_v45, %v1362_v53  ;;  %p3490_p9 = pneg %p3489_p7 }
  0xfa   : > { %v691_v61 = vmin.f32 %v688_v48, 6.0  ;;  %v893_v62 = vmax.f32 %v886_v49, 0.0  ;;  %v878_v0 = vadd.f32 %v3897_v16, %v877_v59  ;;  %v3290_v1 = vpop.f32.mrf.mxu0  ;;  %v4177_v13 = vmul.f32 %v4119_v37, %v1362_v53 }
  0xfb   : > { %v608_v4 = vsel %vm3992_vm13, %v589_v55, 0.0  ;;  %v794_v5 = vmin.f32 %v791_v56, 6.0  ;;  %v789_v6 = vmax.f32 %v776_v58, 0.0  ;;  %v3296_v8 = vpop.f32.mrf.mxu1  ;;  %v1330_v10 = vld [vmem:[#allocation2 + $0x8] sm:$0xff]  ;;  %vm4186_vm13 = vmand %vm298_vm7, %vm4051_vm0  ;;  %vm4228_vm6 = vcmp.eq.s32.totalorder %v1310_v43, 1  ;;  %p3497_p13 = pnand %p3496_p12, %p3490_p9 }
  0xfc   : > { %v1340_v11 = vld [vmem:[#allocation2 + $0x1] sm:$0xff]  ;;  %v1341_v12 = vld [vmem:[#allocation2 + $0x9] sm:$0xff]  ;;  %612 = vst.msk [vmem:[#allocation2 + $0x38] sm:$0xff] %vm406_vm9, %v608_v4  ;;  %v710_v18 = vsel %vm4004_vm14, %v691_v61, 0.0  ;;  %v896_v17 = vmin.f32 %v893_v62, 6.0  ;;  %v891_v20 = vmax.f32 %v878_v0, 0.0  ;;  %v778_v21 = vpop.f32.mrf.mxu0  ;;  %v1336_v22 = vmul.f32 %v4119_v37, %v1330_v10  ;;  %vm4198_vm14 = vmand %vm298_vm7, %vm4072_vm10 }
  0xfd   : > { %714 = vst.msk [vmem:[#allocation2 + $0x50] sm:$0xff] %vm406_vm9, %v710_v18  ;;  %v813_v24 = vsel %vm4151_vm15, %v794_v5, 0.0  ;;  %v792_v52 = vmin.f32 %v789_v6, 6.0  ;;  %v779_v26 = vadd.f32 %v3897_v16, %v778_v21  ;;  %v880_v23 = vpop.f32.mrf.mxu1  ;;  %v1346_v27 = vmul.f32 %v4169_v2, %v1340_v11  ;;  %v1351_v35 = vld [vmem:[#allocation2 + $0x2] sm:$0xff]  ;;  %v1352_v44 = vld [vmem:[#allocation2 + $0xa] sm:$0xff]  ;;  %vm4239_vm15 = vmand %vm303_vm4, %vm4125_vm11 }
  0xfe   : > { %817 = vst.msk [vmem:[#allocation2 + $0x70] sm:$0xff] %vm406_vm9, %v813_v24  ;;  %v915_v28 = vsel %vm4161_vm8, %v896_v17, 0.0  ;;  %v894_v29 = vmin.f32 %v891_v20, 6.0  ;;  %v881_v30 = vadd.f32 %v3897_v16, %v880_v23  ;;  %v3301_v31 = vpop.f32.mrf.mxu0  ;;  %v1347_v33 = vmul.f32 %v4169_v2, %v1341_v12  ;;  %v4245_v4 = vld [vmem:[#allocation2 + $0x20] sm:$0xff]  ;;  %vm4253_vm8 = vmand %vm303_vm4, %vm4139_vm12 }
  0xff   : > { %919 = vst.msk [vmem:[#allocation2 + $0x88] sm:$0xff] %vm406_vm9, %v915_v28  ;;  %v811_v38 = vsel %vm4186_vm13, %v792_v52, 0.0  ;;  %v790_v39 = vmax.f32 %v779_v26, 0.0  ;;  %v988_v36 = vadd.f32 %v3301_v31, %v3897_v16  ;;  %v3307_v40 = vpop.f32.mrf.mxu1  ;;  %v1348_v41 = vadd.f32 %v1346_v27, %v1335_v60  ;;  %v4285_v23 = vld [vmem:[%s4945_s3 + $0x4] ss:$0 sm:$0xff]  ;;  %v4287_v27 = vld [vmem:[#allocation2 + $0x19] sm:$0xff]  ;;  %vm4311_vm13 = vmand %vm303_vm4, %vm4208_vm5 }
 0x100   : > { %815 = vst.msk [vmem:[#allocation2 + $0x60] sm:$0xff] %vm406_vm9, %v811_v38  ;;  %v913_v46 = vsel %vm4198_vm14, %v894_v29, 0.0  ;;  %v892_v48 = vmax.f32 %v881_v30, 0.0  ;;  %v1090_v49 = vadd.f32 %v3307_v40, %v3897_v16  ;;  %v979_v50 = vpop.f32.mrf.mxu0  ;;  %v1349_v55 = vadd.f32 %v1347_v33, %v1336_v22  ;;  %vm4329_vm14 = vmand %vm298_vm7, %vm4208_vm5  ;;  %v4362_v51 = vld [vmem:[#allocation2 + $0x30] sm:$0xff] }
 0x101   : > { %917 = vst.msk [vmem:[#allocation2 + $0x78] sm:$0xff] %vm406_vm9, %v913_v46  ;;  %v793_v56 = vmin.f32 %v790_v39, 6.0  ;;  %v995_v57 = vmax.f32 %v988_v36, 0.0  ;;  %v980_v58 = vadd.f32 %v3897_v16, %v979_v50  ;;  %v1081_v59 = vpop.f32.mrf.mxu1  ;;  %v1357_v60 = vmul.f32 %v4216_v34, %v1351_v35  ;;  %v4294_v35 = vld [vmem:[#allocation2 + $0x21] sm:$0xff] }
 0x102   : > { %v895_v61 = vmin.f32 %v892_v48, 6.0  ;;  %v1097_v62 = vmax.f32 %v1090_v49, 0.0  ;;  %v1082_v63 = vadd.f32 %v3897_v16, %v1081_v59  ;;  %v3302_v0 = vpop.f32.mrf.mxu0  ;;  %v1358_v1 = vmul.f32 %v4216_v34, %v1352_v44 }
 0x103   : > { %v812_v5 = vsel %vm4051_vm0, %v793_v56, 0.0  ;;  %v998_v6 = vmin.f32 %v995_v57, 6.0  ;;  %v993_v10 = vmax.f32 %v980_v58, 0.0  ;;  %v3308_v11 = vpop.f32.mrf.mxu1  ;;  %v1359_v12 = vadd.f32 %v1357_v60, %v1348_v41  ;;  %vm4264_vm0 = vmand %vm298_vm7, %vm4125_vm11  ;;  %v4321_v60 = vld [vmem:[%s4945_s3 + $0x5] ss:$0 sm:$0xff] }
 0x104   : > { %816 = vst.msk [vmem:[#allocation2 + $0x68] sm:$0xff] %vm406_vm9, %v812_v5  ;;  %v914_v18 = vsel %vm4072_vm10, %v895_v61, 0.0  ;;  %v1100_v17 = vmin.f32 %v1097_v62, 6.0  ;;  %v1095_v47 = vmax.f32 %v1082_v63, 0.0  ;;  %v982_v20 = vpop.f32.mrf.mxu0  ;;  %v1360_v21 = vadd.f32 %v1358_v1, %v1349_v55  ;;  %vm4275_vm10 = vmand %vm298_vm7, %vm4139_vm12  ;;  %v4323_v61 = vld [vmem:[#allocation2 + $0x1a] sm:$0xff] }
 0x105   : > { %918 = vst.msk [vmem:[#allocation2 + $0x80] sm:$0xff] %vm406_vm9, %v914_v18  ;;  %v1017_v22 = vsel %vm4239_vm15, %v998_v6, 0.0  ;;  %v996_v24 = vmin.f32 %v993_v10, 6.0  ;;  %v983_v52 = vadd.f32 %v3897_v16, %v982_v20  ;;  %v1084_v25 = vpop.f32.mrf.mxu1  ;;  %v1369_v26 = vmul.f32 %v4133_v45, %v4245_v4  ;;  %v1385_v6 = vld [vmem:[#allocation2 + $0x22] sm:$0xff]  ;;  %vm4340_vm15 = vmand %vm303_vm4, %vm4228_vm6 }
 0x106   : > { %1021 = vst.msk [vmem:[#allocation2 + $0xa0] sm:$0xff] %vm406_vm9, %v1017_v22  ;;  %v1119_v28 = vsel %vm4253_vm8, %v1100_v17, 0.0  ;;  %v1098_v29 = vmin.f32 %v1095_v47, 6.0  ;;  %v1085_v30 = vadd.f32 %v3897_v16, %v1084_v25  ;;  %v3313_v31 = vpop.f32.mrf.mxu0  ;;  %v1370_v33 = vadd.f32 %v4172_v3, %v1359_v12  ;;  %v4360_v22 = vld [vmem:[%s4945_s3 + $0x6] ss:$0 sm:$0xff] }
 0x107   : > { %1123 = vst.msk [vmem:[#allocation2 + $0xb8] sm:$0xff] %vm406_vm9, %v1119_v28  ;;  %v1015_v38 = vsel %vm4264_vm0, %v996_v24, 0.0  ;;  %v994_v39 = vmax.f32 %v983_v52, 0.0  ;;  %v1192_v36 = vadd.f32 %v3313_v31, %v3897_v16  ;;  %v3319_v40 = vpop.f32.mrf.mxu1  ;;  %v1371_v41 = vadd.f32 %v1369_v26, %v1360_v21  ;;  %v4369_v26 = vld [vmem:[#allocation2 + $0x38] sm:$0xff]  ;;  %v4374_v28 = vld [vmem:[%s4945_s3 + $0x7] ss:$0 sm:$0xff] }
 0x108   : > { %1019 = vst.msk [vmem:[#allocation2 + $0x90] sm:$0xff] %vm406_vm9, %v1015_v38  ;;  %v1117_v44 = vsel %vm4275_vm10, %v1098_v29, 0.0  ;;  %v1096_v46 = vmax.f32 %v1085_v30, 0.0  ;;  %v1294_v3 = vadd.f32 %v3319_v40, %v3897_v16  ;;  %v1183_v48 = vpop.f32.mrf.mxu0  ;;  %v1379_v49 = vmul.f32 %v4285_v23, %v4287_v27  ;;  %v4376_v29 = vld [vmem:[#allocation2 + $0x31] sm:$0xff] }
 0x109   : > { %1121 = vst.msk [vmem:[#allocation2 + $0xa8] sm:$0xff] %vm406_vm9, %v1117_v44  ;;  %v997_v50 = vmin.f32 %v994_v39, 6.0  ;;  %v1199_v55 = vmax.f32 %v1192_v36, 0.0  ;;  %v1184_v57 = vadd.f32 %v3897_v16, %v1183_v48  ;;  %v1285_v58 = vpop.f32.mrf.mxu1  ;;  %v1380_v59 = vmul.f32 %v4285_v23, %v4294_v35  ;;  %v4382_v39 = vld [vmem:[#allocation2 + $0x39] sm:$0xff]  ;;  %v4387_v36 = vld [vmem:[%s4945_s3 + $0x8] ss:$0 sm:$0xff] }
 0x10a   : > { %v1099_v43 = vmin.f32 %v1096_v46, 6.0  ;;  %v1301_v62 = vmax.f32 %v1294_v3, 0.0  ;;  %v1286_v0 = vadd.f32 %v3897_v16, %v1285_v58  ;;  %v3314_v1 = vpop.f32.mrf.mxu0  ;;  %v1381_v5 = vadd.f32 %v1379_v49, %v1370_v33  ;;  %v4389_v40 = vld [vmem:[#allocation2 + $0x32] sm:$0xff]  ;;  %v4396_v3 = vld [vmem:[#allocation2 + $0x3a] sm:$0xff] }
 0x10b   : > { %v1016_v8 = vsel %vm4125_vm11, %v997_v50, 0.0  ;;  %v1202_v10 = vmin.f32 %v1199_v55, 6.0  ;;  %v1197_v12 = vmax.f32 %v1184_v57, 0.0  ;;  %v3320_v18 = vpop.f32.mrf.mxu1  ;;  %v1382_v17 = vadd.f32 %v1380_v59, %v1371_v41  ;;  %vm4351_vm11 = vmand %vm298_vm7, %vm4228_vm6 }
 0x10c   : > { %1020 = vst.msk [vmem:[#allocation2 + $0x98] sm:$0xff] %vm406_vm9, %v1016_v8  ;;  %v1118_v9 = vsel %vm4139_vm12, %v1099_v43, 0.0  ;;  %v1304_v47 = vmin.f32 %v1301_v62, 6.0  ;;  %v1299_v42 = vmax.f32 %v1286_v0, 0.0  ;;  %v1186_v20 = vpop.f32.mrf.mxu0  ;;  %v1390_v21 = vmul.f32 %v4321_v60, %v4323_v61 }
 0x10d   : > { %1122 = vst.msk [vmem:[#allocation2 + $0xb0] sm:$0xff] %vm406_vm9, %v1118_v9  ;;  %v1221_v14 = vsel %vm4311_vm13, %v1202_v10, 0.0  ;;  %v1200_v24 = vmin.f32 %v1197_v12, 6.0  ;;  %v1187_v19 = vadd.f32 %v3897_v16, %v1186_v20  ;;  %v1288_v52 = vpop.f32.mrf.mxu1  ;;  %v1391_v25 = vmul.f32 %v4321_v60, %v1385_v6  ;;  %v4435_v9 = vld [vmem:[#allocation2 + $0x48] sm:$0xff] }
 0x10e   : > { %1225 = vst.msk [vmem:[#allocation2 + $0xd0] sm:$0xff] %vm406_vm9, %v1221_v14  ;;  %v1323_v30 = vsel %vm4340_vm15, %v1304_v47, 0.0  ;;  %v1302_v31 = vmin.f32 %v1299_v42, 6.0  ;;  %v1289_v33 = vadd.f32 %v3897_v16, %v1288_v52  ;;  %v1392_v38 = vadd.f32 %v1390_v21, %v1381_v5  ;;  %v4437_v47 = vld [vmem:[#allocation2 + $0x50] sm:$0xff] }
 0x10f   : > { %1327 = vst.msk [vmem:[#allocation2 + $0xe8] sm:$0xff] %vm406_vm9, %v1323_v30  ;;  %v1219_v41 = vsel %vm4329_vm14, %v1200_v24, 0.0  ;;  %v1198_v44 = vmax.f32 %v1187_v19, 0.0  ;;  %v1393_v46 = vadd.f32 %v1391_v25, %v1382_v17  ;;  %v1401_v16 = vmul.f32 %v4360_v22, %v4362_v51  ;;  %v4445_v20 = vld [vmem:[#allocation2 + $0x49] sm:$0xff]  ;;  %v4450_v19 = vld [vmem:[#allocation2 + $0x51] sm:$0xff] }
 0x110   : > { %1223 = vst.msk [vmem:[#allocation2 + $0xc0] sm:$0xff] %vm406_vm9, %v1219_v41  ;;  %v1321_v48 = vsel %vm4351_vm11, %v1302_v31, 0.0  ;;  %v1300_v49 = vmax.f32 %v1289_v33, 0.0  ;;  %v1402_v50 = vmul.f32 %v4360_v22, %v4369_v26  ;;  %v1412_v55 = vmul.f32 %v4374_v28, %v4376_v29  ;;  %v4452_v52 = vld [vmem:[#allocation2 + $0x4a] sm:$0xff]  ;;  %v4454_v25 = vld [vmem:[#allocation2 + $0x52] sm:$0xff] }
 0x111   : > { %1325 = vst.msk [vmem:[#allocation2 + $0xd8] sm:$0xff] %vm406_vm9, %v1321_v48  ;;  %v1201_v56 = vmin.f32 %v1198_v44, 6.0  ;;  %v1403_v57 = vadd.f32 %v1401_v16, %v1392_v38  ;;  %v1413_v58 = vmul.f32 %v4374_v28, %v4382_v39  ;;  %v1423_v59 = vmul.f32 %v4387_v36, %v4389_v40 }
 0x112   : > { %v1303_v43 = vmin.f32 %v1300_v49, 6.0  ;;  %v1404_v62 = vadd.f32 %v1402_v50, %v1393_v46  ;;  %v1424_v63 = vmul.f32 %v4387_v36, %v4396_v3  ;;  %v1524_v0 = vmul.f32 %v4119_v37, %v4245_v4  ;;  %v4426_v4 = vld [vmem:[%s4946_s4] ss:$0 sm:$0xff] }
 0x113   : > { %v1220_v1 = vsel %vm4208_vm5, %v1201_v56, 0.0  ;;  %v1414_v5 = vadd.f32 %v1412_v55, %v1403_v57  ;;  %v1534_v8 = vmul.f32 %v4169_v2, %v4287_v27  ;;  %v1535_v10 = vmul.f32 %v4169_v2, %v4294_v35 }
 0x114   : > { %1224 = vst.msk [vmem:[#allocation2 + $0xc8] sm:$0xff] %vm406_vm9, %v1220_v1  ;;  %v1322_v11 = vsel %vm4228_vm6, %v1303_v43, 0.0  ;;  %v1415_v12 = vadd.f32 %v1413_v58, %v1404_v62  ;;  %v1545_v32 = vmul.f32 %v4216_v34, %v4323_v61  ;;  %v1546_v18 = vmul.f32 %v4216_v34, %v1385_v6 }
 0x115   : > { %1326 = vst.msk [vmem:[#allocation2 + $0xe0] sm:$0xff] %vm406_vm9, %v1322_v11  ;;  %v1425_v27 = vadd.f32 %v1423_v59, %v1414_v5  ;;  %v1536_v35 = vadd.f32 %v1534_v8, %v4177_v13  ;;  %v1537_v17 = vadd.f32 %v1535_v10, %v1524_v0  ;;  %v1556_v53 = vmul.f32 %v4133_v45, %v4362_v51 }
 0x116   : > { %v1426_v42 = vadd.f32 %v1424_v63, %v1415_v12  ;;  %v1557_v15 = vmul.f32 %v4133_v45, %v4369_v26  ;;  %v1567_v61 = vmul.f32 %v4285_v23, %v4376_v29  ;;  %v1568_v6 = vmul.f32 %v4285_v23, %v4382_v39 }
 0x117   : > { %v1434_v13 = vadd.f32 %v4426_v4, %v1425_v27  ;;  %v1547_v21 = vadd.f32 %v1545_v32, %v1536_v35  ;;  %v1548_v14 = vadd.f32 %v1546_v18, %v1537_v17  ;;  %v1578_v24 = vmul.f32 %v4321_v60, %v4389_v40  ;;  %v4489_v27 = vld [vmem:[#allocation2 + $0x60] sm:$0xff] }
 0x118   : > { %v1435_v30 = vadd.f32 %v4426_v4, %v1426_v42  ;;  %v1579_v31 = vmul.f32 %v4321_v60, %v4396_v3  ;;  %v1589_v33 = vmul.f32 %v4360_v22, %v4435_v9  ;;  %v1590_v38 = vmul.f32 %v4360_v22, %v4437_v47  ;;  %v4498_v42 = vld [vmem:[#allocation2 + $0x61] sm:$0xff] }
 0x119   : > { %v1436_v41 = vmax.f32 %v1434_v13, 0.0  ;;  %v1558_v44 = vadd.f32 %v1556_v53, %v1547_v21  ;;  %v1559_v46 = vadd.f32 %v1557_v15, %v1548_v14  ;;  %v1600_v16 = vmul.f32 %v4374_v28, %v4445_v20  ;;  %v4500_v15 = vld [vmem:[#allocation2 + $0x69] sm:$0xff]  ;;  %v3477_v13 = vld [vmem:[%s4947_s5] sm:$0xff]  }
 0x11a   : > { %v1437_v48 = vmax.f32 %v1435_v30, 0.0  ;;  %v1601_v49 = vmul.f32 %v4374_v28, %v4450_v19  ;;  %v1611_v50 = vmul.f32 %v4387_v36, %v4452_v52  ;;  %v1612_v55 = vmul.f32 %v4387_v36, %v4454_v25  ;;  %v4510_v14 = vld [vmem:[#allocation2 + $0x62] sm:$0xff] }
 0x11b   : > { %v1438_v56 = vmin.f32 %v1436_v41, 6.0  ;;  %v1569_v57 = vadd.f32 %v1567_v61, %v1558_v44  ;;  %v1570_v58 = vadd.f32 %v1568_v6, %v1559_v46  ;;  %v1711_v59 = vmul.f32 %v4119_v37, %v4362_v51 }
 0x11c   : > { %v1439_v43 = vmin.f32 %v1437_v48, 6.0  ;;  %v1712_v62 = vmul.f32 %v4119_v37, %v4369_v26  ;;  %v1722_v63 = vmul.f32 %v4169_v2, %v4376_v29  ;;  %v1723_v0 = vmul.f32 %v4169_v2, %v4382_v39 }
 0x11d   : > { %v1580_v1 = vadd.f32 %v1578_v24, %v1569_v57  ;;  %v1581_v5 = vadd.f32 %v1579_v31, %v1570_v58  ;;  %v1733_v8 = vmul.f32 %v4216_v34, %v4389_v40  ;;  %v1734_v10 = vmul.f32 %v4216_v34, %v4396_v3  ;;  %v4491_v40 = vld [vmem:[#allocation2 + $0x68] sm:$0xff] }
 0x11e   : > { %v1440_v11 = vpack.c.bf16 %v1439_v43, %v1438_v56  ;;  %v1724_v51 = vadd.f32 %v1722_v63, %v1711_v59  ;;  %v1725_v12 = vadd.f32 %v1723_v0, %v1712_v62  ;;  %v1744_v26 = vmul.f32 %v4133_v45, %v4435_v9  ;;  %v4512_v24 = vld [vmem:[#allocation2 + $0x6a] sm:$0xff] }
 0x11f   : > { %v1591_v32 = vadd.f32 %v1589_v33, %v1580_v1  ;;  %v1592_v18 = vadd.f32 %v1590_v38, %v1581_v5  ;;  %v1745_v29 = vmul.f32 %v4133_v45, %v4437_v47  ;;  %v1755_v39 = vmul.f32 %v4285_v23, %v4445_v20  ;;  %v3476_v5 = vld [vmem:[%s4947_s5 + $0x8] ss:$0 sps:$4 sm:$0xff]  }
 0x120   : > { %3326 = vmatmul.mubr.msk.bf16.vlgmr.msra.gmra.mxu0 %vm406_vm9, %v1440_v11  ;;  %v1735_v3 = vadd.f32 %v1733_v8, %v1724_v51  ;;  %v1736_v35 = vadd.f32 %v1734_v10, %v1725_v12  ;;  %v1756_v17 = vmul.f32 %v4285_v23, %v4450_v19  ;;  %v1766_v53 = vmul.f32 %v4321_v60, %v4452_v52 }
 0x121   : > { %3338 = vmatpush3.bf16.msra.mxu0 %v4144_v54  ;;  %v1602_v61 = vadd.f32 %v1600_v16, %v1591_v32  ;;  %v1603_v6 = vadd.f32 %v1601_v49, %v1592_v18  ;;  %3341 = vmatprep.mubr.msk.bf16.mxu0 %vm3582_vm3, %v3581_v7  ;;  %v1767_v21 = vmul.f32 %v4321_v60, %v4454_v25 }
 0x122   : > { %3339 = vmatprep.subr.bf16.mxu0 %v3581_v7  ;;  %v1746_v30 = vadd.f32 %v1744_v26, %v1735_v3  ;;  %v1747_v54 = vadd.f32 %v1745_v29, %v1736_v35  ;;  %v1777_v31 = vmul.f32 %v4360_v22, %v4489_v27  ;;  %v1778_v33 = vmul.f32 %v4360_v22, %v4491_v40  ;;  %v4554_v3 = vld [vmem:[#allocation2 + $0x80] sm:$0xff] }
 0x123   : > { %v1613_v38 = vadd.f32 %v1611_v50, %v1602_v61  ;;  %v1614_v41 = vadd.f32 %v1612_v55, %v1603_v6  ;;  %v1788_v44 = vmul.f32 %v4374_v28, %v4498_v42  ;;  %v1789_v46 = vmul.f32 %v4374_v28, %v4500_v15 }
 0x124   : > { %v1757_v16 = vadd.f32 %v1755_v39, %v1746_v30  ;;  %v1758_v48 = vadd.f32 %v1756_v17, %v1747_v54  ;;  %v1799_v49 = vmul.f32 %v4387_v36, %v4510_v14  ;;  %v1800_v56 = vmul.f32 %v4387_v36, %v4512_v24  ;;  %v4552_v39 = vld [vmem:[#allocation2 + $0x78] sm:$0xff] }
 0x125   : > { %v1622_v57 = vadd.f32 %v4426_v4, %v1613_v38  ;;  %v1623_v58 = vadd.f32 %v4426_v4, %v1614_v41  ;;  %3340 = vmatpush3.bf16.msra.mxu0 %v3477_v13  ;;  %v1899_v50 = vmul.f32 %v4119_v37, %v4435_v9  ;;  %v1900_v55 = vmul.f32 %v4119_v37, %v4437_v47  ;;  %v4561_v54 = vld [vmem:[#allocation2 + $0x79] sm:$0xff] }
 0x126   : > { %v1768_v59 = vadd.f32 %v1766_v53, %v1757_v16  ;;  %v1769_v43 = vadd.f32 %v1767_v21, %v1758_v48  ;;  %3353 = vmatprep.subr.bf16.mxu0 %v3581_v7  ;;  %v1910_v62 = vmul.f32 %v4169_v2, %v4445_v20  ;;  %v1911_v63 = vmul.f32 %v4169_v2, %v4450_v19 }
 0x127   : > { %v1624_v0 = vmax.f32 %v1622_v57, 0.0  ;;  %v1625_v1 = vmax.f32 %v1623_v58, 0.0  ;;  %v1921_v9 = vmul.f32 %v4216_v34, %v4452_v52  ;;  %v1922_v47 = vmul.f32 %v4216_v34, %v4454_v25  ;;  %v3479_v52 = vld [vmem:[%s4947_s5 + $0x8] ss:$0 sps:$4 sm:$0xff]  }
 0x128   : > { %v1779_v8 = vadd.f32 %v1777_v31, %v1768_v59  ;;  %v1780_v10 = vadd.f32 %v1778_v33, %v1769_v43  ;;  %v1912_v11 = vadd.f32 %v1910_v62, %v1899_v50  ;;  %v1913_v51 = vadd.f32 %v1911_v63, %v1900_v55  ;;  %v4563_v31 = vld [vmem:[#allocation2 + $0x81] sm:$0xff] }
 0x129   : > { %v1626_v20 = vmin.f32 %v1624_v0, 6.0  ;;  %v1627_v12 = vmin.f32 %v1625_v1, 6.0  ;;  %v1932_v19 = vmul.f32 %v4133_v45, %v4489_v27  ;;  %v1933_v26 = vmul.f32 %v4133_v45, %v4491_v40  ;;  %v4565_v33 = vld [vmem:[#allocation2 + $0x7a] sm:$0xff] }
 0x12a   : > { %v1790_v32 = vadd.f32 %v1788_v44, %v1779_v8  ;;  %v1791_v18 = vadd.f32 %v1789_v46, %v1780_v10  ;;  %v1923_v29 = vadd.f32 %v1921_v9, %v1912_v11  ;;  %v1924_v25 = vadd.f32 %v1922_v47, %v1913_v51 }
 0x12b   : > { %v1628_v35 = vpack.c.bf16 %v1627_v12, %v1626_v20  ;;  %v2028_v17 = vsel %vm1463_vm2, %v3476_v5, 0  ;;  %v1943_v53 = vmul.f32 %v4285_v23, %v4498_v42  ;;  %v1944_v61 = vmul.f32 %v4285_v23, %v4500_v15  ;;  %v4593_v5 = vld [vmem:[#allocation2 + $0x82] sm:$0xff] }
 0x12c   : > { %v1801_v6 = vadd.f32 %v1799_v49, %v1790_v32  ;;  %v1802_v13 = vadd.f32 %v1800_v56, %v1791_v18  ;;  %v1934_v21 = vadd.f32 %v1932_v19, %v1923_v29  ;;  %v1935_v30 = vadd.f32 %v1933_v26, %v1924_v25  ;;  %v3478_v49 = vld [vmem:[%s4947_s5] sm:$0xff]  }
 0x12d   : > { %3334 = vmatmul.mubr.msk.bf16.vlgmr.msra.gmra.mxu1 %vm406_vm9, %v1628_v35  ;;  %v1954_v38 = vmul.f32 %v4321_v60, %v4510_v14  ;;  %v1955_v41 = vmul.f32 %v4321_v60, %v4512_v24  ;;  %v1965_v44 = vmul.f32 %v4360_v22, %v4552_v39  ;;  %v1966_v46 = vmul.f32 %v4360_v22, %v4554_v3  ;;  %v4615_v35 = vld [vmem:[#allocation2 + $0x90] sm:$0xff] }
 0x12e   : > { %3346 = vmatpush3.bf16.msra.mxu1 %v2028_v17  ;;  %v1810_v16 = vadd.f32 %v4426_v4, %v1801_v6  ;;  %v1811_v48 = vadd.f32 %v4426_v4, %v1802_v13  ;;  %v2216_v56 = vsel %vm1463_vm2, %v3479_v52, 0  ;;  %3349 = vmatprep.mubr.msk.bf16.mxu1 %vm3582_vm3, %v3581_v7  ;;  %v1945_v57 = vadd.f32 %v1943_v53, %v1934_v21  ;;  %v4617_v17 = vld [vmem:[#allocation2 + $0x98] sm:$0xff] }
 0x12f   : > { %3347 = vmatprep.subr.bf16.mxu1 %v3581_v7  ;;  %v1946_v58 = vadd.f32 %v1944_v61, %v1935_v30  ;;  %v1976_v50 = vmul.f32 %v4374_v28, %v4561_v54  ;;  %v1977_v55 = vmul.f32 %v4374_v28, %v4563_v31  ;;  %v1987_v59 = vmul.f32 %v4387_v36, %v4565_v33  ;;  %v4626_v13 = vld [vmem:[#allocation2 + $0x91] sm:$0xff] }
 0x130   : > { %v1812_v43 = vmax.f32 %v1810_v16, 0.0  ;;  %v1813_v62 = vmax.f32 %v1811_v48, 0.0  ;;  %v1956_v63 = vadd.f32 %v1954_v38, %v1945_v57  ;;  %v2087_v0 = vmul.f32 %v4119_v37, %v4489_v27  ;;  %v3481_v38 = vld [vmem:[%s4947_s5] sm:$0xff]   ;;  %v4636_v16 = vld [vmem:[#allocation2 + $0x92] sm:$0xff] }
 0x131   : > { %v1957_v1 = vadd.f32 %v1955_v41, %v1946_v58  ;;  %v2088_v9 = vmul.f32 %v4119_v37, %v4491_v40  ;;  %v2098_v47 = vmul.f32 %v4169_v2, %v4498_v42  ;;  %v2099_v8 = vmul.f32 %v4169_v2, %v4500_v15  ;;  %v3480_v40 = vld [vmem:[%s4947_s5 + $0x8] ss:$0 sps:$4 sm:$0xff]  }
 0x132   : > { %v1814_v10 = vmin.f32 %v1812_v43, 6.0  ;;  %v1815_v11 = vmin.f32 %v1813_v62, 6.0  ;;  %3348 = vmatpush3.bf16.msra.mxu1 %v3478_v49  ;;  %v1967_v51 = vadd.f32 %v1965_v44, %v1956_v63  ;;  %v2109_v20 = vmul.f32 %v4216_v34, %v4510_v14 }
 0x133   : > { %3361 = vmatprep.subr.bf16.mxu1 %v3581_v7  ;;  %v1968_v27 = vadd.f32 %v1966_v46, %v1957_v1  ;;  %v2100_v12 = vadd.f32 %v2098_v47, %v2087_v0  ;;  %v2101_v19 = vadd.f32 %v2099_v8, %v2088_v9  ;;  %v2110_v42 = vmul.f32 %v4216_v34, %v4512_v24  ;;  %v4634_v46 = vld [vmem:[#allocation2 + $0x99] sm:$0xff] }
 0x134   : > { %v1816_v15 = vpack.c.bf16 %v1815_v11, %v1814_v10  ;;  %v1978_v26 = vadd.f32 %v1976_v50, %v1967_v51  ;;  %v1988_v32 = vmul.f32 %v4387_v36, %v4593_v5  ;;  %v2120_v14 = vmul.f32 %v4133_v45, %v4552_v39  ;;  %v2170_v11 = vld [vmem:[#allocation2 + $0x9a] sm:$0xff] }
 0x135   : > { %v1979_v18 = vadd.f32 %v1977_v55, %v1968_v27  ;;  %v2111_v52 = vadd.f32 %v2109_v20, %v2100_v12  ;;  %v2112_v29 = vadd.f32 %v2110_v42, %v2101_v19  ;;  %v2121_v25 = vmul.f32 %v4133_v45, %v4554_v3 }
 0x136   : > { %3342 = vmatmul.mubr.msk.bf16.vlgmr.msra.gmra.mxu0 %vm406_vm9, %v1816_v15  ;;  %v1989_v24 = vadd.f32 %v1987_v59, %v1978_v26  ;;  %v2131_v53 = vmul.f32 %v4285_v23, %v4561_v54  ;;  %v2132_v61 = vmul.f32 %v4285_v23, %v4563_v31  ;;  %v2142_v6 = vmul.f32 %v4321_v60, %v4565_v33 }
 0x137   : > { %3354 = vmatpush3.bf16.msra.mxu0 %v2216_v56  ;;  %v1990_v21 = vadd.f32 %v1988_v32, %v1979_v18  ;;  %v2404_v30 = vsel %vm1463_vm2, %v3480_v40, 0  ;;  %3357 = vmatprep.mubr.msk.bf16.mxu0 %vm3582_vm3, %v3581_v7  ;;  %v2122_v41 = vadd.f32 %v2120_v14, %v2111_v52  ;;  %v2123_v44 = vadd.f32 %v2121_v25, %v2112_v29  ;;  %v4674_v18 = vld [vmem:[#allocation2 + $0xa8] sm:$0xff] }
 0x138   : > { %v1998_v48 = vadd.f32 %v4426_v4, %v1989_v24  ;;  %3355 = vmatprep.subr.bf16.mxu0 %v3581_v7  ;;  %v2143_v49 = vmul.f32 %v4321_v60, %v4593_v5  ;;  %v2153_v56 = vmul.f32 %v4360_v22, %v4615_v35  ;;  %v2154_v57 = vmul.f32 %v4360_v22, %v4617_v17  ;;  %v4680_v24 = vld [vmem:[#allocation2 + $0xb0] sm:$0xff] }
 0x139   : > { %v1999_v58 = vadd.f32 %v4426_v4, %v1990_v21  ;;  %v2133_v50 = vadd.f32 %v2131_v53, %v2122_v41  ;;  %v2134_v55 = vadd.f32 %v2132_v61, %v2123_v44  ;;  %v2164_v59 = vmul.f32 %v4374_v28, %v4626_v13  ;;  %v4682_v53 = vld [vmem:[#allocation2 + $0xa9] sm:$0xff]  ;;  %v4688_v41 = vld [vmem:[#allocation2 + $0xb1] sm:$0xff] }
 0x13a   : > { %v2000_v43 = vmax.f32 %v1998_v48, 0.0  ;;  %v2165_v62 = vmul.f32 %v4374_v28, %v4634_v46  ;;  %v2175_v63 = vmul.f32 %v4387_v36, %v4636_v16  ;;  %v2275_v0 = vmul.f32 %v4119_v37, %v4552_v39  ;;  %v4690_v44 = vld [vmem:[#allocation2 + $0xaa] sm:$0xff]  ;;  %v3482_v48 = vld [vmem:[%s4947_s5] sm:$0xff]  }
 0x13b   : > { %v2001_v1 = vmax.f32 %v1999_v58, 0.0  ;;  %3356 = vmatpush3.bf16.msra.mxu0 %v3481_v38  ;;  %v2144_v9 = vadd.f32 %v2142_v6, %v2133_v50  ;;  %v2145_v47 = vadd.f32 %v2143_v49, %v2134_v55  ;;  %v2276_v8 = vmul.f32 %v4119_v37, %v4554_v3  ;;  %v3483_v3 = vld [vmem:[%s4947_s5 + $0x8] ss:$0 sps:$4 sm:$0xff]  }
 0x13c   : > { %v2002_v10 = vmin.f32 %v2000_v43, 6.0  ;;  %3369 = vmatprep.subr.bf16.mxu0 %v3581_v7  ;;  %v2286_v51 = vmul.f32 %v4169_v2, %v4561_v54  ;;  %v2287_v20 = vmul.f32 %v4169_v2, %v4563_v31  ;;  %v2297_v39 = vmul.f32 %v4216_v34, %v4565_v33 }
 0x13d   : > { %v2003_v27 = vmin.f32 %v2001_v1, 6.0  ;;  %v2155_v40 = vadd.f32 %v2153_v56, %v2144_v9  ;;  %v2156_v12 = vadd.f32 %v2154_v57, %v2145_v47  ;;  %v2298_v19 = vmul.f32 %v4216_v34, %v4593_v5 }
 0x13e   : > { %v2288_v42 = vadd.f32 %v2286_v51, %v2275_v0  ;;  %v2289_v15 = vadd.f32 %v2287_v20, %v2276_v8  ;;  %v2308_v54 = vmul.f32 %v4133_v45, %v4615_v35  ;;  %v2309_v31 = vmul.f32 %v4133_v45, %v4617_v17  ;;  %v4715_v20 = vld [vmem:[#allocation2 + $0xb2] sm:$0xff] }
 0x13f   : > { %v2004_v26 = vpack.c.bf16 %v2003_v27, %v2002_v10  ;;  %v2166_v33 = vadd.f32 %v2164_v59, %v2155_v40  ;;  %v2167_v32 = vadd.f32 %v2165_v62, %v2156_v12  ;;  %v2176_v14 = vmul.f32 %v4387_v36, %v2170_v11 }
 0x140   : > { %v2299_v5 = vadd.f32 %v2297_v39, %v2288_v42  ;;  %v2300_v52 = vadd.f32 %v2298_v19, %v2289_v15  ;;  %v2319_v29 = vmul.f32 %v4285_v23, %v4626_v13  ;;  %v2320_v25 = vmul.f32 %v4285_v23, %v4634_v46 }
 0x141   : > { %3350 = vmatmul.mubr.msk.bf16.vlgmr.msra.gmra.mxu1 %vm406_vm9, %v2004_v26  ;;  %v2177_v61 = vadd.f32 %v2175_v63, %v2166_v33  ;;  %v2178_v6 = vadd.f32 %v2176_v14, %v2167_v32  ;;  %v2330_v21 = vmul.f32 %v4321_v60, %v4636_v16  ;;  %v2331_v38 = vmul.f32 %v4321_v60, %v2170_v11  ;;  %v2523_v26 = vld [vmem:[#allocation2 + $0xc0] sm:$0xff]  ;;  %v2524_v33 = vld [vmem:[#allocation2 + $0xc8] sm:$0xff] }
 0x142   : > { %3362 = vmatpush3.bf16.msra.mxu1 %v2404_v30  ;;  %v2592_v49 = vsel %vm1463_vm2, %v3483_v3, 0  ;;  %3365 = vmatprep.mubr.msk.bf16.mxu1 %vm3582_vm3, %v3581_v7  ;;  %v2310_v56 = vadd.f32 %v2308_v54, %v2299_v5  ;;  %v2311_v57 = vadd.f32 %v2309_v31, %v2300_v52  ;;  %v2341_v58 = vmul.f32 %v4360_v22, %v4674_v18  ;;  %v3484_v3 = vld [vmem:[%s4947_s5 + $0x8] ss:$0 sps:$4 sm:$0xff]  }
 0x143   : > { %3363 = vmatprep.subr.bf16.mxu1 %v3581_v7  ;;  %v2186_v50 = vadd.f32 %v4426_v4, %v2177_v61  ;;  %v2187_v30 = vadd.f32 %v4426_v4, %v2178_v6  ;;  %v2342_v55 = vmul.f32 %v4360_v22, %v4680_v24  ;;  %v2352_v59 = vmul.f32 %v4374_v28, %v4682_v53  ;;  %v2534_v32 = vld [vmem:[#allocation2 + $0xc1] sm:$0xff] }
 0x144   : > { %v2321_v43 = vadd.f32 %v2319_v29, %v2310_v56  ;;  %v2322_v62 = vadd.f32 %v2320_v25, %v2311_v57  ;;  %v2353_v63 = vmul.f32 %v4374_v28, %v4688_v41  ;;  %v2363_v0 = vmul.f32 %v4387_v36, %v4690_v44  ;;  %v2535_v29 = vld [vmem:[#allocation2 + $0xc9] sm:$0xff] }
 0x145   : > { %v2188_v1 = vmax.f32 %v2186_v50, 0.0  ;;  %v2189_v9 = vmax.f32 %v2187_v30, 0.0  ;;  %v2463_v47 = vmul.f32 %v4119_v37, %v4615_v35  ;;  %v2464_v8 = vmul.f32 %v4119_v37, %v4617_v17 }
 0x146   : > { %3364 = vmatpush3.bf16.msra.mxu1 %v3482_v48  ;;  %v2332_v10 = vadd.f32 %v2330_v21, %v2321_v43  ;;  %v2333_v51 = vadd.f32 %v2331_v38, %v2322_v62  ;;  %v2474_v39 = vmul.f32 %v4169_v2, %v4626_v13  ;;  %v2475_v27 = vmul.f32 %v4169_v2, %v4634_v46  ;;  %v3485_v21 = vld [vmem:[%s4947_s5] sm:$0xff]  }
 0x147   : > { %v2190_v40 = vmin.f32 %v2188_v1, 6.0  ;;  %v2191_v12 = vmin.f32 %v2189_v9, 6.0  ;;  %3377 = vmatprep.subr.bf16.mxu1 %v3581_v7  ;;  %v2485_v35 = vmul.f32 %v4216_v34, %v4636_v16  ;;  %v2486_v37 = vmul.f32 %v4216_v34, %v2170_v11  ;;  %v2545_v38 = vld [vmem:[#allocation2 + $0xc2] sm:$0xff]  ;;  %v3181_v48 = vld [vmem:[%s4945_s3] ss:$0 sm:$0xff] }
 0x148   : > { %v2343_v17 = vadd.f32 %v2341_v58, %v2332_v10  ;;  %v2344_v19 = vadd.f32 %v2342_v55, %v2333_v51  ;;  %v2476_v42 = vadd.f32 %v2474_v39, %v2463_v47  ;;  %v2477_v13 = vadd.f32 %v2475_v27, %v2464_v8  ;;  %v3182_v58 = vld [vmem:[%s4945_s3 + $0x1] ss:$0 sm:$0xff]  ;;  %v3183_v43 = vld [vmem:[%s4945_s3 + $0x2] ss:$0 sm:$0xff] }
 0x149   : > { %v2192_v15 = vpack.c.bf16 %v2191_v12, %v2190_v40  ;;  %v2364_v2 = vmul.f32 %v4387_v36, %v4715_v20  ;;  %v2496_v46 = vmul.f32 %v4133_v45, %v4674_v18  ;;  %v2497_v16 = vmul.f32 %v4133_v45, %v4680_v24 }
 0x14a   : > { %v2354_v54 = vadd.f32 %v2352_v59, %v2343_v17  ;;  %v2355_v34 = vadd.f32 %v2353_v63, %v2344_v19  ;;  %v2487_v11 = vadd.f32 %v2485_v35, %v2476_v42  ;;  %v2488_v31 = vadd.f32 %v2486_v37, %v2477_v13  ;;  %v2546_v35 = vld [vmem:[#allocation2 + $0xca] sm:$0xff] }
 0x14b   : > { %3358 = vmatmul.mubr.msk.bf16.vlgmr.msra.gmra.mxu0 %vm406_vm9, %v2192_v15  ;;  %v2507_v14 = vmul.f32 %v4285_v23, %v4682_v53  ;;  %v2508_v5 = vmul.f32 %v4285_v23, %v4688_v41  ;;  %v2518_v52 = vmul.f32 %v4321_v60, %v4690_v44  ;;  %v2519_v45 = vmul.f32 %v4321_v60, %v4715_v20 }
 0x14c   : > { %3370 = vmatpush3.bf16.msra.mxu0 %v2592_v49  ;;  %v2365_v25 = vadd.f32 %v2363_v0, %v2354_v54  ;;  %v2366_v61 = vadd.f32 %v2364_v2, %v2355_v34  ;;  %v2780_v6 = vsel %vm1463_vm2, %v3484_v3, 0  ;;  %3373 = vmatprep.mubr.msk.bf16.mxu0 %vm3582_vm3, %v3581_v7  ;;  %v2498_v23 = vadd.f32 %v2496_v46, %v2487_v11  ;;  %v3186_v46 = vld [vmem:[%s4945_s3 + $0x5] ss:$0 sm:$0xff] }
 0x14d   : > { %3371 = vmatprep.subr.bf16.mxu0 %v3581_v7  ;;  %v2499_v60 = vadd.f32 %v2497_v16, %v2488_v31  ;;  %v2529_v49 = vmul.f32 %v4360_v22, %v2523_v26  ;;  %v2530_v56 = vmul.f32 %v4360_v22, %v2524_v33  ;;  %v2540_v57 = vmul.f32 %v4374_v28, %v2534_v32  ;;  %v3486_v11 = vld [vmem:[%s4947_s5] sm:$0xff]  }
 0x14e   : > { %v2374_v50 = vadd.f32 %v4426_v4, %v2365_v25  ;;  %v2375_v30 = vadd.f32 %v4426_v4, %v2366_v61  ;;  %v2509_v55 = vadd.f32 %v2507_v14, %v2498_v23  ;;  %v2541_v59 = vmul.f32 %v4374_v28, %v2535_v29  ;;  %v3184_v28 = vld [vmem:[%s4945_s3 + $0x3] ss:$0 sm:$0xff] }
 0x14f   : > { %v2510_v62 = vadd.f32 %v2508_v5, %v2499_v60  ;;  %v2551_v22 = vmul.f32 %v4387_v36, %v2545_v38  ;;  %v2651_v63 = vmul.f32 %v3181_v48, %v4674_v18  ;;  %v2652_v0 = vmul.f32 %v3181_v48, %v4680_v24  ;;  %v3185_v18 = vld [vmem:[%s4945_s3 + $0x4] ss:$0 sm:$0xff] }
 0x150   : > { %v2376_v1 = vmax.f32 %v2374_v50, 0.0  ;;  %v2377_v9 = vmax.f32 %v2375_v30, 0.0  ;;  %3372 = vmatpush3.bf16.msra.mxu0 %v3485_v21  ;;  %v2520_v47 = vadd.f32 %v2518_v52, %v2509_v55  ;;  %v2662_v8 = vmul.f32 %v3182_v58, %v4682_v53  ;;  %v2712_v52 = vld [vmem:[#allocation2 + $0xe0] sm:$0xff] }
 0x151   : > { %v2521_v10 = vadd.f32 %v2519_v45, %v2510_v62  ;;  %v2663_v51 = vmul.f32 %v3182_v58, %v4688_v41  ;;  %v2673_v39 = vmul.f32 %v3183_v43, %v4690_v44  ;;  %v2674_v27 = vmul.f32 %v3183_v43, %v4715_v20  ;;  %v2723_v60 = vld [vmem:[#allocation2 + $0xe1] sm:$0xff] }
 0x152   : > { %v2378_v24 = vmin.f32 %v2376_v1, 6.0  ;;  %v2379_v40 = vmin.f32 %v2377_v9, 6.0  ;;  %v2531_v12 = vadd.f32 %v2529_v49, %v2520_v47  ;;  %v2664_v53 = vadd.f32 %v2662_v8, %v2651_v63  ;;  %v2734_v30 = vld [vmem:[#allocation2 + $0xe2] sm:$0xff]  ;;  %v3190_v9 = vld [vmem:[%s4946_s4] ss:$0 sm:$0xff] }
 0x153   : > { %v2532_v37 = vadd.f32 %v2530_v56, %v2521_v10  ;;  %v2665_v17 = vadd.f32 %v2663_v51, %v2652_v0  ;;  %v2684_v19 = vmul.f32 %v3184_v28, %v2523_v26  ;;  %v2685_v3 = vmul.f32 %v3184_v28, %v2524_v33  ;;  %v3187_v26 = vld [vmem:[%s4945_s3 + $0x6] ss:$0 sm:$0xff]  ;;  %v2711_v33 = vld [vmem:[#allocation2 + $0xd8] sm:$0xff] }
 0x154   : > { %v2380_v42 = vpack.c.bf16 %v2379_v40, %v2378_v24  ;;  %v2542_v13 = vadd.f32 %v2540_v57, %v2531_v12  ;;  %v2675_v41 = vadd.f32 %v2673_v39, %v2664_v53  ;;  %v2695_v15 = vmul.f32 %v3185_v18, %v2534_v32  ;;  %v3071_v40 = vld [vmem:[%s3721_s12 + $0x19] sm:$0xff] }
 0x155   : > { %v2543_v44 = vadd.f32 %v2541_v59, %v2532_v37  ;;  %v2552_v20 = vmul.f32 %v4387_v36, %v2546_v35  ;;  %v2676_v2 = vadd.f32 %v2674_v27, %v2665_v17  ;;  %v2696_v36 = vmul.f32 %v3185_v18, %v2535_v29  ;;  %v3188_v29 = vld [vmem:[%s4945_s3 + $0x7] ss:$0 sm:$0xff]  ;;  %v4810_v12 = vld [vmem:[%s4948_s6] ss:$0 sm:$0xff] }
 0x156   : > { %3366 = vmatmul.mubr.msk.bf16.vlgmr.msra.gmra.mxu1 %vm406_vm9, %v2380_v42  ;;  %v2553_v16 = vadd.f32 %v2551_v22, %v2542_v13  ;;  %v2686_v54 = vadd.f32 %v2684_v19, %v2675_v41  ;;  %v2706_v5 = vmul.f32 %v3186_v46, %v2545_v38  ;;  %v2707_v61 = vmul.f32 %v3186_v46, %v2546_v35  ;;  %v3189_v38 = vld [vmem:[%s4945_s3 + $0x8] ss:$0 sm:$0xff] }
 0x157   : > { %3378 = vmatpush3.bf16.msra.mxu1 %v2780_v6  ;;  %v2554_v34 = vadd.f32 %v2552_v20, %v2543_v44  ;;  %3381 = vmatprep.mubr.msk.bf16.mxu1 %vm3582_vm3, %v3581_v7  ;;  %v2687_v31 = vadd.f32 %v2685_v3, %v2676_v2  ;;  %v2722_v6 = vld [vmem:[#allocation2 + $0xd9] sm:$0xff]  ;;  %v2717_v48 = vmul.f32 %v3187_v26, %v2711_v33  ;;  %v1510_v53 = vsel %vm322_vm1, %v3071_v40, 0.0  ;;  %v3072_v17 = vld [vmem:[%s3721_s12 + $0x21] sm:$0xff]  ;;  %v3087_v20 = vld [vmem:[%s3721_s12 + $0x31] sm:$0xff] }
 0x158   : > { %3379 = vmatprep.subr.bf16.mxu1 %v3581_v7  ;;  %v2562_v32 = vadd.f32 %v4426_v4, %v2553_v16  ;;  %v2697_v14 = vadd.f32 %v2695_v15, %v2686_v54  ;;  %v2718_v56 = vmul.f32 %v3187_v26, %v2712_v52  ;;  %v2728_v50 = vmul.f32 %v3188_v29, %v2722_v6  ;;  %v3088_v54 = vld [vmem:[%s3721_s12 + $0x39] sm:$0xff]  ;;  %v3105_v33 = vld [vmem:[%s3721_s12 + $0x49] sm:$0xff] }
 0x159   : > { %v2563_v45 = vadd.f32 %v4426_v4, %v2554_v34  ;;  %v2698_v25 = vadd.f32 %v2696_v36, %v2687_v31  ;;  %v2733_v4 = vld [vmem:[#allocation2 + $0xda] sm:$0xff]  ;;  %v2729_v43 = vmul.f32 %v3188_v29, %v2723_v60  ;;  %v2740_v1 = vmul.f32 %v3189_v38, %v2734_v30 }
 0x15a   : > { %v2564_v21 = vmax.f32 %v2562_v32, 0.0  ;;  %v2708_v23 = vadd.f32 %v2706_v5, %v2697_v14  ;;  %v2739_v22 = vmul.f32 %v3189_v38, %v2733_v4  ;;  %v1511_v13 = vsel %vm322_vm1, %v3072_v17, 0.0  ;;  %v3124_v4 = vld [vmem:[%s3721_s12 + $0x69] sm:$0xff] }
 0x15b   : > { %v2565_v49 = vmax.f32 %v2563_v45, 0.0  ;;  %3380 = vmatpush3.bf16.msra.mxu1 %v3486_v11  ;;  %v2709_v7 = vadd.f32 %v2707_v61, %v2698_v25  ;;  %v1697_v46 = vsel %vm322_vm1, %v3087_v20, 0.0  ;;  %v1698_v36 = vsel %vm322_vm1, %v3088_v54, 0.0  ;;  %v3106_v25 = vld [vmem:[%s3721_s12 + $0x51] sm:$0xff] }
 0x15c   : > { %v2566_v57 = vmin.f32 %v2564_v21, 6.0  ;;  %v2719_v58 = vadd.f32 %v2717_v48, %v2708_v23  ;;  %v1885_v52 = vsel %vm322_vm1, %v3105_v33, 0.0  ;;  %v1886_v21 = vsel %vm322_vm1, %v3106_v25, 0.0 }
 0x15d   : > { %v2567_v55 = vmin.f32 %v2565_v49, 6.0  ;;  %v2720_v59 = vadd.f32 %v2718_v56, %v2709_v7  ;;  %v3123_v49 = vld [vmem:[%s3721_s12 + $0x61] sm:$0xff]  ;;  %v2074_v30 = vsel %vm322_vm1, %v3124_v4, 0.0 }
 0x15e   : > { %v2730_v62 = vadd.f32 %v2728_v50, %v2719_v58  ;;  %v2073_v56 = vsel %vm322_vm1, %v3123_v49, 0.0 }
 0x15f   : > { %v2568_v63 = vpack.c.bf16 %v2567_v55, %v2566_v57  ;;  %v2731_v0 = vadd.f32 %v2729_v43, %v2720_v59 }
 0x160   : > { %v2741_v47 = vadd.f32 %v2739_v22, %v2730_v62  ;;  %v3141_v62 = vld [vmem:[%s3721_s12 + $0x79] sm:$0xff] }
 0x161   : > { %3374 = vmatmul.mubr.msk.bf16.vlgmr.msra.gmra.mxu0 %vm406_vm9, %v2568_v63  ;;  %v2742_v8 = vadd.f32 %v2740_v1, %v2731_v0  ;;  %v2261_v63 = vsel %vm322_vm1, %v3141_v62, 0.0  ;;  %v3142_v1 = vld [vmem:[%s3721_s12 + $0x81] sm:$0xff] }
 0x162   : > { %v2750_v28 = vadd.f32 %v3190_v9, %v2741_v47 }
 0x163   : > { %v2751_v10 = vadd.f32 %v3190_v9, %v2742_v8 }
 0x164   : > { %v2752_v51 = vmax.f32 %v2750_v28, 0.0  ;;  %v2262_v28 = vsel %vm322_vm1, %v3142_v1, 0.0 }
 0x165   : > { %v2753_v39 = vmax.f32 %v2751_v10, 0.0 }
 0x166   : > { %v2754_v27 = vmin.f32 %v2752_v51, 6.0 }
 0x167   : > { %v2755_v18 = vmin.f32 %v2753_v39, 6.0 }
 0x169   : > { %v2756_v24 = vpack.c.bf16 %v2755_v18, %v2754_v27  ;;  %v3159_v27 = vld [vmem:[%s3721_s12 + $0x91] sm:$0xff] }
 0x16b   : > { %3382 = vmatmul.mubr.msk.bf16.vlgmr.msra.gmra.mxu1 %vm406_vm9, %v2756_v24  ;;  %v2449_v24 = vsel %vm322_vm1, %v3159_v27, 0.0 }
 0x1e0   : > { %v1501_v35 = vpop.f32.mrf.mxu0 }
 0x1e1   : > { %v1502_v37 = vadd.f32 %v4810_v12, %v1501_v35  ;;  %v3160_v35 = vld [vmem:[%s3721_s12 + $0x99] sm:$0xff] }
 0x1e2   : > { %v3327_v19 = vpop.f32.mrf.mxu0 }
 0x1e3   : > { %v1512_v3 = vadd.f32 %v1510_v53, %v1502_v37  ;;  %v2450_v19 = vsel %vm322_vm1, %v3160_v35, 0.0 }
 0x1e4   : > { %v1504_v42 = vpop.f32.mrf.mxu0 }
 0x1e5   : > { %1514 = vst [vmem:[%s4818_s21] sm:$0xff] %v1512_v3  ;;  %v1505_v41 = vadd.f32 %v4810_v12, %v1504_v42 }
 0x1e6   : > { %v3328_v15 = vpop.f32.mrf.mxu0 }
 0x1e7   : > { %v1513_v44 = vadd.f32 %v1511_v13, %v1505_v41  ;;  %v3177_v41 = vld [vmem:[%s3721_s12 + $0xa9] sm:$0xff] }
 0x1e9   : > { %1515 = vst [vmem:[%s4818_s21 + $0x8] sm:$0xff] %v1513_v44  ;;  %v2637_v44 = vsel %vm322_vm1, %v3177_v41, 0.0 }
 0x1ed   : > { %v1688_v2 = vpop.f32.mrf.mxu1 }
 0x1ee   : > { %v1689_v16 = vadd.f32 %v4810_v12, %v1688_v2  ;;  %v3178_v2 = vld [vmem:[%s3721_s12 + $0xb1] sm:$0xff] }
 0x1ef   : > { %v3335_v34 = vpop.f32.mrf.mxu1 }
 0x1f0   : > { %v1699_v11 = vadd.f32 %v1697_v46, %v1689_v16  ;;  %v2638_v34 = vsel %vm322_vm1, %v3178_v2, 0.0 }
 0x1f1   : > { %v1691_v31 = vpop.f32.mrf.mxu1 }
 0x1f2   : > { %3089 = vst [vmem:[%s4818_s21 + $0x10] sm:$0xff] %v1699_v11  ;;  %v1692_v26 = vadd.f32 %v4810_v12, %v1691_v31 }
 0x1f3   : > { %v3336_v32 = vpop.f32.mrf.mxu1 }
 0x1f4   : > { %v1700_v14 = vadd.f32 %v1698_v36, %v1692_v26  ;;  %v3195_v26 = vld [vmem:[%s3721_s12 + $0xc1] sm:$0xff] }
 0x1f5   : > { %v2825_v32 = vsel %vm322_vm1, %v3195_v26, 0.0 }
 0x1f6   : > { %3090 = vst [vmem:[%s4818_s21 + $0x18] sm:$0xff] %v1700_v14  ;;  %v1876_v5 = vpop.f32.mrf.mxu0 }
 0x1f7   : > { %v1877_v45 = vadd.f32 %v4810_v12, %v1876_v5  ;;  %v3196_v5 = vld [vmem:[%s3721_s12 + $0xc9] sm:$0xff]  ;;  %s4891_s12 = scalar_lea.sflag [#allocation4], %s283_s2 }
 0x1f8   : > { %v3343_v61 = vpop.f32.mrf.mxu0 }
 0x1f9   : > { %v1887_v29 = vadd.f32 %v1885_v52, %v1877_v45  ;;  %v2826_v61 = vsel %vm322_vm1, %v3196_v5, 0.0 }
 0x1fa   : > { %v1879_v6 = vpop.f32.mrf.mxu0 }
 0x1fb   : > { %3107 = vst [vmem:[%s4818_s21 + $0x20] sm:$0xff] %v1887_v29  ;;  %v1880_v23 = vadd.f32 %v4810_v12, %v1879_v6 }
 0x1fc   : > { %v3344_v48 = vpop.f32.mrf.mxu0 }
 0x1fd   : > { %v1888_v60 = vadd.f32 %v1886_v21, %v1880_v23 }
 0x1ff   : > { %3108 = vst [vmem:[%s4818_s21 + $0x28] sm:$0xff] %v1888_v60 }
 0x201   : > { %v2064_v7 = vpop.f32.mrf.mxu1 }
 0x202   : > { %v2065_v38 = vadd.f32 %v4810_v12, %v2064_v7 }
 0x203   : > { %v3351_v57 = vpop.f32.mrf.mxu1 }
 0x204   : > { %v2075_v58 = vadd.f32 %v2073_v56, %v2065_v38 }
 0x205   : > { %v2067_v50 = vpop.f32.mrf.mxu1 }
 0x206   : > { %3125 = vst [vmem:[%s4818_s21 + $0x30] sm:$0xff] %v2075_v58  ;;  %v2068_v55 = vadd.f32 %v4810_v12, %v2067_v50 }
 0x207   : > { %v3352_v59 = vpop.f32.mrf.mxu1 }
 0x208   : > { %v2076_v43 = vadd.f32 %v2074_v30, %v2068_v55 }
 0x20a   : > { %3126 = vst [vmem:[%s4818_s21 + $0x38] sm:$0xff] %v2076_v43 }
 0x20b   : > { %v2252_v22 = vpop.f32.mrf.mxu0 }
 0x20c   : > { %v2253_v0 = vadd.f32 %v4810_v12, %v2252_v22 }
 0x20d   : > { %v3359_v9 = vpop.f32.mrf.mxu0 }
 0x20e   : > { %v2263_v47 = vadd.f32 %v2261_v63, %v2253_v0 }
 0x20f   : > { %v2255_v8 = vpop.f32.mrf.mxu0 }
 0x210   : > { %3143 = vst [vmem:[%s4818_s21 + $0x40] sm:$0xff] %v2263_v47  ;;  %v2256_v10 = vadd.f32 %v4810_v12, %v2255_v8 }
 0x211   : > { %v3360_v51 = vpop.f32.mrf.mxu0 }
 0x212   : > { %v2264_v39 = vadd.f32 %v2262_v28, %v2256_v10 }
 0x214   : > { %3144 = vst [vmem:[%s4818_s21 + $0x48] sm:$0xff] %v2264_v39 }
 0x216   : > { %v2440_v18 = vpop.f32.mrf.mxu1 }
 0x217   : > { %v2441_v40 = vadd.f32 %v4810_v12, %v2440_v18 }
 0x218   : > { %v3367_v53 = vpop.f32.mrf.mxu1 }
 0x219   : > { %v2451_v37 = vadd.f32 %v2449_v24, %v2441_v40 }
 0x21a   : > { %v2443_v17 = vpop.f32.mrf.mxu1 }
 0x21b   : > { %3161 = vst [vmem:[%s4818_s21 + $0x50] sm:$0xff] %v2451_v37  ;;  %v2444_v3 = vadd.f32 %v4810_v12, %v2443_v17 }
 0x21c   : > { %v3368_v42 = vpop.f32.mrf.mxu1 }
 0x21d   : > { %v2452_v13 = vadd.f32 %v2450_v19, %v2444_v3 }
 0x21f   : > { %3162 = vst [vmem:[%s4818_s21 + $0x58] sm:$0xff] %v2452_v13 }
 0x221   : > { %v2628_v15 = vpop.f32.mrf.mxu0 }
 0x222   : > { %v2629_v20 = vadd.f32 %v4810_v12, %v2628_v15 }
 0x223   : > { %v3375_v46 = vpop.f32.mrf.mxu0 }
 0x224   : > { %v2639_v16 = vadd.f32 %v2637_v44, %v2629_v20 }
 0x225   : > { %v2631_v54 = vpop.f32.mrf.mxu0 }
 0x226   : > { %3179 = vst [vmem:[%s4818_s21 + $0x60] sm:$0xff] %v2639_v16  ;;  %v2632_v11 = vadd.f32 %v4810_v12, %v2631_v54 }
 0x227   : > { %v3376_v31 = vpop.f32.mrf.mxu0 }
 0x228   : > { %v2640_v36 = vadd.f32 %v2638_v34, %v2632_v11 }
 0x22a   : > { %3180 = vst [vmem:[%s4818_s21 + $0x68] sm:$0xff] %v2640_v36 }
 0x22b   : > { %v2816_v33 = vpop.f32.mrf.mxu1 }
 0x22c   : > { %v2817_v14 = vadd.f32 %v4810_v12, %v2816_v33 }
 0x22d   : > { %v3383_v52 = vpop.f32.mrf.mxu1 }
 0x22e   : > { %v2827_v45 = vadd.f32 %v2825_v32, %v2817_v14 }
 0x22f   : > { %v2819_v25 = vpop.f32.mrf.mxu1 }
 0x230   : > { %3197 = vst [vmem:[%s4818_s21 + $0x70] sm:$0xff] %v2827_v45  ;;  %v2820_v29 = vadd.f32 %v4810_v12, %v2819_v25 }
 0x231   : > { %v3384_v6 = vpop.f32.mrf.mxu1 }
 0x232   : > { %v2828_v21 = vadd.f32 %v2826_v61, %v2820_v29 }
 0x234   : > { %3198 = vst [vmem:[%s4818_s21 + $0x78] sm:$0xff] %v2828_v21 }
 0x235   : > { %3500 = shalt.err (!%p3497_p13)
}
 0x236   : > { %s3501_s2 = scalar_lea.hbm %s4884_s22, 2048  ;;  %s3505_s10 = scalar_lea.hbm %s4949_s7, 8192 }
 0x237   : > { %p3502_p0 = scmp.ne.s32.totalorder %s4884_s22, %s3501_s2  ;;  %p3506_p4 = scmp.lt.s32.totalorder %s4884_s22, %s4949_s7 }
 0x238   : > { %p3507_p5 = scmp.lt.s32.totalorder %s3505_s10, %s3501_s2 }
 0x239   : > { %p3503_p1 = pnand %p3502_p0, %p3677_p3 }
 0x23a   : > { %p3508_p6 = por %p3507_p5, %p3506_p4 }
 0x23b   : > { %p3504_p2 = pneg %p3503_p1 }
 0x23d   : > { %p3509_p7 = pnand %p3508_p6, %p3504_p2 }
 0x23f   : > { %3512 = shalt.err (!%p3509_p7)
}
 0x240   : > { %s3584_s18 = smov 128   ;;  %s3585_s27 = smov 8  }
 0x241   : > { %3396 = dma.vmem_to_hbm [thread:$0]  (%p3677_p3), %s4886_s20, 2048, %s4884_s22, %s4891_s12, %s3584_s18, %s3584_s18, %s3585_s27  }
 0x242 PF: > { %p3402_p9 = scmp.ge.s32.totalorder %s3579_s8, 2  ;;  %s2864_s28 = sand.u32 1, %s3551_s24  }
 0x243   : > { %s2865_s0 = scalar_lea.sflag [#allocation4], %s2864_s28 }
 0x244   : > { %p3399_p10 = pnand %p3402_p9, %p3686_p8 }
 0x246   : > { %p3400_p11 = pneg %p3399_p10 }
 0x248   : > { %3546 = dma.done.wait (%p3400_p11), %s2865_s0, 2048  }
 0x249   : > { %3548 = vsyncadd (%p3400_p11), %s2865_s0, 4294965248  ;;  %s20_s8 = sadd.s32 1, %s3579_s8   ;;  %s5033_s14 = sld [smem:[#allocation6_spill]] }
 0x24a   : > { %p17_p12 = scmp.ge.s32.totalorder %s20_s8, 6   ;;  %s5034_s24 = smov %s3555_s25 }
 0x24b   : > { %s5035_s25 = smov %s3559_s26  ;;  %s5036_s26 = smov %s3695_s19 }
 0x24c   : > { %s5037_s27 = smov %s3571_s29  ;;  %s5038_s28 = smov %s3575_s30 }
 0x24d   : > { %s5039_s29 = smov %s5042_s11  ;;  %19 = sbr.rel (!%p17_p12) target bundleno = 9 (0x9), region = 109 }
 0x24f   : > { %s5040_s30 = smov %s5033_s14 }
 0x252   :  { %2870 = vsyncpa [#allocation4], 1 }
 0x253   :  { %2872 = vsyncpa [#allocation4 + $0x1], 1 }

</bundles_post_ra>
